<compile_context>
chip_gen: v7x
topology: tpu7x:2x2x1
jax: 0.10.0
libtpu: 0.0.40
codegen_flags: <defaults>
</compile_context>

<pallas_src>
import functools

import jax
import jax.numpy as jnp
from jax import lax
from jax.experimental import pallas as pl
from jax.experimental.pallas import tpu as pltpu


_INV_SQRT2 = 0.7071067811865476


def _gelu(v, approximate):
    if approximate:
        return jax.nn.gelu(v, approximate=True)        # tanh -> EUP slot (cheap)
    # exact erf (torch nn.GELU() default); costs a VPU polynomial per element
    return 0.5 * v * (1.0 + lax.erf(v * _INV_SQRT2))


def _mixer_kernel(x_ref,
                  g1_ref, be1_ref, wp1_ref, bp1_ref, wp2_ref, bp2_ref,
                  g2_ref, be2_ref, wc1_ref, bc1_ref, wc2_ref, bc2_ref,
                  o_ref, *, eps, approximate_gelu):
    x = x_ref[0].astype(jnp.float32)                   # (N, C)
    wdt = wp1_ref.dtype                                 # matmul feed dtype (bf16)

    def layer_norm(v, g, b):                           # over channel (lane) axis
        mu = jnp.mean(v, axis=-1, keepdims=True)
        d = v - mu
        var = jnp.mean(d * d, axis=-1, keepdims=True)
        return d * lax.rsqrt(var + eps) * g + b

    # contract dim 0 of both operands: "A^T @ B" — MXU-native, no activation .T
    cdims = (((0,), (0,)), ((), ()))

    # ---- token (patch) mixing branch (transpose-free) ---------------------------
    n1 = layer_norm(x, g1_ref[...], be1_ref[...])                        # (N, C)
    h_t = lax.dot_general(wp1_ref[...], n1.astype(wdt), cdims,
                          preferred_element_type=jnp.float32)            # (P, C)
    h_t = _gelu(h_t + bp1_ref[...], approximate_gelu).astype(wdt)        # bp1: (P,1)
    yp = lax.dot_general(wp2_ref[...], h_t, cdims,
                         preferred_element_type=jnp.float32)             # (N, C)
    x1 = x + yp + bp2_ref[...]                                           # bp2: (N,1)

    # ---- channel mixing branch --------------------------------------------------
    n2 = layer_norm(x1, g2_ref[...], be2_ref[...])                       # (N, C)
    h2 = jnp.dot(n2.astype(wdt), wc1_ref[...],
                 preferred_element_type=jnp.float32) + bc1_ref[...]      # (N, Cm)
    h2 = _gelu(h2, approximate_gelu).astype(wdt)
    y2 = jnp.dot(h2, wc2_ref[...],
                 preferred_element_type=jnp.float32) + bc2_ref[...]      # (N, C)

    o_ref[0] = (x1 + y2).astype(o_ref.dtype)


def _round_up(v, m):
    return (v + m - 1) // m * m


def _pad_axis(v, target, axis):
    pad = target - v.shape[axis]
    if pad <= 0:
        return v
    widths = [(0, 0)] * v.ndim
    widths[axis] = (0, pad)
    return jnp.pad(v, widths)


def _vmem_cap_bytes():
    # ~75% of physical VMEM: ~96 MiB on 128 MiB parts (v5e/v6e), 48 MiB on v7x.
    try:
        phys = pltpu.get_tpu_info().vmem_capacity_bytes
    except Exception:
        phys = 64 * 1024 * 1024                        # conservative (v7x) fallback
    return int(min(phys * 3 // 4, 100 * 1024 * 1024))


def _vmem_limit_bytes(n, c, p, cm, x_itemsize, w_itemsize, weights_single_buffered):
    io = 2 * 2 * n * c * x_itemsize                    # x + out, 2-deep pipeline
    wbuf = 1 if weights_single_buffered else 2
    weights = wbuf * (w_itemsize * (2 * n * p + 2 * c * cm)         # 4 weight mats
                      + 4 * (6 * c + p + n + cm))                   # f32 LN params + biases
    temps = 4 * (3 * n * c + p * c + n * cm)           # in-kernel f32 intermediates
    est = 2 * (io + weights + temps)                   # 2x headroom
    return int(min(max(est, 16 * 1024 * 1024), _vmem_cap_bytes()))


def mlp_mixer_layer_pallas(x, g1, be1, wp1, bp1, wp2, bp2, g2, be2, wc1, bc1, wc2, bc2,
                           *, eps=1e-5, approximate_gelu=False,
                           weight_dtype=jnp.bfloat16, donate_x=False):
    """MLPMixerLayer forward (eval semantics: Dropout / DropPath = identity).

    x                : (B, N, C) tokens, channels-last (C multiple of 128 recommended)
    g1, be1, g2, be2 : (C,)      LayerNorm weight / bias
    wp1 : (N, P)   bp1 : (P,)    patch_mixer fc1  (torch weight (P, N), pre-transposed)
    wp2 : (P, N)   bp2 : (N,)    patch_mixer fc2  (torch weight (N, P), pre-transposed)
    wc1 : (C, Cm)  bc1 : (Cm,)   channel_mixer fc1 (pre-transposed)
    wc2 : (Cm, C)  bc2 : (C,)    channel_mixer fc2 (pre-transposed)
    """
    b, n, c = x.shape
    p = wp1.shape[1]
    cm = wc1.shape[1]
    assert wp1.shape == (n, p) and wp2.shape == (p, n)
    assert wc1.shape == (c, cm) and wc2.shape == (cm, c)

    # Pad MLP hidden dims up to lane width; padding stays inside the weights so
    # the (N, C) output store remains a full-lane unmasked vst.  Exact: padded
    # weight cols/rows and biases are zero and gelu(0) = 0.
    p_pad = max(128, _round_up(p, 128))
    cm_pad = max(128, _round_up(cm, 128))
    wp1p = _pad_axis(wp1, p_pad, 1).astype(weight_dtype)
    wp2p = _pad_axis(wp2, p_pad, 0).astype(weight_dtype)
    wc1p = _pad_axis(wc1, cm_pad, 1).astype(weight_dtype)
    wc2p = _pad_axis(wc2, cm_pad, 0).astype(weight_dtype)

    f32 = jnp.float32
    g1r, be1r, g2r, be2r = (v.astype(f32).reshape(1, c) for v in (g1, be1, g2, be2))
    bp1r = _pad_axis(bp1.astype(f32), p_pad, 0).reshape(p_pad, 1)   # per-P column
    bp2r = bp2.astype(f32).reshape(n, 1)                            # per-N column
    bc1r = _pad_axis(bc1.astype(f32), cm_pad, 0).reshape(1, cm_pad)
    bc2r = bc2.astype(f32).reshape(1, c)

    const = lambda i: (0, 0)
    kernel = functools.partial(_mixer_kernel, eps=eps, approximate_gelu=approximate_gelu)
    w_itemsize = jnp.dtype(weight_dtype).itemsize

    def build(weight_pipeline_mode):
        def wspec(shape):
            if weight_pipeline_mode is None:
                return pl.BlockSpec(shape, const)
            return pl.BlockSpec(shape, const, pipeline_mode=weight_pipeline_mode)

        return pl.pallas_call(
            kernel,
            out_shape=jax.ShapeDtypeStruct((b, n, c), x.dtype),
            grid_spec=pltpu.PrefetchScalarGridSpec(
                num_scalar_prefetch=0,
                grid=(b,),                                   # one full (N, C) slab / step
                in_specs=[
                    pl.BlockSpec((1, n, c), lambda i: (i, 0, 0)),   # x
                    wspec((1, c)),                                  # norm1 gamma
                    wspec((1, c)),                                  # norm1 beta
                    wspec((n, p_pad)),                              # patch fc1 W
                    wspec((p_pad, 1)),                              # patch fc1 b (col)
                    wspec((p_pad, n)),                              # patch fc2 W
                    wspec((n, 1)),                                  # patch fc2 b (col)
                    wspec((1, c)),                                  # norm2 gamma
                    wspec((1, c)),                                  # norm2 beta
                    wspec((c, cm_pad)),                             # channel fc1 W
                    wspec((1, cm_pad)),                             # channel fc1 b
                    wspec((cm_pad, c)),                             # channel fc2 W
                    wspec((1, c)),                                  # channel fc2 b
                ],
                out_specs=pl.BlockSpec((1, n, c), lambda i: (i, 0, 0)),
            ),
            input_output_aliases={0: 0} if donate_x else {},
            compiler_params=pltpu.CompilerParams(
                dimension_semantics=("parallel",),
                vmem_limit_bytes=_vmem_limit_bytes(
                    n, c, p_pad, cm_pad, x.dtype.itemsize, w_itemsize,
                    weights_single_buffered=weight_pipeline_mode is not None),
            ),
        )

    args = (x, g1r, be1r, wp1p, bp1r, wp2p, bp2r, g2r, be2r, wc1p, bc1r, wc2p, bc2r)
    try:
        # Single pipeline buffer for the grid-constant weights/biases.
        return build(pl.Buffered(1))(*args)
    except Exception:
        # TODO(synk): drop this fallback once pl.Buffered(1) is confirmed on the
        # deployed jax version; results are identical, only weight VMEM differs.
        return build(None)(*args)


if __name__ == "__main__":
    # MLPMixerLayer(num_patches=128, embed_dims=128, patch_expansion=0.5,
    #               channel_expansion=2.0, drop_path=0.0, drop_out=0.0)
    batch = 4                                    # >= 2 steps per v7x TensorCore
    num_patches = 128
    embed_dims = 128
    patch_mix_dims = int(0.5 * embed_dims)       # 64 (padded to 128 inside wrapper)
    channel_mix_dims = int(2.0 * embed_dims)     # 256

    key = jax.random.PRNGKey(0)
    ks = jax.random.split(key, 13)
    f32 = jnp.float32

    x = jax.random.normal(ks[0], (batch, num_patches, embed_dims), f32)

    g1 = 1.0 + 0.1 * jax.random.normal(ks[1], (embed_dims,), f32)
    be1 = 0.1 * jax.random.normal(ks[2], (embed_dims,), f32)
    g2 = 1.0 + 0.1 * jax.random.normal(ks[3], (embed_dims,), f32)
    be2 = 0.1 * jax.random.normal(ks[4], (embed_dims,), f32)

    s = 0.05
    wp1 = s * jax.random.normal(ks[5], (num_patches, patch_mix_dims), f32)
    bp1 = s * jax.random.normal(ks[6], (patch_mix_dims,), f32)
    wp2 = s * jax.random.normal(ks[7], (patch_mix_dims, num_patches), f32)
    bp2 = s * jax.random.normal(ks[8], (num_patches,), f32)
    wc1 = s * jax.random.normal(ks[9], (embed_dims, channel_mix_dims), f32)
    bc1 = s * jax.random.normal(ks[10], (channel_mix_dims,), f32)
    wc2 = s * jax.random.normal(ks[11], (channel_mix_dims, embed_dims), f32)
    bc2 = s * jax.random.normal(ks[12], (embed_dims,), f32)

    y = mlp_mixer_layer_pallas(x, g1, be1, wp1, bp1, wp2, bp2,
                               g2, be2, wc1, bc1, wc2, bc2)
    y = jax.block_until_ready(y)

    # ---- pure-JAX f32 reference (exact erf GELU, eval-mode dropout/drop_path) ---
    def ln_ref(v, g, b, eps=1e-5):
        mu = v.mean(-1, keepdims=True)
        var = ((v - mu) ** 2).mean(-1, keepdims=True)
        return (v - mu) * lax.rsqrt(var + eps) * g + b

    def gelu_ref(v):
        return 0.5 * v * (1.0 + lax.erf(v * _INV_SQRT2))

    n1 = ln_ref(x, g1, be1)
    t = jnp.transpose(n1, (0, 2, 1))                      # (B, C, N)
    hp = gelu_ref(t @ wp1 + bp1)                          # (B, C, P)
    yp = hp @ wp2 + bp2                                   # (B, C, N)
    x1 = x + jnp.transpose(yp, (0, 2, 1))                 # (B, N, C)
    n2 = ln_ref(x1, g2, be2)
    y2 = gelu_ref(n2 @ wc1 + bc1) @ wc2 + bc2
    y_ref = x1 + y2

    # bf16 weight feed vs f32 reference -> slightly relaxed tolerance
    err = float(jnp.max(jnp.abs(y - y_ref)))
    assert jnp.allclose(y, y_ref, atol=3e-2, rtol=3e-2), \
        f"mismatch vs reference (max |err|={err})"

    print("KERNEL_OK")
</pallas_src>

<mosaic_0001>
module attributes {stable_mosaic.version = 11 : i64} {
  func.func @_mixer_kernel(%arg0: i32, %arg1: memref<1x128x128xf32, #tpu.memory_space<vmem>>, %arg2: memref<1x128xf32, #tpu.memory_space<vmem>>, %arg3: memref<1x128xf32, #tpu.memory_space<vmem>>, %arg4: memref<128x128xbf16, #tpu.memory_space<vmem>>, %arg5: memref<128x1xf32, #tpu.memory_space<vmem>>, %arg6: memref<128x128xbf16, #tpu.memory_space<vmem>>, %arg7: memref<128x1xf32, #tpu.memory_space<vmem>>, %arg8: memref<1x128xf32, #tpu.memory_space<vmem>>, %arg9: memref<1x128xf32, #tpu.memory_space<vmem>>, %arg10: memref<128x256xbf16, #tpu.memory_space<vmem>>, %arg11: memref<1x256xf32, #tpu.memory_space<vmem>>, %arg12: memref<256x128xbf16, #tpu.memory_space<vmem>>, %arg13: memref<1x128xf32, #tpu.memory_space<vmem>>, %arg14: memref<1x128x128xf32, #tpu.memory_space<vmem>>) attributes {dimension_semantics = [#tpu.dimension_semantics<parallel>], iteration_bounds = array<i64: 4>, scalar_prefetch = 0 : i64, scratch_operands = 0 : i64, tpu.core_type = #tpu.core_type<tc>, window_params = [{transform_indices = @transform_0, window_bounds = array<i64: 1, 128, 128>}, {pipeline_mode = #tpu.pipeline_mode<synchronous>, transform_indices = @transform_1, window_bounds = array<i64: 1, 128>}, {pipeline_mode = #tpu.pipeline_mode<synchronous>, transform_indices = @transform_2, window_bounds = array<i64: 1, 128>}, {pipeline_mode = #tpu.pipeline_mode<synchronous>, transform_indices = @transform_3, window_bounds = array<i64: 128, 128>}, {pipeline_mode = #tpu.pipeline_mode<synchronous>, transform_indices = @transform_4, window_bounds = array<i64: 128, 1>}, {pipeline_mode = #tpu.pipeline_mode<synchronous>, transform_indices = @transform_5, window_bounds = array<i64: 128, 128>}, {pipeline_mode = #tpu.pipeline_mode<synchronous>, transform_indices = @transform_6, window_bounds = array<i64: 128, 1>}, {pipeline_mode = #tpu.pipeline_mode<synchronous>, transform_indices = @transform_7, window_bounds = array<i64: 1, 128>}, {pipeline_mode = #tpu.pipeline_mode<synchronous>, transform_indices = @transform_8, window_bounds = array<i64: 1, 128>}, {pipeline_mode = #tpu.pipeline_mode<synchronous>, transform_indices = @transform_9, window_bounds = array<i64: 128, 256>}, {pipeline_mode = #tpu.pipeline_mode<synchronous>, transform_indices = @transform_10, window_bounds = array<i64: 1, 256>}, {pipeline_mode = #tpu.pipeline_mode<synchronous>, transform_indices = @transform_11, window_bounds = array<i64: 256, 128>}, {pipeline_mode = #tpu.pipeline_mode<synchronous>, transform_indices = @transform_12, window_bounds = array<i64: 1, 128>}, {transform_indices = @transform_13, window_bounds = array<i64: 1, 128, 128>}]} {
    %c0 = arith.constant 0 : index
    %c0_0 = arith.constant 0 : index
    %c0_1 = arith.constant 0 : index
    %0 = vector.load %arg1[%c0, %c0_0, %c0_1] : memref<1x128x128xf32, #tpu.memory_space<vmem>>, vector<1x128x128xf32>
    %1 = vector.shape_cast %0 : vector<1x128x128xf32> to vector<128x128xf32>
    %c0_2 = arith.constant 0 : index
    %c0_3 = arith.constant 0 : index
    %2 = vector.load %arg2[%c0_2, %c0_3] : memref<1x128xf32, #tpu.memory_space<vmem>>, vector<1x128xf32>
    %c0_4 = arith.constant 0 : index
    %c0_5 = arith.constant 0 : index
    %3 = vector.load %arg3[%c0_4, %c0_5] : memref<1x128xf32, #tpu.memory_space<vmem>>, vector<1x128xf32>
    %cst = arith.constant dense<0.000000e+00> : vector<128xf32>
    %4 = vector.multi_reduction <add>, %1, %cst [1] : vector<128x128xf32> to vector<128xf32>
    %5 = vector.shape_cast %4 : vector<128xf32> to vector<128x1xf32>
    %cst_6 = arith.constant 1.280000e+02 : f32
    %6 = vector.broadcast %cst_6 : f32 to vector<128x1xf32>
    %7 = arith.divf %5, %6 : vector<128x1xf32>
    %8 = vector.broadcast %7 : vector<128x1xf32> to vector<128x128xf32>
    %9 = arith.subf %1, %8 : vector<128x128xf32>
    %10 = arith.mulf %9, %9 : vector<128x128xf32>
    %cst_7 = arith.constant dense<0.000000e+00> : vector<128xf32>
    %11 = vector.multi_reduction <add>, %10, %cst_7 [1] : vector<128x128xf32> to vector<128xf32>
    %12 = vector.shape_cast %11 : vector<128xf32> to vector<128x1xf32>
    %cst_8 = arith.constant 1.280000e+02 : f32
    %13 = vector.broadcast %cst_8 : f32 to vector<128x1xf32>
    %14 = arith.divf %12, %13 : vector<128x1xf32>
    %cst_9 = arith.constant 9.99999974E-6 : f32
    %15 = vector.broadcast %cst_9 : f32 to vector<128x1xf32>
    %16 = arith.addf %14, %15 : vector<128x1xf32>
    %17 = math.rsqrt %16 : vector<128x1xf32>
    %18 = vector.broadcast %17 : vector<128x1xf32> to vector<128x128xf32>
    %19 = arith.mulf %9, %18 : vector<128x128xf32>
    %20 = vector.broadcast %2 : vector<1x128xf32> to vector<128x128xf32>
    %21 = arith.mulf %19, %20 : vector<128x128xf32>
    %22 = vector.broadcast %3 : vector<1x128xf32> to vector<128x128xf32>
    %23 = arith.addf %21, %22 : vector<128x128xf32>
    %c0_10 = arith.constant 0 : index
    %c0_11 = arith.constant 0 : index
    %24 = vector.load %arg4[%c0_10, %c0_11] : memref<128x128xbf16, #tpu.memory_space<vmem>>, vector<128x128xbf16>
    %25 = arith.truncf %23 : vector<128x128xf32> to vector<128x128xbf16>
    %cst_12 = arith.constant dense<0.000000e+00> : vector<128x128xf32>
    %26 = tpu.matmul %24, %25, %cst_12 {dimension_numbers = #tpu.dot_dimension_numbers<[0], [0], [1], [1], [0, 1, 1, 1], [], []>} : vector<128x128xbf16>, vector<128x128xbf16>, vector<128x128xf32> -> vector<128x128xf32>
    %c0_13 = arith.constant 0 : index
    %c0_14 = arith.constant 0 : index
    %27 = vector.load %arg5[%c0_13, %c0_14] : memref<128x1xf32, #tpu.memory_space<vmem>>, vector<128x1xf32>
    %28 = vector.broadcast %27 : vector<128x1xf32> to vector<128x128xf32>
    %29 = arith.addf %26, %28 : vector<128x128xf32>
    %cst_15 = arith.constant 5.000000e-01 : f32
    %30 = vector.broadcast %cst_15 : f32 to vector<128x128xf32>
    %31 = arith.mulf %30, %29 : vector<128x128xf32>
    %cst_16 = arith.constant 0.707106769 : f32
    %32 = vector.broadcast %cst_16 : f32 to vector<128x128xf32>
    %33 = arith.mulf %29, %32 : vector<128x128xf32>
    %34 = math.erf %33 : vector<128x128xf32>
    %cst_17 = arith.constant 1.000000e+00 : f32
    %35 = vector.broadcast %cst_17 : f32 to vector<128x128xf32>
    %36 = arith.addf %35, %34 : vector<128x128xf32>
    %37 = arith.mulf %31, %36 : vector<128x128xf32>
    %38 = arith.truncf %37 : vector<128x128xf32> to vector<128x128xbf16>
    %c0_18 = arith.constant 0 : index
    %c0_19 = arith.constant 0 : index
    %39 = vector.load %arg6[%c0_18, %c0_19] : memref<128x128xbf16, #tpu.memory_space<vmem>>, vector<128x128xbf16>
    %cst_20 = arith.constant dense<0.000000e+00> : vector<128x128xf32>
    %40 = tpu.matmul %39, %38, %cst_20 {dimension_numbers = #tpu.dot_dimension_numbers<[0], [0], [1], [1], [0, 1, 1, 1], [], []>} : vector<128x128xbf16>, vector<128x128xbf16>, vector<128x128xf32> -> vector<128x128xf32>
    %41 = arith.addf %1, %40 : vector<128x128xf32>
    %c0_21 = arith.constant 0 : index
    %c0_22 = arith.constant 0 : index
    %42 = vector.load %arg7[%c0_21, %c0_22] : memref<128x1xf32, #tpu.memory_space<vmem>>, vector<128x1xf32>
    %43 = vector.broadcast %42 : vector<128x1xf32> to vector<128x128xf32>
    %44 = arith.addf %41, %43 : vector<128x128xf32>
    %c0_23 = arith.constant 0 : index
    %c0_24 = arith.constant 0 : index
    %45 = vector.load %arg8[%c0_23, %c0_24] : memref<1x128xf32, #tpu.memory_space<vmem>>, vector<1x128xf32>
    %c0_25 = arith.constant 0 : index
    %c0_26 = arith.constant 0 : index
    %46 = vector.load %arg9[%c0_25, %c0_26] : memref<1x128xf32, #tpu.memory_space<vmem>>, vector<1x128xf32>
    %cst_27 = arith.constant dense<0.000000e+00> : vector<128xf32>
    %47 = vector.multi_reduction <add>, %44, %cst_27 [1] : vector<128x128xf32> to vector<128xf32>
    %48 = vector.shape_cast %47 : vector<128xf32> to vector<128x1xf32>
    %cst_28 = arith.constant 1.280000e+02 : f32
    %49 = vector.broadcast %cst_28 : f32 to vector<128x1xf32>
    %50 = arith.divf %48, %49 : vector<128x1xf32>
    %51 = vector.broadcast %50 : vector<128x1xf32> to vector<128x128xf32>
    %52 = arith.subf %44, %51 : vector<128x128xf32>
    %53 = arith.mulf %52, %52 : vector<128x128xf32>
    %cst_29 = arith.constant dense<0.000000e+00> : vector<128xf32>
    %54 = vector.multi_reduction <add>, %53, %cst_29 [1] : vector<128x128xf32> to vector<128xf32>
    %55 = vector.shape_cast %54 : vector<128xf32> to vector<128x1xf32>
    %cst_30 = arith.constant 1.280000e+02 : f32
    %56 = vector.broadcast %cst_30 : f32 to vector<128x1xf32>
    %57 = arith.divf %55, %56 : vector<128x1xf32>
    %cst_31 = arith.constant 9.99999974E-6 : f32
    %58 = vector.broadcast %cst_31 : f32 to vector<128x1xf32>
    %59 = arith.addf %57, %58 : vector<128x1xf32>
    %60 = math.rsqrt %59 : vector<128x1xf32>
    %61 = vector.broadcast %60 : vector<128x1xf32> to vector<128x128xf32>
    %62 = arith.mulf %52, %61 : vector<128x128xf32>
    %63 = vector.broadcast %45 : vector<1x128xf32> to vector<128x128xf32>
    %64 = arith.mulf %62, %63 : vector<128x128xf32>
    %65 = vector.broadcast %46 : vector<1x128xf32> to vector<128x128xf32>
    %66 = arith.addf %64, %65 : vector<128x128xf32>
    %67 = arith.truncf %66 : vector<128x128xf32> to vector<128x128xbf16>
    %c0_32 = arith.constant 0 : index
    %c0_33 = arith.constant 0 : index
    %68 = vector.load %arg10[%c0_32, %c0_33] : memref<128x256xbf16, #tpu.memory_space<vmem>>, vector<128x256xbf16>
    %cst_34 = arith.constant dense<0.000000e+00> : vector<128x256xf32>
    %69 = tpu.matmul %67, %68, %cst_34 {dimension_numbers = #tpu.dot_dimension_numbers<[1], [0], [0], [1], [0, 0, 1, 1], [], []>} : vector<128x128xbf16>, vector<128x256xbf16>, vector<128x256xf32> -> vector<128x256xf32>
    %c0_35 = arith.constant 0 : index
    %c0_36 = arith.constant 0 : index
    %70 = vector.load %arg11[%c0_35, %c0_36] : memref<1x256xf32, #tpu.memory_space<vmem>>, vector<1x256xf32>
    %71 = vector.broadcast %70 : vector<1x256xf32> to vector<128x256xf32>
    %72 = arith.addf %69, %71 : vector<128x256xf32>
    %cst_37 = arith.constant 5.000000e-01 : f32
    %73 = vector.broadcast %cst_37 : f32 to vector<128x256xf32>
    %74 = arith.mulf %73, %72 : vector<128x256xf32>
    %cst_38 = arith.constant 0.707106769 : f32
    %75 = vector.broadcast %cst_38 : f32 to vector<128x256xf32>
    %76 = arith.mulf %72, %75 : vector<128x256xf32>
    %77 = math.erf %76 : vector<128x256xf32>
    %cst_39 = arith.constant 1.000000e+00 : f32
    %78 = vector.broadcast %cst_39 : f32 to vector<128x256xf32>
    %79 = arith.addf %78, %77 : vector<128x256xf32>
    %80 = arith.mulf %74, %79 : vector<128x256xf32>
    %81 = arith.truncf %80 : vector<128x256xf32> to vector<128x256xbf16>
    %c0_40 = arith.constant 0 : index
    %c0_41 = arith.constant 0 : index
    %82 = vector.load %arg12[%c0_40, %c0_41] : memref<256x128xbf16, #tpu.memory_space<vmem>>, vector<256x128xbf16>
    %cst_42 = arith.constant dense<0.000000e+00> : vector<128x128xf32>
    %83 = tpu.matmul %81, %82, %cst_42 {dimension_numbers = #tpu.dot_dimension_numbers<[1], [0], [0], [1], [0, 0, 1, 1], [], []>} : vector<128x256xbf16>, vector<256x128xbf16>, vector<128x128xf32> -> vector<128x128xf32>
    %c0_43 = arith.constant 0 : index
    %c0_44 = arith.constant 0 : index
    %84 = vector.load %arg13[%c0_43, %c0_44] : memref<1x128xf32, #tpu.memory_space<vmem>>, vector<1x128xf32>
    %85 = vector.broadcast %84 : vector<1x128xf32> to vector<128x128xf32>
    %86 = arith.addf %83, %85 : vector<128x128xf32>
    %87 = arith.addf %44, %86 : vector<128x128xf32>
    %c0_45 = arith.constant 0 : index
    %c0_46 = arith.constant 0 : index
    %c0_47 = arith.constant 0 : index
    %88 = vector.load %arg14[%c0_45, %c0_46, %c0_47] : memref<1x128x128xf32, #tpu.memory_space<vmem>>, vector<1x128x128xf32>
    %89 = vector.shape_cast %88 : vector<1x128x128xf32> to vector<128x128xf32>
    %90 = vector.shape_cast %87 : vector<128x128xf32> to vector<1x128x128xf32>
    tpu.vector_store %arg14[%c0_45, %c0_46, %c0_47], %90 {strides = array<i32>} : memref<1x128x128xf32, #tpu.memory_space<vmem>>, vector<1x128x128xf32>,
    return
  }
  func.func @transform_0(%arg0: i32) -> (i32, i32, i32) {
    %c0_i32 = arith.constant 0 : i32
    %c0_i32_0 = arith.constant 0 : i32
    %c0_i32_1 = arith.constant 0 : i32
    return %arg0, %c0_i32, %c0_i32_0 : i32, i32, i32
  }
  func.func @transform_1(%arg0: i32) -> (i32, i32) {
    %c0_i32 = arith.constant 0 : i32
    %c0_i32_0 = arith.constant 0 : i32
    %c0_i32_1 = arith.constant 0 : i32
    return %c0_i32, %c0_i32_0 : i32, i32
  }
  func.func @transform_2(%arg0: i32) -> (i32, i32) {
    %c0_i32 = arith.constant 0 : i32
    %c0_i32_0 = arith.constant 0 : i32
    %c0_i32_1 = arith.constant 0 : i32
    return %c0_i32, %c0_i32_0 : i32, i32
  }
  func.func @transform_3(%arg0: i32) -> (i32, i32) {
    %c0_i32 = arith.constant 0 : i32
    %c0_i32_0 = arith.constant 0 : i32
    %c0_i32_1 = arith.constant 0 : i32
    return %c0_i32, %c0_i32_0 : i32, i32
  }
  func.func @transform_4(%arg0: i32) -> (i32, i32) {
    %c0_i32 = arith.constant 0 : i32
    %c0_i32_0 = arith.constant 0 : i32
    %c0_i32_1 = arith.constant 0 : i32
    return %c0_i32, %c0_i32_0 : i32, i32
  }
  func.func @transform_5(%arg0: i32) -> (i32, i32) {
    %c0_i32 = arith.constant 0 : i32
    %c0_i32_0 = arith.constant 0 : i32
    %c0_i32_1 = arith.constant 0 : i32
    return %c0_i32, %c0_i32_0 : i32, i32
  }
  func.func @transform_6(%arg0: i32) -> (i32, i32) {
    %c0_i32 = arith.constant 0 : i32
    %c0_i32_0 = arith.constant 0 : i32
    %c0_i32_1 = arith.constant 0 : i32
    return %c0_i32, %c0_i32_0 : i32, i32
  }
  func.func @transform_7(%arg0: i32) -> (i32, i32) {
    %c0_i32 = arith.constant 0 : i32
    %c0_i32_0 = arith.constant 0 : i32
    %c0_i32_1 = arith.constant 0 : i32
    return %c0_i32, %c0_i32_0 : i32, i32
  }
  func.func @transform_8(%arg0: i32) -> (i32, i32) {
    %c0_i32 = arith.constant 0 : i32
    %c0_i32_0 = arith.constant 0 : i32
    %c0_i32_1 = arith.constant 0 : i32
    return %c0_i32, %c0_i32_0 : i32, i32
  }
  func.func @transform_9(%arg0: i32) -> (i32, i32) {
    %c0_i32 = arith.constant 0 : i32
    %c0_i32_0 = arith.constant 0 : i32
    %c0_i32_1 = arith.constant 0 : i32
    return %c0_i32, %c0_i32_0 : i32, i32
  }
  func.func @transform_10(%arg0: i32) -> (i32, i32) {
    %c0_i32 = arith.constant 0 : i32
    %c0_i32_0 = arith.constant 0 : i32
    %c0_i32_1 = arith.constant 0 : i32
    return %c0_i32, %c0_i32_0 : i32, i32
  }
  func.func @transform_11(%arg0: i32) -> (i32, i32) {
    %c0_i32 = arith.constant 0 : i32
    %c0_i32_0 = arith.constant 0 : i32
    %c0_i32_1 = arith.constant 0 : i32
    return %c0_i32, %c0_i32_0 : i32, i32
  }
  func.func @transform_12(%arg0: i32) -> (i32, i32) {
    %c0_i32 = arith.constant 0 : i32
    %c0_i32_0 = arith.constant 0 : i32
    %c0_i32_1 = arith.constant 0 : i32
    return %c0_i32, %c0_i32_0 : i32, i32
  }
  func.func @transform_13(%arg0: i32) -> (i32, i32, i32) {
    %c0_i32 = arith.constant 0 : i32
    %c0_i32_0 = arith.constant 0 : i32
    %c0_i32_1 = arith.constant 0 : i32
    return %arg0, %c0_i32, %c0_i32_0 : i32, i32, i32
  }
}

module attributes {stable_mosaic.version = 11 : i64} {
  func.func @_mixer_kernel(%arg0: i32, %arg1: memref<1x128x128xf32, #tpu.memory_space<vmem>>, %arg2: memref<1x128xf32, #tpu.memory_space<vmem>>, %arg3: memref<1x128xf32, #tpu.memory_space<vmem>>, %arg4: memref<128x128xbf16, #tpu.memory_space<vmem>>, %arg5: memref<128x1xf32, #tpu.memory_space<vmem>>, %arg6: memref<128x128xbf16, #tpu.memory_space<vmem>>, %arg7: memref<128x1xf32, #tpu.memory_space<vmem>>, %arg8: memref<1x128xf32, #tpu.memory_space<vmem>>, %arg9: memref<1x128xf32, #tpu.memory_space<vmem>>, %arg10: memref<128x256xbf16, #tpu.memory_space<vmem>>, %arg11: memref<1x256xf32, #tpu.memory_space<vmem>>, %arg12: memref<256x128xbf16, #tpu.memory_space<vmem>>, %arg13: memref<1x128xf32, #tpu.memory_space<vmem>>, %arg14: memref<1x128x128xf32, #tpu.memory_space<vmem>>) attributes {dimension_semantics = [#tpu.dimension_semantics<parallel>], iteration_bounds = array<i64: 4>, scalar_prefetch = 0 : i64, scratch_operands = 0 : i64, tpu.core_type = #tpu.core_type<tc>, window_params = [{transform_indices = @transform_0, window_bounds = array<i64: 1, 128, 128>}, {pipeline_mode = #tpu.pipeline_mode<synchronous>, transform_indices = @transform_1, window_bounds = array<i64: 1, 128>}, {pipeline_mode = #tpu.pipeline_mode<synchronous>, transform_indices = @transform_2, window_bounds = array<i64: 1, 128>}, {pipeline_mode = #tpu.pipeline_mode<synchronous>, transform_indices = @transform_3, window_bounds = array<i64: 128, 128>}, {pipeline_mode = #tpu.pipeline_mode<synchronous>, transform_indices = @transform_4, window_bounds = array<i64: 128, 1>}, {pipeline_mode = #tpu.pipeline_mode<synchronous>, transform_indices = @transform_5, window_bounds = array<i64: 128, 128>}, {pipeline_mode = #tpu.pipeline_mode<synchronous>, transform_indices = @transform_6, window_bounds = array<i64: 128, 1>}, {pipeline_mode = #tpu.pipeline_mode<synchronous>, transform_indices = @transform_7, window_bounds = array<i64: 1, 128>}, {pipeline_mode = #tpu.pipeline_mode<synchronous>, transform_indices = @transform_8, window_bounds = array<i64: 1, 128>}, {pipeline_mode = #tpu.pipeline_mode<synchronous>, transform_indices = @transform_9, window_bounds = array<i64: 128, 256>}, {pipeline_mode = #tpu.pipeline_mode<synchronous>, transform_indices = @transform_10, window_bounds = array<i64: 1, 256>}, {pipeline_mode = #tpu.pipeline_mode<synchronous>, transform_indices = @transform_11, window_bounds = array<i64: 256, 128>}, {pipeline_mode = #tpu.pipeline_mode<synchronous>, transform_indices = @transform_12, window_bounds = array<i64: 1, 128>}, {transform_indices = @transform_13, window_bounds = array<i64: 1, 128, 128>}]} {
    %c0 = arith.constant 0 : index
    %c0_0 = arith.constant 0 : index
    %c0_1 = arith.constant 0 : index
    %0 = vector.load %arg1[%c0, %c0_0, %c0_1] : memref<1x128x128xf32, #tpu.memory_space<vmem>>, vector<1x128x128xf32>
    %1 = vector.shape_cast %0 : vector<1x128x128xf32> to vector<128x128xf32>
    %c0_2 = arith.constant 0 : index
    %c0_3 = arith.constant 0 : index
    %2 = vector.load %arg2[%c0_2, %c0_3] : memref<1x128xf32, #tpu.memory_space<vmem>>, vector<1x128xf32>
    %c0_4 = arith.constant 0 : index
    %c0_5 = arith.constant 0 : index
    %3 = vector.load %arg3[%c0_4, %c0_5] : memref<1x128xf32, #tpu.memory_space<vmem>>, vector<1x128xf32>
    %cst = arith.constant dense<0.000000e+00> : vector<128xf32>
    %4 = vector.multi_reduction <add>, %1, %cst [1] : vector<128x128xf32> to vector<128xf32>
    %5 = vector.shape_cast %4 : vector<128xf32> to vector<128x1xf32>
    %cst_6 = arith.constant 1.280000e+02 : f32
    %6 = vector.broadcast %cst_6 : f32 to vector<128x1xf32>
    %7 = arith.divf %5, %6 : vector<128x1xf32>
    %8 = vector.broadcast %7 : vector<128x1xf32> to vector<128x128xf32>
    %9 = arith.subf %1, %8 : vector<128x128xf32>
    %10 = arith.mulf %9, %9 : vector<128x128xf32>
    %cst_7 = arith.constant dense<0.000000e+00> : vector<128xf32>
    %11 = vector.multi_reduction <add>, %10, %cst_7 [1] : vector<128x128xf32> to vector<128xf32>
    %12 = vector.shape_cast %11 : vector<128xf32> to vector<128x1xf32>
    %cst_8 = arith.constant 1.280000e+02 : f32
    %13 = vector.broadcast %cst_8 : f32 to vector<128x1xf32>
    %14 = arith.divf %12, %13 : vector<128x1xf32>
    %cst_9 = arith.constant 9.99999974E-6 : f32
    %15 = vector.broadcast %cst_9 : f32 to vector<128x1xf32>
    %16 = arith.addf %14, %15 : vector<128x1xf32>
    %17 = math.rsqrt %16 : vector<128x1xf32>
    %18 = vector.broadcast %17 : vector<128x1xf32> to vector<128x128xf32>
    %19 = arith.mulf %9, %18 : vector<128x128xf32>
    %20 = vector.broadcast %2 : vector<1x128xf32> to vector<128x128xf32>
    %21 = arith.mulf %19, %20 : vector<128x128xf32>
    %22 = vector.broadcast %3 : vector<1x128xf32> to vector<128x128xf32>
    %23 = arith.addf %21, %22 : vector<128x128xf32>
    %c0_10 = arith.constant 0 : index
    %c0_11 = arith.constant 0 : index
    %24 = vector.load %arg4[%c0_10, %c0_11] : memref<128x128xbf16, #tpu.memory_space<vmem>>, vector<128x128xbf16>
    %25 = arith.truncf %23 : vector<128x128xf32> to vector<128x128xbf16>
    %cst_12 = arith.constant dense<0.000000e+00> : vector<128x128xf32>
    %26 = tpu.matmul %24, %25, %cst_12 {dimension_numbers = #tpu.dot_dimension_numbers<[0], [0], [1], [1], [0, 1, 1, 1], [], []>} : vector<128x128xbf16>, vector<128x128xbf16>, vector<128x128xf32> -> vector<128x128xf32>
    %c0_13 = arith.constant 0 : index
    %c0_14 = arith.constant 0 : index
    %27 = vector.load %arg5[%c0_13, %c0_14] : memref<128x1xf32, #tpu.memory_space<vmem>>, vector<128x1xf32>
    %28 = vector.broadcast %27 : vector<128x1xf32> to vector<128x128xf32>
    %29 = arith.addf %26, %28 : vector<128x128xf32>
    %cst_15 = arith.constant 5.000000e-01 : f32
    %30 = vector.broadcast %cst_15 : f32 to vector<128x128xf32>
    %31 = arith.mulf %30, %29 : vector<128x128xf32>
    %cst_16 = arith.constant 0.707106769 : f32
    %32 = vector.broadcast %cst_16 : f32 to vector<128x128xf32>
    %33 = arith.mulf %29, %32 : vector<128x128xf32>
    %34 = math.erf %33 : vector<128x128xf32>
    %cst_17 = arith.constant 1.000000e+00 : f32
    %35 = vector.broadcast %cst_17 : f32 to vector<128x128xf32>
    %36 = arith.addf %35, %34 : vector<128x128xf32>
    %37 = arith.mulf %31, %36 : vector<128x128xf32>
    %38 = arith.truncf %37 : vector<128x128xf32> to vector<128x128xbf16>
    %c0_18 = arith.constant 0 : index
    %c0_19 = arith.constant 0 : index
    %39 = vector.load %arg6[%c0_18, %c0_19] : memref<128x128xbf16, #tpu.memory_space<vmem>>, vector<128x128xbf16>
    %cst_20 = arith.constant dense<0.000000e+00> : vector<128x128xf32>
    %40 = tpu.matmul %39, %38, %cst_20 {dimension_numbers = #tpu.dot_dimension_numbers<[0], [0], [1], [1], [0, 1, 1, 1], [], []>} : vector<128x128xbf16>, vector<128x128xbf16>, vector<128x128xf32> -> vector<128x128xf32>
    %41 = arith.addf %1, %40 : vector<128x128xf32>
    %c0_21 = arith.constant 0 : index
    %c0_22 = arith.constant 0 : index
    %42 = vector.load %arg7[%c0_21, %c0_22] : memref<128x1xf32, #tpu.memory_space<vmem>>, vector<128x1xf32>
    %43 = vector.broadcast %42 : vector<128x1xf32> to vector<128x128xf32>
    %44 = arith.addf %41, %43 : vector<128x128xf32>
    %c0_23 = arith.constant 0 : index
    %c0_24 = arith.constant 0 : index
    %45 = vector.load %arg8[%c0_23, %c0_24] : memref<1x128xf32, #tpu.memory_space<vmem>>, vector<1x128xf32>
    %c0_25 = arith.constant 0 : index
    %c0_26 = arith.constant 0 : index
    %46 = vector.load %arg9[%c0_25, %c0_26] : memref<1x128xf32, #tpu.memory_space<vmem>>, vector<1x128xf32>
    %cst_27 = arith.constant dense<0.000000e+00> : vector<128xf32>
    %47 = vector.multi_reduction <add>, %44, %cst_27 [1] : vector<128x128xf32> to vector<128xf32>
    %48 = vector.shape_cast %47 : vector<128xf32> to vector<128x1xf32>
    %cst_28 = arith.constant 1.280000e+02 : f32
    %49 = vector.broadcast %cst_28 : f32 to vector<128x1xf32>
    %50 = arith.divf %48, %49 : vector<128x1xf32>
    %51 = vector.broadcast %50 : vector<128x1xf32> to vector<128x128xf32>
    %52 = arith.subf %44, %51 : vector<128x128xf32>
    %53 = arith.mulf %52, %52 : vector<128x128xf32>
    %cst_29 = arith.constant dense<0.000000e+00> : vector<128xf32>
    %54 = vector.multi_reduction <add>, %53, %cst_29 [1] : vector<128x128xf32> to vector<128xf32>
    %55 = vector.shape_cast %54 : vector<128xf32> to vector<128x1xf32>
    %cst_30 = arith.constant 1.280000e+02 : f32
    %56 = vector.broadcast %cst_30 : f32 to vector<128x1xf32>
    %57 = arith.divf %55, %56 : vector<128x1xf32>
    %cst_31 = arith.constant 9.99999974E-6 : f32
    %58 = vector.broadcast %cst_31 : f32 to vector<128x1xf32>
    %59 = arith.addf %57, %58 : vector<128x1xf32>
    %60 = math.rsqrt %59 : vector<128x1xf32>
    %61 = vector.broadcast %60 : vector<128x1xf32> to vector<128x128xf32>
    %62 = arith.mulf %52, %61 : vector<128x128xf32>
    %63 = vector.broadcast %45 : vector<1x128xf32> to vector<128x128xf32>
    %64 = arith.mulf %62, %63 : vector<128x128xf32>
    %65 = vector.broadcast %46 : vector<1x128xf32> to vector<128x128xf32>
    %66 = arith.addf %64, %65 : vector<128x128xf32>
    %67 = arith.truncf %66 : vector<128x128xf32> to vector<128x128xbf16>
    %c0_32 = arith.constant 0 : index
    %c0_33 = arith.constant 0 : index
    %68 = vector.load %arg10[%c0_32, %c0_33] : memref<128x256xbf16, #tpu.memory_space<vmem>>, vector<128x256xbf16>
    %cst_34 = arith.constant dense<0.000000e+00> : vector<128x256xf32>
    %69 = tpu.matmul %67, %68, %cst_34 {dimension_numbers = #tpu.dot_dimension_numbers<[1], [0], [0], [1], [0, 0, 1, 1], [], []>} : vector<128x128xbf16>, vector<128x256xbf16>, vector<128x256xf32> -> vector<128x256xf32>
    %c0_35 = arith.constant 0 : index
    %c0_36 = arith.constant 0 : index
    %70 = vector.load %arg11[%c0_35, %c0_36] : memref<1x256xf32, #tpu.memory_space<vmem>>, vector<1x256xf32>
    %71 = vector.broadcast %70 : vector<1x256xf32> to vector<128x256xf32>
    %72 = arith.addf %69, %71 : vector<128x256xf32>
    %cst_37 = arith.constant 5.000000e-01 : f32
    %73 = vector.broadcast %cst_37 : f32 to vector<128x256xf32>
    %74 = arith.mulf %73, %72 : vector<128x256xf32>
    %cst_38 = arith.constant 0.707106769 : f32
    %75 = vector.broadcast %cst_38 : f32 to vector<128x256xf32>
    %76 = arith.mulf %72, %75 : vector<128x256xf32>
    %77 = math.erf %76 : vector<128x256xf32>
    %cst_39 = arith.constant 1.000000e+00 : f32
    %78 = vector.broadcast %cst_39 : f32 to vector<128x256xf32>
    %79 = arith.addf %78, %77 : vector<128x256xf32>
    %80 = arith.mulf %74, %79 : vector<128x256xf32>
    %81 = arith.truncf %80 : vector<128x256xf32> to vector<128x256xbf16>
    %c0_40 = arith.constant 0 : index
    %c0_41 = arith.constant 0 : index
    %82 = vector.load %arg12[%c0_40, %c0_41] : memref<256x128xbf16, #tpu.memory_space<vmem>>, vector<256x128xbf16>
    %cst_42 = arith.constant dense<0.000000e+00> : vector<128x128xf32>
    %83 = tpu.matmul %81, %82, %cst_42 {dimension_numbers = #tpu.dot_dimension_numbers<[1], [0], [0], [1], [0, 0, 1, 1], [], []>} : vector<128x256xbf16>, vector<256x128xbf16>, vector<128x128xf32> -> vector<128x128xf32>
    %c0_43 = arith.constant 0 : index
    %c0_44 = arith.constant 0 : index
    %84 = vector.load %arg13[%c0_43, %c0_44] : memref<1x128xf32, #tpu.memory_space<vmem>>, vector<1x128xf32>
    %85 = vector.broadcast %84 : vector<1x128xf32> to vector<128x128xf32>
    %86 = arith.addf %83, %85 : vector<128x128xf32>
    %87 = arith.addf %44, %86 : vector<128x128xf32>
    %c0_45 = arith.constant 0 : index
    %c0_46 = arith.constant 0 : index
    %c0_47 = arith.constant 0 : index
    %88 = vector.load %arg14[%c0_45, %c0_46, %c0_47] : memref<1x128x128xf32, #tpu.memory_space<vmem>>, vector<1x128x128xf32>
    %89 = vector.shape_cast %88 : vector<1x128x128xf32> to vector<128x128xf32>
    %90 = vector.shape_cast %87 : vector<128x128xf32> to vector<1x128x128xf32>
    tpu.vector_store %arg14[%c0_45, %c0_46, %c0_47], %90 {strides = array<i32>} : memref<1x128x128xf32, #tpu.memory_space<vmem>>, vector<1x128x128xf32>,
    return
  }
  func.func @transform_0(%arg0: i32) -> (i32, i32, i32) {
    %c0_i32 = arith.constant 0 : i32
    %c0_i32_0 = arith.constant 0 : i32
    %c0_i32_1 = arith.constant 0 : i32
    return %arg0, %c0_i32, %c0_i32_0 : i32, i32, i32
  }
  func.func @transform_1(%arg0: i32) -> (i32, i32) {
    %c0_i32 = arith.constant 0 : i32
    %c0_i32_0 = arith.constant 0 : i32
    %c0_i32_1 = arith.constant 0 : i32
    return %c0_i32, %c0_i32_0 : i32, i32
  }
  func.func @transform_2(%arg0: i32) -> (i32, i32) {
    %c0_i32 = arith.constant 0 : i32
    %c0_i32_0 = arith.constant 0 : i32
    %c0_i32_1 = arith.constant 0 : i32
    return %c0_i32, %c0_i32_0 : i32, i32
  }
  func.func @transform_3(%arg0: i32) -> (i32, i32) {
    %c0_i32 = arith.constant 0 : i32
    %c0_i32_0 = arith.constant 0 : i32
    %c0_i32_1 = arith.constant 0 : i32
    return %c0_i32, %c0_i32_0 : i32, i32
  }
  func.func @transform_4(%arg0: i32) -> (i32, i32) {
    %c0_i32 = arith.constant 0 : i32
    %c0_i32_0 = arith.constant 0 : i32
    %c0_i32_1 = arith.constant 0 : i32
    return %c0_i32, %c0_i32_0 : i32, i32
  }
  func.func @transform_5(%arg0: i32) -> (i32, i32) {
    %c0_i32 = arith.constant 0 : i32
    %c0_i32_0 = arith.constant 0 : i32
    %c0_i32_1 = arith.constant 0 : i32
    return %c0_i32, %c0_i32_0 : i32, i32
  }
  func.func @transform_6(%arg0: i32) -> (i32, i32) {
    %c0_i32 = arith.constant 0 : i32
    %c0_i32_0 = arith.constant 0 : i32
    %c0_i32_1 = arith.constant 0 : i32
    return %c0_i32, %c0_i32_0 : i32, i32
  }
  func.func @transform_7(%arg0: i32) -> (i32, i32) {
    %c0_i32 = arith.constant 0 : i32
    %c0_i32_0 = arith.constant 0 : i32
    %c0_i32_1 = arith.constant 0 : i32
    return %c0_i32, %c0_i32_0 : i32, i32
  }
  func.func @transform_8(%arg0: i32) -> (i32, i32) {
    %c0_i32 = arith.constant 0 : i32
    %c0_i32_0 = arith.constant 0 : i32
    %c0_i32_1 = arith.constant 0 : i32
    return %c0_i32, %c0_i32_0 : i32, i32
  }
  func.func @transform_9(%arg0: i32) -> (i32, i32) {
    %c0_i32 = arith.constant 0 : i32
    %c0_i32_0 = arith.constant 0 : i32
    %c0_i32_1 = arith.constant 0 : i32
    return %c0_i32, %c0_i32_0 : i32, i32
  }
  func.func @transform_10(%arg0: i32) -> (i32, i32) {
    %c0_i32 = arith.constant 0 : i32
    %c0_i32_0 = arith.constant 0 : i32
    %c0_i32_1 = arith.constant 0 : i32
    return %c0_i32, %c0_i32_0 : i32, i32
  }
  func.func @transform_11(%arg0: i32) -> (i32, i32) {
    %c0_i32 = arith.constant 0 : i32
    %c0_i32_0 = arith.constant 0 : i32
    %c0_i32_1 = arith.constant 0 : i32
    return %c0_i32, %c0_i32_0 : i32, i32
  }
  func.func @transform_12(%arg0: i32) -> (i32, i32) {
    %c0_i32 = arith.constant 0 : i32
    %c0_i32_0 = arith.constant 0 : i32
    %c0_i32_1 = arith.constant 0 : i32
    return %c0_i32, %c0_i32_0 : i32, i32
  }
  func.func @transform_13(%arg0: i32) -> (i32, i32, i32) {
    %c0_i32 = arith.constant 0 : i32
    %c0_i32_0 = arith.constant 0 : i32
    %c0_i32_1 = arith.constant 0 : i32
    return %arg0, %c0_i32, %c0_i32_0 : i32, i32, i32
  }
}

</mosaic_0001>

<bundles_post_ra>
// kernel: tpu_custom_call.1
= control target key start
LH: loop header
LB: loop body
LE: loop exit
PB: predicated region body
PF: predicated region fallthrough
CT: control target
= control target key end

     0   :  { %s4165_s0 = inlined_call_operand.hbm [shape: f32[4,128,128], index: 0, kind: input, shape index: {}]   ;;  %s4166_s1 = inlined_call_operand.vmem [shape: f32[1,128], index: 1, kind: input, shape index: {}]   ;;  %s4167_s2 = inlined_call_operand.vmem [shape: f32[1,128], index: 2, kind: input, shape index: {}]   ;;  %s4168_s3 = inlined_call_operand.hbm [shape: bf16[128,128], index: 3, kind: input, shape index: {}]   ;;  %s4169_s4 = inlined_call_operand.vmem [shape: f32[128,1], index: 4, kind: input, shape index: {}]   ;;  %s4170_s5 = inlined_call_operand.hbm [shape: bf16[128,128], index: 5, kind: input, shape index: {}]   ;;  %s4171_s6 = inlined_call_operand.vmem [shape: f32[128,1], index: 6, kind: input, shape index: {}]   ;;  %s4172_s7 = inlined_call_operand.vmem [shape: f32[1,128], index: 7, kind: input, shape index: {}]   ;;  %s4173_s8 = inlined_call_operand.vmem [shape: f32[1,128], index: 8, kind: input, shape index: {}]   ;;  %s4174_s9 = inlined_call_operand.vmem [shape: bf16[128,256], index: 9, kind: input, shape index: {}]   ;;  %s4175_s10 = inlined_call_operand.vmem [shape: f32[1,256], index: 10, kind: input, shape index: {}]   ;;  %s4176_s11 = inlined_call_operand.vmem [shape: bf16[256,128], index: 11, kind: input, shape index: {}]   ;;  %s4177_s12 = inlined_call_operand.vmem [shape: f32[1,128], index: 12, kind: input, shape index: {}]   ;;  %s4178_s13 = inlined_call_operand.hbm [shape: f32[4,128,128], index: 13, kind: output, shape index: {}]  }
   0x1   :  { %4185 = sst [smem:[#allocation14_spill]] %s4175_s10 }
   0x2   :  { %4186 = sst [smem:[#allocation15_spill]] %s4177_s12 }
   0x3   :  { %4187 = sst [smem:[#allocation16_spill]] %s4178_s13 }
   0x4   :  { %18 = vsyncpa [#allocation3], 0 }
   0x5   :  { %20 = vsyncpa [#allocation3 + $0x1], 0 }
   0x6   :  { %21 = vsyncpa [#allocation6], 0 }
   0x7   :  { %22 = vsyncpa [#allocation4], 0 }
   0x8   :  { %24 = vsyncpa [#allocation4 + $0x1], 0  ;;  %s3179_s25 = smov 0   ;;  %s3181_s26 = smov 0  }
   0x9   :  { %s3183_s27 = smov 0   ;;  %s3185_s28 = smov 0  }
   0xa LB: > { %4188 = sst [smem:[#allocation12_spill]] %s3084_s25  ;;  %s3200_s29 = sadd.s32 4294967295, %s3096_s28   ;;  %s3096_s28 = sphi %s3185_s28, %s4210_s28   ;;  %s3092_s27 = sphi %s3183_s27, %s4209_s27   ;;  %s3088_s26 = sphi %s3181_s26, %s4208_s26   ;;  %s3084_s25 = sphi %s3179_s25, %s4207_s25  }
   0xb   : > { %s2399_s30 = sadd.s32 4294967294, %s3096_s28   ;;  %p50_p0 = scmp.ne.s32.totalorder %s3088_s26, %s3084_s25 }
   0xc   : > { %p4181_p1 = scmp.eq.s32.totalorder %s3200_s29, 0  ;;  %p332_p3 = scmp.eq.s32.totalorder %s2399_s30, 3 }
   0xd   : > { %p2400_p5 = scmp.ge.s32.totalorder %s3096_s28, 1  ;;  %p339_p7 = scmp.lt.s32.totalorder %s3096_s28, 5 }
   0xe   : > { %p3209_p4 = por %p4181_p1, %p50_p0  ;;  %p3214_p6 = por %p332_p3, %p50_p0 }
   0xf   : > { %p3219_p8 = pnand %p2400_p5, %p339_p7  ;;  %s3098_s17 = smov [#allocation5]  }
  0x10   : > { %s4189_s14 = scalar_select %p3209_p4, 1, 0 }
  0x11   : > { %s4190_s15 = scalar_select %p3214_p6, 1, 0 }
  0x12   : > { %s4192_s16 = scalar_select %p3219_p8, 1, 0 }
  0x13   : > { %4191 = sst [smem:[#allocation13_spill]] %s4190_s15  ;;  %s357_s18 = sshll.u32 %s3098_s17, 4  ;;  %s358_s18 = int_to_ptr.vmem [resolvable:$true] %s357_s18 }
  0x14   : > { %p2644_p9 = pneg %p3219_p8  ;;  %s3099_s20 = smov [#allocation7]  }
  0x15   : > { %s373_s21 = sshll.u32 %s3099_s20, 4  ;;  %s2940_s24 = scalar_lea.hbm %s4168_s3, 1024  ;;  %s3231_s21 = int_to_ptr.vmem [resolvable:$true] %s373_s21 }
  0x16   : > { %p3227_p10 = pnand %p2644_p9, %p4181_p1  ;;  %p2941_p11 = scmp.ne.s32.totalorder %s4168_s3, %s2940_s24 }
  0x17   : > { %p2947_p3 = scmp.lt.u32.totalorder %s2940_s24, %s4168_s3 }
  0x18   : > { %p2942_p12 = pneg %p3227_p10 }
  0x1a   : > { %p2943_p13 = pnand %p2942_p12, %p2941_p11 }
  0x1c   : > { %p2944_p0 = pneg %p2943_p13 }
  0x1e   : > { %p2949_p5 = pnand %p2947_p3, %p2944_p0 }
  0x20   : > { %2952 = shalt.err (!%p2949_p5)
}
  0x21   : > { %s2953_s20 = scalar_lea.vmem %s358_s18, 1024  ;;  %p2961_p2 = scmp.lt.s32.totalorder %s358_s18, %s358_s18 }
  0x22   : > { %p2954_p7 = scmp.ne.s32.totalorder %s358_s18, %s2953_s20  ;;  %p2962_p6 = scmp.lt.s32.totalorder %s2953_s20, %s2953_s20 }
  0x24   : > { %p2956_p9 = pnand %p2954_p7, %p2942_p12  ;;  %p2963_p4 = por %p2962_p6, %p2961_p2 }
  0x26   : > { %p2957_p1 = pneg %p2956_p9 }
  0x28   : > { %p2964_p8 = pnand %p2963_p4, %p2957_p1 }
  0x2a   : > { %2967 = shalt.err (!%p2964_p8)
}
  0x2b   : > { %s3100_s22 = smov 64   ;;  %s3101_s23 = smov 4  }
  0x2c   : > { %2647 = dma.hbm_to_vmem [thread:$0]  (!%p3227_p10), %s4168_s3, 1024, %s358_s18, [#allocation6], %s3100_s22, %s3100_s22, %s3101_s23  }
  0x2d   : > { %s2968_s17 = scalar_lea.hbm %s4170_s5, 1024 }
  0x2e   : > { %p2969_p11 = scmp.ne.s32.totalorder %s4170_s5, %s2968_s17  ;;  %p2975_p4 = scmp.lt.u32.totalorder %s2968_s17, %s4170_s5 }
  0x30   : > { %p2971_p1 = pnand %p2969_p11, %p2942_p12 }
  0x32   : > { %p2972_p2 = pneg %p2971_p1 }
  0x34   : > { %p2977_p6 = pnand %p2975_p4, %p2972_p2 }
  0x36   : > { %2980 = shalt.err (!%p2977_p6)
}
  0x37   : > { %s2981_s18 = scalar_lea.vmem %s3231_s21, 1024  ;;  %p2989_p3 = scmp.lt.s32.totalorder %s3231_s21, %s3231_s21 }
  0x38   : > { %p2982_p8 = scmp.ne.s32.totalorder %s3231_s21, %s2981_s18  ;;  %p2990_p5 = scmp.lt.s32.totalorder %s2981_s18, %s2981_s18 }
  0x3a   : > { %p2984_p13 = pnand %p2982_p8, %p2942_p12  ;;  %p2991_p7 = por %p2990_p5, %p2989_p3 }
  0x3c   : > { %p2985_p0 = pneg %p2984_p13 }
  0x3e   : > { %p2992_p9 = pnand %p2991_p7, %p2985_p0 }
  0x40   : > { %2995 = shalt.err (!%p2992_p9)
}
  0x41   : > { %2650 = dma.hbm_to_vmem [thread:$0]  (!%p3227_p10), %s4170_s5, 1024, %s3231_s21, [#allocation6], %s3100_s22, %s3100_s22, %s3101_s23  }
  0x42   : > { %s3281_s13 = sadd.s32 1, %s3096_s28   ;;  %s37_s19 = sadd.s32 1, %s3092_s27 }
  0x43   : > { %s34_s25 = ssub.s32 %s3096_s28, %s3281_s13  ;;  %p44_p12 = scmp.ne.s32.totalorder %s3092_s27, %s3088_s26 }
  0x44   : > { %p35_p11 = scmp.eq.s32.totalorder %s34_s25, 0  ;;  %p45_p1 = scmp.eq.s32.totalorder %s3096_s28, 0 }
  0x45   : > { %p4194_p2 = scmp.eq.s32.totalorder %s3200_s29, 3  ;;  %p2661_p6 = scmp.lt.s32.totalorder %s3096_s28, 4 }
  0x46   : > { %s3297_s24 = scalar_select %p35_p11, %s3092_s27, %s37_s19  }
  0x47   : > { %p3291_p4 = por %p4194_p2, %p44_p12  ;;  %p46_p8 = por %p45_p1, %p44_p12 }
  0x48   : > { %s408_s30 = sand.u32 1, %s3092_s27   ;;  %s2470_s21 = sshll.u32 %s3096_s28, 11 }
  0x49   : > { %s2404_s17 = sshll.u32 %s408_s30, 7  ;;  %s3304_s20 = scalar_lea.hbm %s4165_s0, %s2470_s21 }
  0x4a   : > { %s412_s18 = scalar_lea.vmem [#allocation2], %s2404_s17  ;;  %p3308_p10 = pnand %p2661_p6, %p46_p8 }
  0x4b   : > { %s419_s10 = sshll.u32 %s412_s18, 4  ;;  %s3312_s19 = scalar_lea.sflag [#allocation3], %s408_s30  ;;  %s3306_s10 = int_to_ptr.vmem [resolvable:$true] %s419_s10 }
  0x4c   : > { %s2996_s25 = scalar_lea.hbm %s3304_s20, 2048  ;;  %p2998_p0 = pneg %p3308_p10 }
  0x4d   : > { %p2997_p13 = scmp.ne.s32.totalorder %s3304_s20, %s2996_s25  ;;  %s3001_s22 = scalar_lea.hbm %s4165_s0, 8192 }
  0x4e   : > { %p3002_p7 = scmp.lt.u32.totalorder %s3304_s20, %s4165_s0  ;;  %p3003_p9 = scmp.lt.u32.totalorder %s3001_s22, %s2996_s25 }
  0x4f   : > { %p2999_p3 = pnand %p2998_p0, %p2997_p13  ;;  %p3005_p11 = scmp.lt.u32.totalorder %s2996_s25, %s3304_s20 }
  0x50   : > { %p3004_p12 = por %p3003_p9, %p3002_p7 }
  0x51   : > { %p3000_p5 = pneg %p2999_p3 }
  0x52   : > { %p3006_p1 = por %p3005_p11, %p3004_p12 }
  0x54   : > { %p3007_p2 = pnand %p3006_p1, %p3000_p5 }
  0x56   : > { %3010 = shalt.err (!%p3007_p2)
}
  0x57   : > { %s3011_s30 = scalar_lea.vmem %s3306_s10, 2048  ;;  %s3102_s17 = smov [#allocation2]  }
  0x58   : > { %p3012_p6 = scmp.ne.s32.totalorder %s3306_s10, %s3011_s30  ;;  %s3016_s21 = sshll.u32 %s3102_s17, 4  ;;  %s3017_s21 = int_to_ptr.vmem [resolvable:$false] %s3016_s21 }
  0x59   : > { %s3018_s23 = scalar_lea.vmem %s3017_s21, 4096  ;;  %p3019_p3 = scmp.lt.s32.totalorder %s3306_s10, %s3017_s21 }
  0x5a   : > { %p3014_p8 = pnand %p3012_p6, %p2998_p0  ;;  %p3020_p7 = scmp.lt.s32.totalorder %s3018_s23, %s3011_s30 }
  0x5c   : > { %p3015_p13 = pneg %p3014_p8  ;;  %p3021_p9 = por %p3020_p7, %p3019_p3 }
  0x5e   : > { %p3022_p12 = pnand %p3021_p9, %p3015_p13 }
  0x60   : > { %3025 = shalt.err (!%p3022_p12)
}
  0x61   : > { %s3103_s25 = smov 128   ;;  %s3104_s22 = smov 8  }
  0x62   : > { %2654 = dma.hbm_to_vmem [thread:$0]  (!%p3308_p10), %s3304_s20, 2048, %s3306_s10, %s3312_s19, %s3103_s25, %s3103_s25, %s3104_s22  }
  0x63   : > { %p4197_p0 = scmp.ne.s32.totalorder %s4192_s16, 0 }
  0x64   : > { %s3343_s18 = sand.u32 (!%p4197_p0), 1, %s3088_s26   ;;  %p4198_p5 = scmp.ne.s32.totalorder (!%p4197_p0), %s4189_s14, 0 }
  0x65   : > { %431 = sbr.rel (%p4197_p0) target bundleno = 1791 (0x6ff), region = 72  ;;  %s2408_s30 = sshll.u32 (!%p4197_p0), %s3343_s18, 7 }
  0x66   : > { %s434_s17 = scalar_lea.sflag (!%p4197_p0), [#allocation3], %s3343_s18  ;;  %s3349_s21 = scalar_lea.vmem (!%p4197_p0), [#allocation2], %s2408_s30 }
  0x6c   : > { %3071 = dma.done.wait (%p4198_p5), %s434_s17, 2048  }
  0x6d   : > { %3073 = vsyncadd (%p4198_p5), %s434_s17, 4294965248  ;;  %p4199_p10 = scmp.eq.s32.totalorder %s3200_s29, 0 }
  0x6f   : > { %3075 = dma.done.wait (%p4199_p10), [#allocation6], 2048   ;;  %p4200_p11 = pmov %p4199_p10 }
  0x70   : > { %v489_v0 = vld [vmem:[%s3349_s21] sm:$0xff]  ;;  %v491_v1 = vld [vmem:[%s3349_s21 + $0x10] sm:$0xff]  ;;  %v490_v2 = vld [vmem:[%s3349_s21 + $0x8] sm:$0xff]  ;;  %v3105_v16 = vmov 0   ;;  %s4201_s16 = sld [smem:[#allocation14_spill]]  ;;  %s4202_s12 = sld [smem:[#allocation15_spill]] }
  0x71   : > { %3077 = vsyncadd (%p4200_p11), [#allocation6], 4294965248  ;;  %507 = vadd.xlane.f32.xlu0 %v489_v0  ;;  %511 = vadd.xlane.f32.xlu1 %v491_v1  ;;  %v492_v3 = vld [vmem:[%s3349_s21 + $0x18] sm:$0xff]  ;;  %v493_v4 = vld [vmem:[%s3349_s21 + $0x20] sm:$0xff]  ;;  %s4068_s19 = scalar_lea.vmem [#allocation8], %s2408_s30  ;;  %s2471_s30 = sshll.u32 %s3200_s29, 11 }
  0x72   : > { %v494_v5 = vld [vmem:[%s3349_s21 + $0x28] sm:$0xff]  ;;  %v495_v6 = vld [vmem:[%s3349_s21 + $0x30] sm:$0xff]  ;;  %v496_v7 = vld [vmem:[%s3349_s21 + $0x38] sm:$0xff]  ;;  %2706 = vset.pattern.permute.xlu1 %v3105_v16  ;;  %s2307_s23 = sshll.u32 %s4068_s19, 4  ;;  %s4203_s17 = sld [smem:[#allocation16_spill]]  ;;  %s4119_s23 = int_to_ptr.vmem [resolvable:$true] %s2307_s23 }
  0x73   : > { %v3368_v8 = vld [vmem:[%s3349_s21 + $0x40] sm:$0xff]  ;;  %v3371_v9 = vld [vmem:[%s3349_s21 + $0x48] sm:$0xff]  ;;  %v3374_v10 = vld [vmem:[%s3349_s21 + $0x50] sm:$0xff]  ;;  %s2294_s29 = scalar_lea.sflag [#allocation4], %s3343_s18  ;;  %s3026_s14 = scalar_lea.vmem %s4119_s23, 2048 }
  0x74   : > { %v3377_v11 = vld [vmem:[%s3349_s21 + $0x58] sm:$0xff]  ;;  %v3382_v12 = vld [vmem:[%s3349_s21 + $0x60] sm:$0xff]  ;;  %v3385_v13 = vld [vmem:[%s3349_s21 + $0x68] sm:$0xff]  ;;  %p3027_p1 = scmp.ne.s32.totalorder %s4119_s23, %s3026_s14 }
  0x75   : > { %509 = vadd.xlane.f32.xlu0 %v490_v2  ;;  %513 = vadd.xlane.f32.xlu1 %v492_v3  ;;  %v3390_v14 = vld [vmem:[%s3349_s21 + $0x70] sm:$0xff]  ;;  %v3393_v15 = vld [vmem:[%s3349_s21 + $0x78] sm:$0xff] }
  0x76   : > { %p3028_p2 = pnand %p3027_p1, %p3291_p4 }
  0x78   : > { %p3029_p6 = pneg %p3028_p2 }
  0x79   : > { %515 = vadd.xlane.f32.xlu0 %v493_v4  ;;  %517 = vadd.xlane.f32.xlu1 %v494_v5 }
  0x7d   : > { %519 = vadd.xlane.f32.xlu0 %v495_v6  ;;  %521 = vadd.xlane.f32.xlu1 %v496_v7 }
  0x81   : > { %523 = vadd.xlane.f32.xlu0 %v3368_v8  ;;  %525 = vadd.xlane.f32.xlu1 %v3371_v9 }
  0x85   : > { %527 = vadd.xlane.f32.xlu0 %v3374_v10  ;;  %529 = vadd.xlane.f32.xlu1 %v3377_v11 }
  0x89   : > { %531 = vadd.xlane.f32.xlu0 %v3382_v12  ;;  %533 = vadd.xlane.f32.xlu1 %v3385_v13 }
  0x8d   : > { %535 = vadd.xlane.f32.xlu0 %v3390_v14  ;;  %537 = vadd.xlane.f32.xlu1 %v3393_v15 }
  0xfe   : > { %v508_v17 = vpop.xlane.xlu0 %507  ;;  %v512_v18 = vpop.xlane.xlu1 %511 }
  0xff   : > { %v540_v19 = vmul.f32 0.0078125, %v508_v17  ;;  %v542_v20 = vmul.f32 0.0078125, %v512_v18 }
 0x101   : > { %v3400_v21 = vsub.f32 %v489_v0, %v540_v19  ;;  %v3402_v22 = vsub.f32 %v491_v1, %v542_v20  ;;  %v754_v20 = vld [vmem:[%s4169_s4 + $0x10] sm:$0xff] }
 0x102   : > { %v510_v23 = vpop.xlane.xlu0 %509  ;;  %v514_v24 = vpop.xlane.xlu1 %513 }
 0x103   : > { %v541_v25 = vmul.f32 0.0078125, %v510_v23  ;;  %v572_v26 = vmul.f32 %v3400_v21, %v3400_v21  ;;  %v543_v27 = vmul.f32 0.0078125, %v514_v24  ;;  %v574_v28 = vmul.f32 %v3402_v22, %v3402_v22  ;;  %v755_v23 = vld [vmem:[%s4169_s4 + $0x18] sm:$0xff]  ;;  %v756_v24 = vld [vmem:[%s4169_s4 + $0x20] sm:$0xff] }
 0x105   : > { %588 = vadd.xlane.f32.xlu0 %v572_v26  ;;  %v3408_v29 = vsub.f32 %v490_v2, %v541_v25  ;;  %v3410_v30 = vsub.f32 %v492_v3, %v543_v27  ;;  %v757_v25 = vld [vmem:[%s4169_s4 + $0x28] sm:$0xff]  ;;  %v2708_v26 = vld [vmem:[#allocation5] sm:$0xff]   ;;  %v758_v27 = vld [vmem:[%s4169_s4 + $0x30] sm:$0xff] }
 0x106   : > { %v516_v31 = vpop.xlane.xlu0 %515  ;;  %v518_v32 = vpop.xlane.xlu1 %517 }
 0x107   : > { %v544_v33 = vmul.f32 0.0078125, %v516_v31  ;;  %v573_v34 = vmul.f32 %v3408_v29, %v3408_v29  ;;  %v545_v35 = vmul.f32 0.0078125, %v518_v32  ;;  %v575_v36 = vmul.f32 %v3410_v30, %v3410_v30  ;;  %v759_v31 = vld [vmem:[%s4169_s4 + $0x38] sm:$0xff]  ;;  %v2710_v32 = vld [vmem:[#allocation5 + $0x10] sm:$0xff]  }
 0x109   : > { %592 = vadd.xlane.f32.xlu0 %v574_v28  ;;  %590 = vadd.xlane.f32.xlu1 %v573_v34  ;;  %v3416_v37 = vsub.f32 %v493_v4, %v544_v33  ;;  %v3418_v38 = vsub.f32 %v494_v5, %v545_v35  ;;  %v2709_v28 = vld [vmem:[#allocation5 + $0x8] sm:$0xff]   ;;  %v760_v33 = vld [vmem:[%s4169_s4 + $0x40] sm:$0xff]  ;;  %v2711_v34 = vld [vmem:[#allocation5 + $0x18] sm:$0xff]  }
 0x10a   : > { %v520_v39 = vpop.xlane.xlu0 %519  ;;  %v522_v40 = vpop.xlane.xlu1 %521  ;;  %v761_v35 = vld [vmem:[%s4169_s4 + $0x48] sm:$0xff] }
 0x10b   : > { %v546_v41 = vmul.f32 0.0078125, %v520_v39  ;;  %v576_v42 = vmul.f32 %v3416_v37, %v3416_v37  ;;  %v547_v43 = vmul.f32 0.0078125, %v522_v40  ;;  %v577_v44 = vmul.f32 %v3418_v38, %v3418_v38  ;;  %v762_v39 = vld [vmem:[%s4169_s4 + $0x50] sm:$0xff]  ;;  %v2713_v40 = vld [vmem:[#allocation5 + $0x28] sm:$0xff]  }
 0x10d   : > { %594 = vadd.xlane.f32.xlu1 %v575_v36  ;;  %596 = vadd.xlane.f32.xlu0 %v576_v42  ;;  %v3424_v45 = vsub.f32 %v495_v6, %v546_v41  ;;  %v3426_v46 = vsub.f32 %v496_v7, %v547_v43  ;;  %v2712_v36 = vld [vmem:[#allocation5 + $0x20] sm:$0xff]   ;;  %v763_v41 = vld [vmem:[%s4169_s4 + $0x58] sm:$0xff]  ;;  %v2714_v42 = vld [vmem:[#allocation5 + $0x30] sm:$0xff]  }
 0x10e   : > { %v524_v47 = vpop.xlane.xlu0 %523  ;;  %v526_v48 = vpop.xlane.xlu1 %525  ;;  %v764_v43 = vld [vmem:[%s4169_s4 + $0x60] sm:$0xff] }
 0x10f   : > { %v548_v49 = vmul.f32 0.0078125, %v524_v47  ;;  %v578_v50 = vmul.f32 %v3424_v45, %v3424_v45  ;;  %v549_v51 = vmul.f32 0.0078125, %v526_v48  ;;  %v579_v52 = vmul.f32 %v3426_v46, %v3426_v46  ;;  %v765_v47 = vld [vmem:[%s4169_s4 + $0x68] sm:$0xff]  ;;  %v766_v48 = vld [vmem:[%s4169_s4 + $0x70] sm:$0xff] }
 0x111   : > { %598 = vadd.xlane.f32.xlu1 %v577_v44  ;;  %600 = vadd.xlane.f32.xlu0 %v578_v50  ;;  %v3433_v53 = vsub.f32 %v3368_v8, %v548_v49  ;;  %v3436_v54 = vsub.f32 %v3371_v9, %v549_v51  ;;  %v2715_v44 = vld [vmem:[#allocation5 + $0x38] sm:$0xff]   ;;  %v1290_v50 = vld [vmem:[%s4171_s6] sm:$0xff]  ;;  %v1291_v51 = vld [vmem:[%s4171_s6 + $0x8] sm:$0xff] }
 0x112   : > { %v528_v55 = vpop.xlane.xlu0 %527  ;;  %v530_v56 = vpop.xlane.xlu1 %529  ;;  %v767_v49 = vld [vmem:[%s4169_s4 + $0x78] sm:$0xff] }
 0x113   : > { %v550_v57 = vmul.f32 0.0078125, %v528_v55  ;;  %v580_v58 = vmul.f32 %v3433_v53, %v3433_v53  ;;  %v551_v59 = vmul.f32 0.0078125, %v530_v56  ;;  %v581_v60 = vmul.f32 %v3436_v54, %v3436_v54  ;;  %v1293_v55 = vld [vmem:[%s4171_s6 + $0x18] sm:$0xff]  ;;  %v1294_v56 = vld [vmem:[%s4171_s6 + $0x20] sm:$0xff] }
 0x115   : > { %602 = vadd.xlane.f32.xlu1 %v579_v52  ;;  %604 = vadd.xlane.f32.xlu0 %v580_v58  ;;  %v3443_v61 = vsub.f32 %v3374_v10, %v550_v57  ;;  %v3446_v62 = vsub.f32 %v3377_v11, %v551_v59  ;;  %v1292_v52 = vld [vmem:[%s4171_s6 + $0x10] sm:$0xff]  ;;  %v1295_v57 = vld [vmem:[%s4171_s6 + $0x28] sm:$0xff]  ;;  %v2716_v58 = vld [vmem:[#allocation7] sm:$0xff]  }
 0x116   : > { %v532_v63 = vpop.xlane.xlu0 %531  ;;  %v534_v0 = vpop.xlane.xlu1 %533  ;;  %v1296_v59 = vld [vmem:[%s4171_s6 + $0x30] sm:$0xff] }
 0x117   : > { %v552_v1 = vmul.f32 0.0078125, %v532_v63  ;;  %v582_v2 = vmul.f32 %v3443_v61, %v3443_v61  ;;  %v553_v3 = vmul.f32 0.0078125, %v534_v0  ;;  %v583_v4 = vmul.f32 %v3446_v62, %v3446_v62  ;;  %v1297_v63 = vld [vmem:[%s4171_s6 + $0x38] sm:$0xff] }
 0x119   : > { %606 = vadd.xlane.f32.xlu1 %v581_v60  ;;  %608 = vadd.xlane.f32.xlu0 %v582_v2  ;;  %v3453_v5 = vsub.f32 %v3382_v12, %v552_v1  ;;  %v3456_v6 = vsub.f32 %v3385_v13, %v553_v3  ;;  %v2717_v60 = vld [vmem:[#allocation7 + $0x8] sm:$0xff]   ;;  %v2718_v3 = vld [vmem:[#allocation7 + $0x10] sm:$0xff]  }
 0x11a   : > { %v536_v7 = vpop.xlane.xlu0 %535  ;;  %v538_v8 = vpop.xlane.xlu1 %537 }
 0x11b   : > { %v554_v9 = vmul.f32 0.0078125, %v536_v7  ;;  %v584_v10 = vmul.f32 %v3453_v5, %v3453_v5  ;;  %v555_v11 = vmul.f32 0.0078125, %v538_v8  ;;  %v585_v12 = vmul.f32 %v3456_v6, %v3456_v6 }
 0x11d   : > { %v3461_v17 = vsub.f32 %v3390_v14, %v554_v9  ;;  %610 = vadd.xlane.f32.xlu1 %v583_v4  ;;  %612 = vadd.xlane.f32.xlu0 %v584_v10  ;;  %v3464_v18 = vsub.f32 %v3393_v15, %v555_v11  ;;  %v752_v14 = vld [vmem:[%s4169_s4] sm:$0xff]  ;;  %v753_v15 = vld [vmem:[%s4169_s4 + $0x8] sm:$0xff] }
 0x11e   : > { %v1298_v4 = vld [vmem:[%s4171_s6 + $0x40] sm:$0xff] }
 0x11f   : > { %v586_v13 = vmul.f32 %v3461_v17, %v3461_v17  ;;  %v587_v19 = vmul.f32 %v3464_v18, %v3464_v18 }
 0x121   : > { %614 = vadd.xlane.f32.xlu1 %v585_v12  ;;  %616 = vadd.xlane.f32.xlu0 %v586_v13  ;;  %v2719_v13 = vld [vmem:[#allocation7 + $0x18] sm:$0xff]  }
 0x125   : > { %618 = vadd.xlane.f32.xlu1 %v587_v19  ;;  %v1299_v19 = vld [vmem:[%s4171_s6 + $0x48] sm:$0xff] }
 0x136   : > { %770 = vperm.xlu1 %2706, %v752_v14  }
 0x13a   : > { %775 = vperm.xlu1 %2706, %v753_v15  }
 0x13e   : > { %780 = vperm.xlu1 %2706, %v754_v20  }
 0x142   : > { %785 = vperm.xlu1 %2706, %v755_v23  }
 0x146   : > { %790 = vperm.xlu1 %2706, %v756_v24  }
 0x14a   : > { %795 = vperm.xlu1 %2706, %v757_v25  }
 0x14e   : > { %896 = vxpose.xlu0.c.b16.start [1/8] %v2708_v26, 128  ;;  %800 = vperm.xlu1 %2706, %v758_v27   ;;  %v2720_v26 = vld [vmem:[#allocation7 + $0x20] sm:$0xff]   ;;  %v1300_v27 = vld [vmem:[%s4171_s6 + $0x50] sm:$0xff] }
 0x152   : > { %897 = vxpose.xlu0.c.b16.cont [2/8] %v2709_v28, 128  ;;  %805 = vperm.xlu1 %2706, %v759_v31  }
 0x156   : > { %898 = vxpose.xlu0.c.b16.cont [3/8] %v2710_v32, 128  ;;  %810 = vperm.xlu1 %2706, %v760_v33  }
 0x15a   : > { %899 = vxpose.xlu0.c.b16.cont [4/8] %v2711_v34, 128  ;;  %815 = vperm.xlu1 %2706, %v761_v35  }
 0x15e   : > { %900 = vxpose.xlu0.c.b16.cont [5/8] %v2712_v36, 128  ;;  %820 = vperm.xlu1 %2706, %v762_v39   ;;  %v2721_v39 = vld [vmem:[#allocation7 + $0x28] sm:$0xff]  }
 0x162   : > { %901 = vxpose.xlu0.c.b16.cont [6/8] %v2713_v40, 128  ;;  %825 = vperm.xlu1 %2706, %v763_v41   ;;  %v1301_v40 = vld [vmem:[%s4171_s6 + $0x58] sm:$0xff] }
 0x166   : > { %902 = vxpose.xlu0.c.b16.cont [7/8] %v2714_v42, 128  ;;  %830 = vperm.xlu1 %2706, %v764_v43  }
 0x16a   : > { %903 = vxpose.xlu0.c.b16.end [8/8] %v2715_v44, 128  ;;  %835 = vperm.xlu1 %2706, %v765_v47  }
 0x16e   : > { %840 = vperm.xlu1 %2706, %v766_v48   ;;  %v3561_v48 = vld [vmem:[%s4166_s1] ss:$0 sm:$0xff] }
 0x173   : > { %2707 = vset.pattern.permute.xlu0 %v3105_v16 }
 0x174   : > { %845 = vperm.xlu0 %2707, %v767_v49  }
 0x178   : > { %1308 = vperm.xlu0 %2707, %v1290_v50  }
 0x17c   : > { %1313 = vperm.xlu0 %2707, %v1291_v51  }
 0x180   : > { %1318 = vperm.xlu0 %2707, %v1292_v52   ;;  %v2722_v52 = vld [vmem:[#allocation7 + $0x30] sm:$0xff]  }
 0x184   : > { %1323 = vperm.xlu0 %2707, %v1293_v55   ;;  %v1302_v55 = vld [vmem:[%s4171_s6 + $0x60] sm:$0xff] }
 0x188   : > { %1328 = vperm.xlu0 %2707, %v1294_v56  }
 0x18c   : > { %1333 = vperm.xlu0 %2707, %v1295_v57  }
 0x190   : > { %1338 = vperm.xlu0 %2707, %v1296_v59  }
 0x191   : > { %1161 = vxpose.xlu1.c.b16.start [1/8] %v2716_v58, 128 }
 0x192   : > { %v589_v0 = vpop.xlane.xlu0 %588 }
 0x193   : > { %v620_v1 = vmul.f32 0.0078125, %v589_v0  ;;  %v3571_v0 = vld [vmem:[%s4167_s2] ss:$0 sm:$0xff] }
 0x194   : > { %1343 = vperm.xlu0 %2707, %v1297_v63  }
 0x195   : > { %v636_v2 = vadd.f32 1e-05, %v620_v1  ;;  %1162 = vxpose.xlu1.c.b16.cont [2/8] %v2717_v60, 128 }
 0x196   : > { %v591_v7 = vpop.xlane.xlu1 %590  ;;  %v593_v8 = vpop.xlane.xlu0 %592 }
 0x197   : > { %2764 = vrsqrt.f32 %v636_v2  ;;  %v621_v9 = vmul.f32 0.0078125, %v591_v7  ;;  %v622_v10 = vmul.f32 0.0078125, %v593_v8  ;;  %v1303_v8 = vld [vmem:[%s4171_s6 + $0x68] sm:$0xff] }
 0x198   : > { %1348 = vperm.xlu0 %2707, %v1298_v4  }
 0x199   : > { %v637_v11 = vadd.f32 1e-05, %v621_v9  ;;  %v638_v12 = vadd.f32 1e-05, %v622_v10  ;;  %1163 = vxpose.xlu1.c.b16.cont [3/8] %v2718_v3, 128 }
 0x19a   : > { %v595_v14 = vpop.xlane.xlu1 %594  ;;  %v597_v15 = vpop.xlane.xlu0 %596 }
 0x19b   : > { %2766 = vrsqrt.f32 %v637_v11  ;;  %v623_v20 = vmul.f32 0.0078125, %v595_v14  ;;  %v624_v23 = vmul.f32 0.0078125, %v597_v15 }
 0x19c   : > { %2768 = vrsqrt.f32 %v638_v12  ;;  %1353 = vperm.xlu0 %2707, %v1299_v19  }
 0x19d   : > { %v639_v24 = vadd.f32 1e-05, %v623_v20  ;;  %v640_v25 = vadd.f32 1e-05, %v624_v23  ;;  %1164 = vxpose.xlu1.c.b16.cont [4/8] %v2719_v13, 128 }
 0x19e   : > { %v599_v28 = vpop.xlane.xlu1 %598  ;;  %v601_v31 = vpop.xlane.xlu0 %600 }
 0x19f   : > { %2770 = vrsqrt.f32 %v639_v24  ;;  %v625_v32 = vmul.f32 0.0078125, %v599_v28  ;;  %v626_v33 = vmul.f32 0.0078125, %v601_v31 }
 0x1a0   : > { %2772 = vrsqrt.f32 %v640_v25  ;;  %1358 = vperm.xlu0 %2707, %v1300_v27  }
 0x1a1   : > { %v2765_v34 = vpop.eup %2764  ;;  %v641_v35 = vadd.f32 1e-05, %v625_v32  ;;  %v642_v36 = vadd.f32 1e-05, %v626_v33  ;;  %1165 = vxpose.xlu1.c.b16.cont [5/8] %v2720_v26, 128 }
 0x1a2   : > { %v603_v41 = vpop.xlane.xlu1 %602  ;;  %v605_v42 = vpop.xlane.xlu0 %604  ;;  %v668_v43 = vmul.f32 %v2765_v34, %v3400_v21 }
 0x1a3   : > { %2774 = vrsqrt.f32 %v641_v35  ;;  %v627_v44 = vmul.f32 0.0078125, %v603_v41  ;;  %v628_v47 = vmul.f32 0.0078125, %v605_v42 }
 0x1a4   : > { %2776 = vrsqrt.f32 %v642_v36  ;;  %1363 = vperm.xlu0 %2707, %v1301_v40   ;;  %v690_v59 = vmul.f32 %v3561_v48, %v668_v43  ;;  %v1304_v36 = vld [vmem:[%s4171_s6 + $0x70] sm:$0xff] }
 0x1a5   : > { %v2767_v49 = vpop.eup %2766  ;;  %v643_v50 = vadd.f32 1e-05, %v627_v44  ;;  %v644_v51 = vadd.f32 1e-05, %v628_v47  ;;  %1166 = vxpose.xlu1.c.b16.cont [6/8] %v2721_v39, 128 }
 0x1a6   : > { %v2769_v21 = vpop.eup %2768  ;;  %v607_v56 = vpop.xlane.xlu1 %606  ;;  %v669_v58 = vmul.f32 %v2767_v49, %v3408_v29  ;;  %v2723_v29 = vld [vmem:[#allocation7 + $0x38] sm:$0xff]   ;;  %v712_v12 = vadd.f32 %v3571_v0, %v690_v59 }
 0x1a7   : > { %v609_v57 = vpop.xlane.xlu0 %608  ;;  %2778 = vrsqrt.f32 %v643_v50  ;;  %v629_v60 = vmul.f32 0.0078125, %v607_v56  ;;  %v670_v1 = vmul.f32 %v2769_v21, %v3402_v22 }
 0x1a8   : > { %v630_v63 = vmul.f32 0.0078125, %v609_v57  ;;  %2780 = vrsqrt.f32 %v644_v51  ;;  %v691_v2 = vmul.f32 %v3561_v48, %v669_v58  ;;  %1368 = vperm.xlu0 %2707, %v1302_v55  }
 0x1a9   : > { %v2771_v3 = vpop.eup %2770  ;;  %v645_v4 = vadd.f32 1e-05, %v629_v60  ;;  %1167 = vxpose.xlu1.c.b16.cont [7/8] %v2722_v52, 128  ;;  %v692_v19 = vmul.f32 %v3561_v48, %v670_v1 }
 0x1aa   : > { %v646_v7 = vadd.f32 1e-05, %v630_v63  ;;  %v2773_v9 = vpop.eup %2772  ;;  %v611_v10 = vpop.xlane.xlu1 %610  ;;  %v713_v22 = vadd.f32 %v3571_v0, %v691_v2  ;;  %v671_v13 = vmul.f32 %v2771_v3, %v3410_v30  ;;  %v1305_v30 = vld [vmem:[%s4171_s6 + $0x78] sm:$0xff] }
 0x1ab   : > { %v613_v11 = vpop.xlane.xlu0 %612  ;;  %2782 = vrsqrt.f32 %v645_v4  ;;  %v631_v14 = vmul.f32 0.0078125, %v611_v10  ;;  %v672_v24 = vmul.f32 %v2773_v9, %v3416_v37  ;;  %v714_v33 = vadd.f32 %v3571_v0, %v692_v19 }
 0x1ac   : > { %v632_v15 = vmul.f32 0.0078125, %v613_v11  ;;  %2784 = vrsqrt.f32 %v646_v7  ;;  %v744_v20 = vpack.c.bf16 %v713_v22, %v712_v12  ;;  %v693_v23 = vmul.f32 %v3561_v48, %v671_v13  ;;  %1373 = vperm.xlu0 %2707, %v1303_v8  }
 0x1ad   : > { %v2775_v25 = vpop.eup %2774  ;;  %v647_v26 = vadd.f32 1e-05, %v631_v14  ;;  %1168 = vxpose.xlu1.c.b16.end [8/8] %v2723_v29, 128  ;;  %v694_v37 = vmul.f32 %v3561_v48, %v672_v24 }
 0x1ae   : > { %v648_v27 = vadd.f32 1e-05, %v632_v15  ;;  %v2777_v28 = vpop.eup %2776  ;;  %v615_v31 = vpop.xlane.xlu1 %614  ;;  %2568 = vmatprep.subr.bf16.mxu0 %v744_v20  ;;  %v715_v34 = vadd.f32 %v3571_v0, %v693_v23  ;;  %v673_v35 = vmul.f32 %v2775_v25, %v3418_v38 }
 0x1af   : > { %v617_v32 = vpop.xlane.xlu0 %616  ;;  %2786 = vrsqrt.f32 %v647_v26  ;;  %v633_v39 = vmul.f32 0.0078125, %v615_v31  ;;  %2569 = vmatpush3.bf16.msra.mxu0 %v744_v20  ;;  %v674_v41 = vmul.f32 %v2777_v28, %v3424_v45  ;;  %v716_v51 = vadd.f32 %v3571_v0, %v694_v37 }
 0x1b0   : > { %v634_v40 = vmul.f32 0.0078125, %v617_v32  ;;  %2788 = vrsqrt.f32 %v648_v27  ;;  %v745_v42 = vpack.c.bf16 %v715_v34, %v714_v33  ;;  %v695_v43 = vmul.f32 %v3561_v48, %v673_v35  ;;  %1383 = vperm.xlu0 %2707, %v1305_v30  }
 0x1b1   : > { %v2779_v44 = vpop.eup %2778  ;;  %v649_v47 = vadd.f32 1e-05, %v633_v39  ;;  %1378 = vperm.xlu1 %2706, %v1304_v36   ;;  %v696_v45 = vmul.f32 %v3561_v48, %v674_v41 }
 0x1b2   : > { %v650_v38 = vadd.f32 1e-05, %v634_v40  ;;  %v2781_v49 = vpop.eup %2780  ;;  %v619_v50 = vpop.xlane.xlu1 %618  ;;  %2570 = vmatprep.subr.bf16.mxu0 %v745_v42  ;;  %v717_v52 = vadd.f32 %v3571_v0, %v695_v43  ;;  %v675_v55 = vmul.f32 %v2779_v44, %v3426_v46 }
 0x1b3   : > { %2790 = vrsqrt.f32 %v649_v47  ;;  %v635_v21 = vmul.f32 0.0078125, %v619_v50  ;;  %2571 = vmatpush3.bf16.msra.mxu0 %v745_v42  ;;  %v676_v56 = vmul.f32 %v2781_v49, %v3433_v53  ;;  %v718_v2 = vadd.f32 %v3571_v0, %v696_v45 }
 0x1b4   : > { %2792 = vrsqrt.f32 %v650_v38  ;;  %v746_v57 = vpack.c.bf16 %v717_v52, %v716_v51  ;;  %v697_v58 = vmul.f32 %v3561_v48, %v675_v55  ;;  %v904_v59 = vpop.trf.xlu0 }
 0x1b5   : > { %v2783_v60 = vpop.eup %2782  ;;  %v651_v63 = vadd.f32 1e-05, %v635_v21  ;;  %2584 = vmatprep.mubr.bf16.mxu0 %v904_v59  ;;  %v698_v4 = vmul.f32 %v3561_v48, %v676_v56 }
 0x1b6   : > { %v2785_v1 = vpop.eup %2784  ;;  %2572 = vmatprep.subr.bf16.mxu0 %v746_v57  ;;  %v719_v46 = vadd.f32 %v3571_v0, %v697_v58  ;;  %v677_v3 = vmul.f32 %v2783_v60, %v3436_v54  ;;  %v3606_v7 = vpop.permute.xlu1 %770 }
 0x1b7   : > { %2794 = vrsqrt.f32 %v651_v63  ;;  %2573 = vmatpush3.bf16.msra.mxu0 %v746_v57  ;;  %v678_v53 = vmul.f32 %v2785_v1, %v3443_v61  ;;  %v720_v11 = vadd.f32 %v3571_v0, %v698_v4 }
 0x1b8   : > { %v747_v29 = vpack.c.bf16 %v719_v46, %v718_v2  ;;  %v699_v8 = vmul.f32 %v3561_v48, %v677_v3  ;;  %v905_v26 = vpop.trf.xlu0 }
 0x1b9   : > { %v2787_v9 = vpop.eup %2786  ;;  %v700_v22 = vmul.f32 %v3561_v48, %v678_v53 }
 0x1ba   : > { %v2789_v10 = vpop.eup %2788  ;;  %2574 = vmatprep.subr.bf16.mxu0 %v747_v29  ;;  %v721_v12 = vadd.f32 %v3571_v0, %v699_v8  ;;  %v679_v54 = vmul.f32 %v2787_v9, %v3446_v62  ;;  %v3614_v13 = vpop.permute.xlu1 %775 }
 0x1bb   : > { %2575 = vmatpush3.bf16.msra.mxu0 %v747_v29  ;;  %v680_v19 = vmul.f32 %v2789_v10, %v3453_v5  ;;  %v722_v23 = vadd.f32 %v3571_v0, %v700_v22 }
 0x1bc   : > { %v748_v61 = vpack.c.bf16 %v721_v12, %v720_v11  ;;  %v701_v14 = vmul.f32 %v3561_v48, %v679_v54  ;;  %v906_v39 = vpop.trf.xlu0 }
 0x1bd   : > { %v2791_v15 = vpop.eup %2790  ;;  %v702_v62 = vmul.f32 %v3561_v48, %v680_v19 }
 0x1be   : > { %v2793_v20 = vpop.eup %2792  ;;  %2576 = vmatprep.subr.bf16.mxu0 %v748_v61  ;;  %v723_v24 = vadd.f32 %v3571_v0, %v701_v14  ;;  %v681_v25 = vmul.f32 %v2791_v15, %v3456_v6  ;;  %v781_v27 = vpop.permute.xlu1 %780 }
 0x1bf   : > { %2577 = vmatpush3.bf16.msra.mxu0 %v748_v61  ;;  %v682_v30 = vmul.f32 %v2793_v20, %v3461_v17  ;;  %v724_v32 = vadd.f32 %v3571_v0, %v702_v62 }
 0x1c0   : > { %v749_v5 = vpack.c.bf16 %v723_v24, %v722_v23  ;;  %v703_v28 = vmul.f32 %v3561_v48, %v681_v25  ;;  %v907_v43 = vpop.trf.xlu0 }
 0x1c1   : > { %v2795_v31 = vpop.eup %2794  ;;  %v704_v6 = vmul.f32 %v3561_v48, %v682_v30 }
 0x1c2   : > { %2578 = vmatprep.subr.bf16.mxu0 %v749_v5  ;;  %v725_v33 = vadd.f32 %v3571_v0, %v703_v28  ;;  %v683_v34 = vmul.f32 %v2795_v31, %v3464_v18  ;;  %v786_v35 = vpop.permute.xlu1 %785 }
 0x1c3   : > { %2579 = vmatpush3.bf16.msra.mxu0 %v749_v5  ;;  %v726_v17 = vadd.f32 %v3571_v0, %v704_v6 }
 0x1c4   : > { %v750_v37 = vpack.c.bf16 %v725_v33, %v724_v32  ;;  %v705_v36 = vmul.f32 %v3561_v48, %v683_v34  ;;  %v908_v47 = vpop.trf.xlu0 }
 0x1c6   : > { %2580 = vmatprep.subr.bf16.mxu0 %v750_v37  ;;  %v727_v40 = vadd.f32 %v3571_v0, %v705_v36  ;;  %v791_v41 = vpop.permute.xlu1 %790 }
 0x1c7   : > { %2581 = vmatpush3.bf16.msra.mxu0 %v750_v37 }
 0x1c8   : > { %v751_v42 = vpack.c.bf16 %v727_v40, %v726_v17  ;;  %v909_v48 = vpop.trf.xlu0 }
 0x1ca   : > { %2582 = vmatprep.subr.bf16.mxu0 %v751_v42  ;;  %v796_v44 = vpop.permute.xlu1 %795 }
 0x1cb   : > { %2583 = vmatpush3.bf16.msra.mxu0 %v751_v42 }
 0x1cc   : > { %v910_v51 = vpop.trf.xlu0 }
 0x1ce   : > { %2585 = vmatmul.mubr.bf16.vlgmr.msra.gmra.mrb[0].mxu0 %v905_v26  ;;  %v801_v18 = vpop.permute.xlu1 %800 }
 0x1cf   : > { %2588 = vmatprep.mubr.bf16.mxu0 %v906_v39 }
 0x1d0   : > { %v911_v55 = vpop.trf.xlu0 }
 0x1d2   : > { %v806_v38 = vpop.permute.xlu1 %805 }
 0x1d6   : > { %2589 = vmatmul.mubr.bf16.gmra.mrb[4].mxu0 %v907_v43  ;;  %v811_v49 = vpop.permute.xlu1 %810 }
 0x1d7   : > { %2592 = vmatprep.mubr.bf16.mxu0 %v908_v47 }
 0x1da   : > { %v3631_v50 = vpop.permute.xlu1 %815 }
 0x1de   : > { %2593 = vmatmul.mubr.bf16.gmra.mrb[8].mxu0 %v909_v48  ;;  %v821_v0 = vpop.permute.xlu1 %820 }
 0x1df   : > { %2596 = vmatprep.mubr.bf16.mxu0 %v910_v51 }
 0x1e2   : > { %v826_v52 = vpop.permute.xlu1 %825 }
 0x1e6   : > { %2597 = vmatmul.mubr.bf16.gmra.mrb[12].mxu0 %v911_v55  ;;  %v3633_v45 = vpop.permute.xlu1 %830 }
 0x1e7   : > { %1772 = vmatprep.mubr.bf16.mxu0 %v3105_v16 }
 0x1ea   : > { %v3636_v21 = vpop.permute.xlu1 %835 }
 0x1ee   : > { %v3638_v56 = vpop.permute.xlu1 %840 }
 0x1f7   : > { %v1169_v57 = vpop.trf.xlu1 }
 0x1f8   : > { %2616 = vmatprep.mubr.bf16.mxu1 %v1169_v57 }
 0x2a1   : > { %v2586_v58 = vpop.f32.mrb[0].mxu0 }
 0x2a2   : > { %v955_v59 = vadd.f32 %v2586_v58, %v781_v27  ;;  %v946_v60 = vpop.f32.mrb[1].mxu0 }
 0x2a3   : > { %v947_v63 = vadd.f32 %v946_v60, %v3606_v7  ;;  %v2587_v1 = vpop.f32.mrb[2].mxu0 }
 0x2a4   : > { %v1027_v2 = vmul.f32 0.70710677, %v955_v59  ;;  %v958_v46 = vadd.f32 %v2587_v1, %v786_v35  ;;  %v949_v3 = vpop.f32.mrb[3].mxu0  ;;  %v1011_v62 = vmul.f32 0.5, %v955_v59 }
 0x2a5   : > { %v1025_v4 = vmul.f32 0.70710677, %v947_v63  ;;  %v950_v53 = vadd.f32 %v949_v3, %v3614_v13  ;;  %v1009_v6 = vmul.f32 0.5, %v947_v63 }
 0x2a6   : > { %2796 = verf.f32 %v1027_v2  ;;  %v1028_v29 = vmul.f32 0.70710677, %v958_v46  ;;  %v1012_v28 = vmul.f32 0.5, %v958_v46 }
 0x2a7   : > { %2798 = verf.f32 %v1025_v4  ;;  %v1026_v8 = vmul.f32 0.70710677, %v950_v53  ;;  %v1010_v40 = vmul.f32 0.5, %v950_v53  ;;  %v846_v4 = vpop.permute.xlu0 %845 }
 0x2a8   : > { %2800 = verf.f32 %v1028_v29 }
 0x2a9   : > { %2802 = verf.f32 %v1026_v8  ;;  %v2590_v9 = vpop.f32.mrb[4].mxu0 }
 0x2aa   : > { %v971_v10 = vadd.f32 %v2590_v9, %v801_v18  ;;  %v962_v11 = vpop.f32.mrb[5].mxu0 }
 0x2ab   : > { %v963_v12 = vadd.f32 %v962_v11, %v791_v41  ;;  %v2591_v54 = vpop.f32.mrb[6].mxu0 }
 0x2ac   : > { %v1031_v22 = vmul.f32 0.70710677, %v971_v10  ;;  %v974_v7 = vadd.f32 %v2591_v54, %v806_v38  ;;  %v965_v19 = vpop.f32.mrb[7].mxu0  ;;  %v1015_v63 = vmul.f32 0.5, %v971_v10 }
 0x2ad   : > { %v1029_v61 = vmul.f32 0.70710677, %v963_v12  ;;  %v966_v14 = vadd.f32 %v965_v19, %v796_v44  ;;  %v1013_v53 = vmul.f32 0.5, %v963_v12 }
 0x2ae   : > { %2804 = verf.f32 %v1031_v22  ;;  %v1032_v15 = vmul.f32 0.70710677, %v974_v7  ;;  %v1016_v1 = vmul.f32 0.5, %v974_v7 }
 0x2af   : > { %2806 = verf.f32 %v1029_v61  ;;  %v1030_v13 = vmul.f32 0.70710677, %v966_v14  ;;  %v1014_v29 = vmul.f32 0.5, %v966_v14 }
 0x2b0   : > { %v2797_v20 = vpop.eup %2796  ;;  %2808 = verf.f32 %v1032_v15 }
 0x2b1   : > { %v2799_v23 = vpop.eup %2798  ;;  %2810 = verf.f32 %v1030_v13  ;;  %v2594_v24 = vpop.f32.mrb[8].mxu0  ;;  %v1059_v26 = vadd.f32 1.0, %v2797_v20 }
 0x2b2   : > { %v2801_v25 = vpop.eup %2800  ;;  %v3642_v27 = vadd.f32 %v2594_v24, %v821_v0  ;;  %v978_v30 = vpop.f32.mrb[9].mxu0  ;;  %v1057_v34 = vadd.f32 1.0, %v2799_v23 }
 0x2b3   : > { %v2803_v5 = vpop.eup %2802  ;;  %v1060_v31 = vadd.f32 1.0, %v2801_v25  ;;  %v3644_v32 = vadd.f32 %v978_v30, %v811_v49  ;;  %v2595_v33 = vpop.f32.mrb[10].mxu0  ;;  %v1075_v43 = vmul.f32 %v1059_v26, %v1011_v62 }
 0x2b4   : > { %v1035_v35 = vmul.f32 0.70710677, %v3642_v27  ;;  %v3647_v37 = vadd.f32 %v2595_v33, %v826_v52  ;;  %v981_v36 = vpop.f32.mrb[11].mxu0  ;;  %v1058_v39 = vadd.f32 1.0, %v2803_v5  ;;  %v1073_v47 = vmul.f32 %v1057_v34, %v1009_v6 }
 0x2b5   : > { %v1076_v17 = vmul.f32 %v1060_v31, %v1012_v28  ;;  %v1033_v41 = vmul.f32 0.70710677, %v3644_v32  ;;  %v982_v42 = vadd.f32 %v981_v36, %v3631_v50  ;;  %v1019_v26 = vmul.f32 0.5, %v3642_v27 }
 0x2b6   : > { %2812 = verf.f32 %v1035_v35  ;;  %v1036_v44 = vmul.f32 0.70710677, %v3647_v37  ;;  %v1074_v38 = vmul.f32 %v1058_v39, %v1010_v40  ;;  %v1020_v30 = vmul.f32 0.5, %v3647_v37 }
 0x2b7   : > { %2814 = verf.f32 %v1033_v41  ;;  %v1034_v18 = vmul.f32 0.70710677, %v982_v42  ;;  %v1090_v49 = vpack.c.bf16 %v1076_v17, %v1075_v43  ;;  %v1017_v5 = vmul.f32 0.5, %v3644_v32 }
 0x2b8   : > { %v2805_v48 = vpop.eup %2804  ;;  %2816 = verf.f32 %v1036_v44  ;;  %v1089_v55 = vpack.c.bf16 %v1074_v38, %v1073_v47  ;;  %v1018_v28 = vmul.f32 0.5, %v982_v42 }
 0x2b9   : > { %v2807_v51 = vpop.eup %2806  ;;  %v1063_v0 = vadd.f32 1.0, %v2805_v48  ;;  %2818 = verf.f32 %v1034_v18  ;;  %v2598_v52 = vpop.f32.mrb[12].mxu0 }
 0x2ba   : > { %v2809_v57 = vpop.eup %2808  ;;  %v1061_v58 = vadd.f32 1.0, %v2807_v51  ;;  %v1003_v50 = vadd.f32 %v2598_v52, %v3638_v56  ;;  %v994_v59 = vpop.f32.mrb[13].mxu0  ;;  %2600 = vmatprep.subr.bf16.mxu1 %v1089_v55 }
 0x2bb   : > { %v2811_v60 = vpop.eup %2810  ;;  %v1064_v2 = vadd.f32 1.0, %v2809_v57  ;;  %v995_v46 = vadd.f32 %v994_v59, %v3633_v45  ;;  %v2599_v3 = vpop.f32.mrb[14].mxu0  ;;  %2601 = vmatpush3.bf16.msra.mxu1 %v1089_v55  ;;  %v1079_v54 = vmul.f32 %v1063_v0, %v1015_v63 }
 0x2bc   : > { %v1062_v8 = vadd.f32 1.0, %v2811_v60  ;;  %v1039_v9 = vmul.f32 0.70710677, %v1003_v50  ;;  %v997_v11 = vpop.f32.mrb[15].mxu0  ;;  %v1006_v56 = vadd.f32 %v2599_v3, %v846_v4  ;;  %2602 = vmatprep.subr.bf16.mxu1 %v1090_v49  ;;  %v1077_v61 = vmul.f32 %v1061_v58, %v1013_v53  ;;  %v1170_v18 = vpop.trf.xlu1 }
 0x2bd   : > { %v1080_v22 = vmul.f32 %v1064_v2, %v1016_v1  ;;  %v1037_v19 = vmul.f32 0.70710677, %v995_v46  ;;  %v998_v7 = vadd.f32 %v997_v11, %v3636_v21  ;;  %v1023_v44 = vmul.f32 0.5, %v1003_v50  ;;  %v1309_v2 = vpop.permute.xlu0 %1308 }
 0x2be   : > { %v1078_v10 = vmul.f32 %v1062_v8, %v1014_v29  ;;  %2820 = verf.f32 %v1039_v9  ;;  %v1040_v45 = vmul.f32 0.70710677, %v1006_v56  ;;  %v1024_v32 = vmul.f32 0.5, %v1006_v56 }
 0x2bf   : > { %2822 = verf.f32 %v1037_v19  ;;  %v1092_v15 = vpack.c.bf16 %v1080_v22, %v1079_v54  ;;  %v1038_v12 = vmul.f32 0.70710677, %v998_v7  ;;  %2603 = vmatpush3.bf16.msra.mxu1 %v1090_v49  ;;  %v1021_v47 = vmul.f32 0.5, %v995_v46  ;;  %v2924_v19 = vld [vmem:[%s3349_s21] sm:$0xff] }
 0x2c0   : > { %v2813_v13 = vpop.eup %2812  ;;  %v1091_v14 = vpack.c.bf16 %v1078_v10, %v1077_v61  ;;  %2824 = verf.f32 %v1040_v45  ;;  %v1022_v38 = vmul.f32 0.5, %v998_v7  ;;  %v1171_v58 = vpop.trf.xlu1 }
 0x2c1   : > { %v2815_v20 = vpop.eup %2814  ;;  %v1067_v23 = vadd.f32 1.0, %v2813_v13  ;;  %2826 = verf.f32 %v1038_v12  ;;  %v1314_v46 = vpop.permute.xlu0 %1313  ;;  %v2926_v12 = vld [vmem:[%s3349_s21 + $0x8] sm:$0xff] }
 0x2c2   : > { %v2817_v24 = vpop.eup %2816  ;;  %v1065_v25 = vadd.f32 1.0, %v2815_v20  ;;  %2604 = vmatprep.subr.bf16.mxu1 %v1091_v14  ;;  %v2927_v20 = vld [vmem:[%s3349_s21 + $0x10] sm:$0xff] }
 0x2c3   : > { %v2819_v62 = vpop.eup %2818  ;;  %v1068_v21 = vadd.f32 1.0, %v2817_v24  ;;  %2605 = vmatpush3.bf16.msra.mxu1 %v1091_v14  ;;  %v1083_v33 = vmul.f32 %v1067_v23, %v1019_v26 }
 0x2c4   : > { %v1066_v31 = vadd.f32 1.0, %v2819_v62  ;;  %2606 = vmatprep.subr.bf16.mxu1 %v1092_v15  ;;  %v1081_v6 = vmul.f32 %v1065_v25, %v1017_v5  ;;  %v1172_v50 = vpop.trf.xlu1  ;;  %v2928_v5 = vld [vmem:[%s3349_s21 + $0x20] sm:$0xff] }
 0x2c5   : > { %v1084_v34 = vmul.f32 %v1068_v21, %v1020_v30  ;;  %v1319_v3 = vpop.permute.xlu0 %1318 }
 0x2c6   : > { %v1082_v35 = vmul.f32 %v1066_v31, %v1018_v28 }
 0x2c7   : > { %v1094_v36 = vpack.c.bf16 %v1084_v34, %v1083_v33  ;;  %2607 = vmatpush3.bf16.msra.mxu1 %v1092_v15  ;;  %v2925_v15 = vld [vmem:[%s3349_s21 + $0x18] sm:$0xff]  ;;  %v2929_v34 = vld [vmem:[%s3349_s21 + $0x28] sm:$0xff] }
 0x2c8   : > { %v2821_v39 = vpop.eup %2820  ;;  %v1093_v17 = vpack.c.bf16 %v1082_v35, %v1081_v6  ;;  %v1173_v59 = vpop.trf.xlu1  ;;  %v2930_v35 = vld [vmem:[%s3349_s21 + $0x30] sm:$0xff] }
 0x2c9   : > { %v2823_v40 = vpop.eup %2822  ;;  %v1071_v41 = vadd.f32 1.0, %v2821_v39  ;;  %v1324_v4 = vpop.permute.xlu0 %1323 }
 0x2ca   : > { %2608 = vmatprep.subr.bf16.mxu1 %v1093_v17  ;;  %v2825_v27 = vpop.eup %2824  ;;  %v1069_v37 = vadd.f32 1.0, %v2823_v40 }
 0x2cb   : > { %v2827_v43 = vpop.eup %2826  ;;  %v1072_v42 = vadd.f32 1.0, %v2825_v27  ;;  %2609 = vmatpush3.bf16.msra.mxu1 %v1093_v17  ;;  %v1087_v49 = vmul.f32 %v1071_v41, %v1023_v44  ;;  %v2931_v17 = vld [vmem:[%s3349_s21 + $0x38] sm:$0xff] }
 0x2cc   : > { %v1070_v48 = vadd.f32 1.0, %v2827_v43  ;;  %2610 = vmatprep.subr.bf16.mxu1 %v1094_v36  ;;  %v1085_v0 = vmul.f32 %v1069_v37, %v1021_v47  ;;  %v1174_v60 = vpop.trf.xlu1 }
 0x2cd   : > { %v1088_v51 = vmul.f32 %v1072_v42, %v1024_v32  ;;  %v1329_v53 = vpop.permute.xlu0 %1328  ;;  %v2932_v42 = vld [vmem:[%s3349_s21 + $0x40] sm:$0xff] }
 0x2ce   : > { %v1086_v52 = vmul.f32 %v1070_v48, %v1022_v38  ;;  %v2933_v48 = vld [vmem:[%s3349_s21 + $0x48] sm:$0xff] }
 0x2cf   : > { %2611 = vmatpush3.bf16.msra.mxu1 %v1094_v36  ;;  %v1096_v55 = vpack.c.bf16 %v1088_v51, %v1087_v49 }
 0x2d0   : > { %v1095_v57 = vpack.c.bf16 %v1086_v52, %v1085_v0  ;;  %v1175_v63 = vpop.trf.xlu1  ;;  %v2934_v0 = vld [vmem:[%s3349_s21 + $0x50] sm:$0xff] }
 0x2d1   : > { %v1334_v29 = vpop.permute.xlu0 %1333 }
 0x2d2   : > { %2612 = vmatprep.subr.bf16.mxu1 %v1095_v57 }
 0x2d3   : > { %2613 = vmatpush3.bf16.msra.mxu1 %v1095_v57  ;;  %v2935_v57 = vld [vmem:[%s3349_s21 + $0x58] sm:$0xff] }
 0x2d4   : > { %2614 = vmatprep.subr.bf16.mxu1 %v1096_v55  ;;  %v1176_v1 = vpop.trf.xlu1 }
 0x2d5   : > { %v1339_v8 = vpop.permute.xlu0 %1338 }
 0x2d7   : > { %2615 = vmatpush3.bf16.msra.mxu1 %v1096_v55 }
 0x2d9   : > { %v1344_v9 = vpop.permute.xlu0 %1343 }
 0x2da   : > { %2617 = vmatmul.mubr.bf16.vlgmr.msra.gmra.mrb[0].mxu1 %v1170_v18 }
 0x2db   : > { %2620 = vmatprep.mubr.bf16.mxu1 %v1171_v58 }
 0x2dd   : > { %v1349_v11 = vpop.permute.xlu0 %1348 }
 0x2e1   : > { %v1354_v10 = vpop.permute.xlu0 %1353 }
 0x2e2   : > { %2621 = vmatmul.mubr.bf16.gmra.mrb[4].mxu1 %v1172_v50 }
 0x2e3   : > { %2624 = vmatprep.mubr.bf16.mxu1 %v1173_v59 }
 0x2e5   : > { %v1359_v26 = vpop.permute.xlu0 %1358 }
 0x2e9   : > { %v1364_v27 = vpop.permute.xlu0 %1363 }
 0x2ea   : > { %2625 = vmatmul.mubr.bf16.gmra.mrb[8].mxu1 %v1174_v60 }
 0x2eb   : > { %2628 = vmatprep.mubr.bf16.mxu1 %v1175_v63 }
 0x2ed   : > { %v1369_v51 = vpop.permute.xlu0 %1368 }
 0x2f2   : > { %2629 = vmatmul.mubr.bf16.gmra.mrb[12].mxu1 %v1176_v1 }
 0x3ad   : > { %v2618_v54 = vpop.f32.mrb[0].mxu1 }
 0x3ae   : > { %v1211_v22 = vpop.f32.mrb[1].mxu1  ;;  %v1276_v23 = vadd.f32 %v2927_v20, %v2618_v54  ;;  %v2727_v20 = vld [vmem:[%s4174_s9 + $0x10] ss:$8 sps:$4 sm:$0xff]  }
 0x3af   : > { %v1274_v56 = vadd.f32 %v2924_v19, %v1211_v22  ;;  %v2619_v61 = vpop.f32.mrb[2].mxu1  ;;  %v2939_v22 = vld [vmem:[%s3349_s21 + $0x78] sm:$0xff] }
 0x3b0   : > { %v1214_v7 = vpop.f32.mrb[3].mxu1  ;;  %v1277_v13 = vadd.f32 %v2925_v15, %v2619_v61  ;;  %v3670_v21 = vadd.f32 %v1319_v3, %v1276_v23  ;;  %v1379_v61 = vpop.permute.xlu1 %1378 }
 0x3b1   : > { %v3659_v45 = vadd.f32 %v1309_v2, %v1274_v56  ;;  %v1275_v14 = vadd.f32 %v2926_v12, %v1214_v7  ;;  %v2936_v2 = vld [vmem:[%s3349_s21 + $0x60] sm:$0xff] }
 0x3b2   : > { %v3667_v25 = vadd.f32 %v1324_v4, %v1277_v13  ;;  %v1374_v4 = vpop.permute.xlu0 %1373  ;;  %v2724_v13 = vld [vmem:[%s4174_s9] ss:$8 sps:$4 sm:$0xff]   ;;  %v2726_v12 = vld [vmem:[%s4174_s9 + $0x4] ss:$8 sps:$4 sm:$0xff]  }
 0x3b3   : > { %v3664_v24 = vadd.f32 %v1314_v46, %v1275_v14  ;;  %1404 = vadd.xlane.f32.xlu1 %v3659_v45  ;;  %v2729_v14 = vld [vmem:[%s4174_s9 + $0x14] ss:$8 sps:$4 sm:$0xff]   ;;  %1740 = vmatprep.subr.bf16.mxu0 %v2726_v12 }
 0x3b4   : > { %1741 = vmatpush1.bf16.msra.mxu0 %v2724_v13 }
 0x3b5   : > { %v2622_v62 = vpop.f32.mrb[4].mxu1  ;;  %1406 = vadd.xlane.f32.xlu0 %v3664_v24  ;;  %1742 = vmatprep.subr.bf16.mxu0 %v2729_v14 }
 0x3b6   : > { %v1227_v30 = vpop.f32.mrb[5].mxu1  ;;  %v1280_v36 = vadd.f32 %v2930_v35, %v2622_v62 }
 0x3b7   : > { %v1278_v28 = vadd.f32 %v2928_v5, %v1227_v30  ;;  %v2623_v31 = vpop.f32.mrb[6].mxu1  ;;  %1410 = vadd.xlane.f32.xlu1 %v3667_v25 }
 0x3b8   : > { %v1230_v33 = vpop.f32.mrb[7].mxu1  ;;  %v1281_v40 = vadd.f32 %v2931_v17, %v2623_v31  ;;  %v3684_v44 = vadd.f32 %v1339_v8, %v1280_v36  ;;  %1743 = vmatpush1.bf16.msra.mxu0 %v2727_v20 }
 0x3b9   : > { %v1279_v6 = vadd.f32 %v2929_v34, %v1230_v33  ;;  %1408 = vadd.xlane.f32.xlu0 %v3670_v21  ;;  %v3677_v39 = vadd.f32 %v1329_v53, %v1278_v28 }
 0x3ba   : > { %v3686_v32 = vadd.f32 %v1344_v9, %v1281_v40  ;;  %v2938_v9 = vld [vmem:[%s3349_s21 + $0x70] sm:$0xff] }
 0x3bb   : > { %v3680_v41 = vadd.f32 %v1334_v29, %v1279_v6  ;;  %v2937_v29 = vld [vmem:[%s3349_s21 + $0x68] sm:$0xff]  ;;  %s4117_s21 = scalar_lea.hbm %s4203_s17, %s2471_s30 }
 0x3bd   : > { %v2626_v37 = vpop.f32.mrb[8].mxu1  ;;  %1412 = vadd.xlane.f32.xlu0 %v3677_v39  ;;  %1414 = vadd.xlane.f32.xlu1 %v3680_v41 }
 0x3be   : > { %v1243_v43 = vpop.f32.mrb[9].mxu1  ;;  %v1284_v52 = vadd.f32 %v2934_v0, %v2626_v37 }
 0x3bf   : > { %v1282_v18 = vadd.f32 %v2932_v42, %v1243_v43  ;;  %v2627_v47 = vpop.f32.mrb[10].mxu1 }
 0x3c0   : > { %v1246_v38 = vpop.f32.mrb[11].mxu1  ;;  %v1285_v58 = vadd.f32 %v2935_v57, %v2627_v47  ;;  %v3700_v63 = vadd.f32 %v1359_v26, %v1284_v52 }
 0x3c1   : > { %v1283_v49 = vadd.f32 %v2933_v48, %v1246_v38  ;;  %1416 = vadd.xlane.f32.xlu0 %v3684_v44  ;;  %1418 = vadd.xlane.f32.xlu1 %v3686_v32  ;;  %v3693_v55 = vadd.f32 %v1349_v11, %v1282_v18 }
 0x3c2   : > { %v3702_v1 = vadd.f32 %v1364_v27, %v1285_v58 }
 0x3c3   : > { %v3696_v50 = vadd.f32 %v1354_v10, %v1283_v49  ;;  %v1384_v10 = vpop.permute.xlu0 %1383 }
 0x3c5   : > { %v2630_v59 = vpop.f32.mrb[12].mxu1  ;;  %1420 = vadd.xlane.f32.xlu0 %v3693_v55  ;;  %1422 = vadd.xlane.f32.xlu1 %v3696_v50 }
 0x3c6   : > { %v1259_v60 = vpop.f32.mrb[13].mxu1  ;;  %v1288_v11 = vadd.f32 %v2938_v9, %v2630_v59 }
 0x3c7   : > { %v1286_v46 = vadd.f32 %v2936_v2, %v1259_v60  ;;  %v2631_v3 = vpop.f32.mrb[14].mxu1 }
 0x3c8   : > { %v1262_v53 = vpop.f32.mrb[15].mxu1  ;;  %v1289_v19 = vadd.f32 %v2939_v22, %v2631_v3  ;;  %v3716_v7 = vadd.f32 %v1379_v61, %v1288_v11  ;;  %v2732_v11 = vld [vmem:[%s4174_s9 + $0x24] ss:$8 sps:$4 sm:$0xff]   ;;  %v2730_v61 = vld [vmem:[%s4174_s9 + $0x20] ss:$8 sps:$4 sm:$0xff]  }
 0x3c9   : > { %v1287_v8 = vadd.f32 %v2937_v29, %v1262_v53  ;;  %1424 = vadd.xlane.f32.xlu0 %v3700_v63  ;;  %1426 = vadd.xlane.f32.xlu1 %v3702_v1  ;;  %v3709_v54 = vadd.f32 %v1369_v51, %v1286_v46 }
 0x3ca   : > { %v3718_v15 = vadd.f32 %v1384_v10, %v1289_v19  ;;  %1744 = vmatprep.subr.bf16.mxu0 %v2732_v11  ;;  %v2745_v11 = vld [vmem:[%s4174_s9 + $0x70] ss:$8 sps:$4 sm:$0xff]  }
 0x3cb   : > { %v3712_v56 = vadd.f32 %v1374_v4, %v1287_v8  ;;  %1745 = vmatpush1.bf16.msra.mxu0 %v2730_v61  ;;  %v2750_v61 = vld [vmem:[%s4176_s11 + $0x48] sm:$0xff]  }
 0x3cd   : > { %1428 = vadd.xlane.f32.xlu0 %v3709_v54  ;;  %1430 = vadd.xlane.f32.xlu1 %v3712_v56 }
 0x3d1   : > { %1432 = vadd.xlane.f32.xlu0 %v3716_v7  ;;  %1434 = vadd.xlane.f32.xlu1 %v3718_v15 }
 0x440   : > { %v1405_v23 = vpop.xlane.xlu1 %1404 }
 0x441   : > { %v1436_v62 = vmul.f32 0.0078125, %v1405_v23 }
 0x442   : > { %v1407_v26 = vpop.xlane.xlu0 %1406 }
 0x443   : > { %v3735_v30 = vsub.f32 %v3659_v45, %v1436_v62  ;;  %v1437_v5 = vmul.f32 0.0078125, %v1407_v26  ;;  %v2735_v62 = vld [vmem:[%s4174_s9 + $0x34] ss:$8 sps:$4 sm:$0xff]  }
 0x444   : > { %v1411_v28 = vpop.xlane.xlu1 %1410  ;;  %1746 = vmatprep.subr.bf16.mxu0 %v2735_v62 }
 0x445   : > { %v3738_v31 = vsub.f32 %v3664_v24, %v1437_v5  ;;  %v1439_v33 = vmul.f32 0.0078125, %v1411_v28  ;;  %v1468_v34 = vmul.f32 %v3735_v30, %v3735_v30  ;;  %v2733_v28 = vld [vmem:[%s4174_s9 + $0x30] ss:$8 sps:$4 sm:$0xff]  }
 0x446   : > { %v1409_v6 = vpop.xlane.xlu0 %1408  ;;  %1747 = vmatpush1.bf16.msra.mxu0 %v2733_v28 }
 0x447   : > { %v3743_v35 = vsub.f32 %v3667_v25, %v1439_v33  ;;  %v1438_v36 = vmul.f32 0.0078125, %v1409_v6  ;;  %1484 = vadd.xlane.f32.xlu0 %v1468_v34  ;;  %v1469_v17 = vmul.f32 %v3738_v31, %v3738_v31 }
 0x449   : > { %v3748_v40 = vsub.f32 %v3670_v21, %v1438_v36  ;;  %1486 = vadd.xlane.f32.xlu1 %v1469_v17  ;;  %v1471_v18 = vmul.f32 %v3743_v35, %v3743_v35 }
 0x44a   : > { %v1415_v27 = vpop.xlane.xlu1 %1414  ;;  %v1413_v37 = vpop.xlane.xlu0 %1412 }
 0x44b   : > { %v1441_v43 = vmul.f32 0.0078125, %v1415_v27  ;;  %v1440_v42 = vmul.f32 0.0078125, %v1413_v37  ;;  %v1470_v47 = vmul.f32 %v3748_v40, %v3748_v40  ;;  %v2738_v37 = vld [vmem:[%s4174_s9 + $0x44] ss:$8 sps:$4 sm:$0xff]  }
 0x44c   : > { %1748 = vmatprep.subr.bf16.mxu0 %v2738_v37 }
 0x44d   : > { %v3755_v38 = vsub.f32 %v3680_v41, %v1441_v43  ;;  %v3758_v48 = vsub.f32 %v3677_v39, %v1440_v42  ;;  %1490 = vadd.xlane.f32.xlu1 %v1471_v18  ;;  %1488 = vadd.xlane.f32.xlu0 %v1470_v47  ;;  %v2736_v18 = vld [vmem:[%s4174_s9 + $0x40] ss:$8 sps:$4 sm:$0xff]  }
 0x44e   : > { %v1419_v49 = vpop.xlane.xlu1 %1418  ;;  %v1417_v51 = vpop.xlane.xlu0 %1416  ;;  %1749 = vmatpush1.bf16.msra.mxu0 %v2736_v18 }
 0x44f   : > { %v1443_v0 = vmul.f32 0.0078125, %v1419_v49  ;;  %v1442_v52 = vmul.f32 0.0078125, %v1417_v51  ;;  %v1473_v57 = vmul.f32 %v3755_v38, %v3755_v38  ;;  %v1472_v58 = vmul.f32 %v3758_v48, %v3758_v48 }
 0x451   : > { %v3765_v59 = vsub.f32 %v3686_v32, %v1443_v0  ;;  %v3768_v60 = vsub.f32 %v3684_v44, %v1442_v52  ;;  %1494 = vadd.xlane.f32.xlu1 %v1473_v57  ;;  %1492 = vadd.xlane.f32.xlu0 %v1472_v58  ;;  %v2741_v58 = vld [vmem:[%s4174_s9 + $0x54] ss:$8 sps:$4 sm:$0xff]  }
 0x452   : > { %v1423_v2 = vpop.xlane.xlu1 %1422  ;;  %v1421_v46 = vpop.xlane.xlu0 %1420  ;;  %1750 = vmatprep.subr.bf16.mxu0 %v2741_v58 }
 0x453   : > { %v1445_v3 = vmul.f32 0.0078125, %v1423_v2  ;;  %v1444_v4 = vmul.f32 0.0078125, %v1421_v46  ;;  %v1475_v53 = vmul.f32 %v3765_v59, %v3765_v59  ;;  %v1474_v29 = vmul.f32 %v3768_v60, %v3768_v60  ;;  %v2739_v2 = vld [vmem:[%s4174_s9 + $0x50] ss:$8 sps:$4 sm:$0xff]  }
 0x454   : > { %1751 = vmatpush1.bf16.msra.mxu0 %v2739_v2 }
 0x455   : > { %v3775_v8 = vsub.f32 %v3696_v50, %v1445_v3  ;;  %v3778_v9 = vsub.f32 %v3693_v55, %v1444_v4  ;;  %1498 = vadd.xlane.f32.xlu1 %v1475_v53  ;;  %1496 = vadd.xlane.f32.xlu0 %v1474_v29  ;;  %v2744_v4 = vld [vmem:[%s4174_s9 + $0x64] ss:$8 sps:$4 sm:$0xff]   ;;  %v2742_v53 = vld [vmem:[%s4174_s9 + $0x60] ss:$8 sps:$4 sm:$0xff]   ;;  %v2747_v29 = vld [vmem:[%s4174_s9 + $0x74] ss:$8 sps:$4 sm:$0xff]  }
 0x456   : > { %v1427_v22 = vpop.xlane.xlu1 %1426  ;;  %v1425_v19 = vpop.xlane.xlu0 %1424  ;;  %1752 = vmatprep.subr.bf16.mxu0 %v2744_v4 }
 0x457   : > { %v1447_v10 = vmul.f32 0.0078125, %v1427_v22  ;;  %v1446_v13 = vmul.f32 0.0078125, %v1425_v19  ;;  %v1477_v12 = vmul.f32 %v3775_v8, %v3775_v8  ;;  %v1476_v14 = vmul.f32 %v3778_v9, %v3778_v9  ;;  %v2748_v22 = vld [vmem:[%s4176_s11 + $0x40] sm:$0xff]  }
 0x458   : > { %1753 = vmatpush1.bf16.msra.mxu0 %v2742_v53  ;;  %v2749_v19 = vld [vmem:[%s4176_s11] sm:$0xff]   ;;  %2504 = vmatprep.subr.bf16.mxu1 %v2748_v22 }
 0x459   : > { %v3791_v20 = vsub.f32 %v3702_v1, %v1447_v10  ;;  %v3794_v23 = vsub.f32 %v3700_v63, %v1446_v13  ;;  %1502 = vadd.xlane.f32.xlu1 %v1477_v12  ;;  %1500 = vadd.xlane.f32.xlu0 %v1476_v14  ;;  %v2751_v10 = vld [vmem:[%s4176_s11 + $0x8] sm:$0xff]  }
 0x45a   : > { %v1431_v26 = vpop.xlane.xlu1 %1430  ;;  %v1429_v5 = vpop.xlane.xlu0 %1428  ;;  %1754 = vmatprep.subr.bf16.mxu0 %v2747_v29  ;;  %2505 = vmatpush3.bf16.msra.mxu1 %v2749_v19 }
 0x45b   : > { %v1449_v33 = vmul.f32 0.0078125, %v1431_v26  ;;  %v1448_v34 = vmul.f32 0.0078125, %v1429_v5  ;;  %v1479_v6 = vmul.f32 %v3791_v20, %v3791_v20  ;;  %v1478_v36 = vmul.f32 %v3794_v23, %v3794_v23  ;;  %2506 = vmatprep.subr.bf16.mxu1 %v2750_v61 }
 0x45c   : > { %1755 = vmatpush1.bf16.msra.mxu0 %v2745_v11 }
 0x45d   : > { %v3807_v17 = vsub.f32 %v3712_v56, %v1449_v33  ;;  %v3810_v27 = vsub.f32 %v3709_v54, %v1448_v34  ;;  %1506 = vadd.xlane.f32.xlu1 %v1479_v6  ;;  %1504 = vadd.xlane.f32.xlu0 %v1478_v36 }
 0x45e   : > { %v1435_v43 = vpop.xlane.xlu1 %1434  ;;  %v1433_v42 = vpop.xlane.xlu0 %1432  ;;  %2507 = vmatpush3.bf16.msra.mxu1 %v2751_v10 }
 0x45f   : > { %v1451_v47 = vmul.f32 0.0078125, %v1435_v43  ;;  %v1450_v49 = vmul.f32 0.0078125, %v1433_v42  ;;  %v1481_v51 = vmul.f32 %v3807_v17, %v3807_v17  ;;  %v1480_v0 = vmul.f32 %v3810_v27, %v3810_v27 }
 0x461   : > { %v3823_v52 = vsub.f32 %v3718_v15, %v1451_v47  ;;  %v3826_v57 = vsub.f32 %v3716_v7, %v1450_v49  ;;  %1510 = vadd.xlane.f32.xlu1 %v1481_v51  ;;  %1508 = vadd.xlane.f32.xlu0 %v1480_v0 }
 0x463   : > { %v1483_v46 = vmul.f32 %v3823_v52, %v3823_v52  ;;  %v1482_v3 = vmul.f32 %v3826_v57, %v3826_v57 }
 0x465   : > { %1514 = vadd.xlane.f32.xlu1 %v1483_v46  ;;  %1512 = vadd.xlane.f32.xlu0 %v1482_v3  ;;  %v3865_v46 = vld [vmem:[%s4172_s7] ss:$0 sm:$0xff] }
 0x4d4   : > { %v1485_v13 = vpop.xlane.xlu0 %1484 }
 0x4d5   : > { %v1516_v12 = vmul.f32 0.0078125, %v1485_v13  ;;  %v3873_v13 = vld [vmem:[%s4173_s8] ss:$0 sm:$0xff] }
 0x4d6   : > { %v1487_v14 = vpop.xlane.xlu1 %1486 }
 0x4d7   : > { %v1532_v62 = vadd.f32 1e-05, %v1516_v12  ;;  %v1517_v26 = vmul.f32 0.0078125, %v1487_v14 }
 0x4d9   : > { %2828 = vrsqrt.f32 %v1532_v62  ;;  %v1533_v5 = vadd.f32 1e-05, %v1517_v26 }
 0x4da   : > { %v1491_v28 = vpop.xlane.xlu1 %1490  ;;  %v1489_v33 = vpop.xlane.xlu0 %1488 }
 0x4db   : > { %2830 = vrsqrt.f32 %v1533_v5  ;;  %v1519_v34 = vmul.f32 0.0078125, %v1491_v28  ;;  %v1518_v6 = vmul.f32 0.0078125, %v1489_v33 }
 0x4dd   : > { %v1535_v36 = vadd.f32 1e-05, %v1519_v34  ;;  %v1534_v37 = vadd.f32 1e-05, %v1518_v6 }
 0x4de   : > { %v1495_v43 = vpop.xlane.xlu1 %1494  ;;  %v1493_v42 = vpop.xlane.xlu0 %1492 }
 0x4df   : > { %2832 = vrsqrt.f32 %v1535_v36  ;;  %v1521_v18 = vmul.f32 0.0078125, %v1495_v43  ;;  %v1520_v47 = vmul.f32 0.0078125, %v1493_v42 }
 0x4e0   : > { %2834 = vrsqrt.f32 %v1534_v37 }
 0x4e1   : > { %v1537_v49 = vadd.f32 1e-05, %v1521_v18  ;;  %v1536_v51 = vadd.f32 1e-05, %v1520_v47 }
 0x4e2   : > { %v1499_v0 = vpop.xlane.xlu1 %1498  ;;  %v1497_v58 = vpop.xlane.xlu0 %1496 }
 0x4e3   : > { %v2829_v2 = vpop.eup %2828  ;;  %2836 = vrsqrt.f32 %v1537_v49  ;;  %v1523_v3 = vmul.f32 0.0078125, %v1499_v0  ;;  %v1522_v4 = vmul.f32 0.0078125, %v1497_v58 }
 0x4e4   : > { %v1564_v53 = vmul.f32 %v2829_v2, %v3735_v30  ;;  %2838 = vrsqrt.f32 %v1536_v51 }
 0x4e5   : > { %v2831_v29 = vpop.eup %2830  ;;  %v1539_v11 = vadd.f32 1e-05, %v1523_v3  ;;  %v1538_v61 = vadd.f32 1e-05, %v1522_v4 }
 0x4e6   : > { %v1586_v22 = vmul.f32 %v3865_v46, %v1564_v53  ;;  %v1565_v19 = vmul.f32 %v2831_v29, %v3738_v31  ;;  %v1503_v10 = vpop.xlane.xlu1 %1502  ;;  %v1501_v14 = vpop.xlane.xlu0 %1500 }
 0x4e7   : > { %2840 = vrsqrt.f32 %v1539_v11  ;;  %v1525_v26 = vmul.f32 0.0078125, %v1503_v10  ;;  %v1524_v33 = vmul.f32 0.0078125, %v1501_v14 }
 0x4e8   : > { %v1587_v12 = vmul.f32 %v3865_v46, %v1565_v19  ;;  %v1608_v5 = vadd.f32 %v3873_v13, %v1586_v22  ;;  %2842 = vrsqrt.f32 %v1538_v61 }
 0x4e9   : > { %v2833_v62 = vpop.eup %2832  ;;  %v1541_v18 = vadd.f32 1e-05, %v1525_v26  ;;  %v1540_v47 = vadd.f32 1e-05, %v1524_v33 }
 0x4ea   : > { %v2835_v30 = vpop.eup %2834  ;;  %v1609_v28 = vadd.f32 %v3873_v13, %v1587_v12  ;;  %v1567_v31 = vmul.f32 %v2833_v62, %v3743_v35  ;;  %v1507_v49 = vpop.xlane.xlu1 %1506 }
 0x4eb   : > { %v1566_v34 = vmul.f32 %v2835_v30, %v3748_v40  ;;  %v1505_v51 = vpop.xlane.xlu0 %1504  ;;  %2844 = vrsqrt.f32 %v1541_v18  ;;  %v1527_v2 = vmul.f32 0.0078125, %v1507_v49 }
 0x4ec   : > { %v1624_v6 = vpack.c.bf16 %v1609_v28, %v1608_v5  ;;  %v1589_v36 = vmul.f32 %v3865_v46, %v1567_v31  ;;  %2846 = vrsqrt.f32 %v1540_v47  ;;  %v1526_v4 = vmul.f32 0.0078125, %v1505_v51 }
 0x4ed   : > { %v2837_v37 = vpop.eup %2836  ;;  %v1588_v43 = vmul.f32 %v3865_v46, %v1566_v34  ;;  %v1543_v19 = vadd.f32 1e-05, %v1527_v2 }
 0x4ee   : > { %v2839_v42 = vpop.eup %2838  ;;  %1773 = vmatmul.mubr.bf16.vlgmr.msra.gmra.mrb[16].mxu0 %v1624_v6  ;;  %v1611_v0 = vadd.f32 %v3873_v13, %v1589_v36  ;;  %v1569_v58 = vmul.f32 %v2837_v37, %v3755_v38  ;;  %v1542_v61 = vadd.f32 1e-05, %v1526_v4  ;;  %v1511_v10 = vpop.xlane.xlu1 %1510 }
 0x4ef   : > { %1782 = vmatprep.mubr.bf16.mxu0 %v3105_v16  ;;  %v1610_v35 = vadd.f32 %v3873_v13, %v1588_v43  ;;  %v1568_v40 = vmul.f32 %v2839_v42, %v3758_v48  ;;  %v1509_v48 = vpop.xlane.xlu0 %1508  ;;  %2848 = vrsqrt.f32 %v1543_v19  ;;  %v1529_v30 = vmul.f32 0.0078125, %v1511_v10 }
 0x4f0   : > { %v1591_v11 = vmul.f32 %v3865_v46, %v1569_v58  ;;  %2850 = vrsqrt.f32 %v1542_v61  ;;  %v1528_v26 = vmul.f32 0.0078125, %v1509_v48 }
 0x4f1   : > { %v2841_v3 = vpop.eup %2840  ;;  %v1625_v53 = vpack.c.bf16 %v1611_v0, %v1610_v35  ;;  %v1590_v29 = vmul.f32 %v3865_v46, %v1568_v40  ;;  %v1545_v6 = vadd.f32 1e-05, %v1529_v30 }
 0x4f2   : > { %v2843_v22 = vpop.eup %2842  ;;  %v1613_v12 = vadd.f32 %v3873_v13, %v1591_v11  ;;  %v1571_v62 = vmul.f32 %v2841_v3, %v3765_v59  ;;  %v1544_v36 = vadd.f32 1e-05, %v1528_v26  ;;  %v1515_v37 = vpop.xlane.xlu1 %1514 }
 0x4f3   : > { %v1612_v38 = vadd.f32 %v3873_v13, %v1590_v29  ;;  %v1570_v14 = vmul.f32 %v2843_v22, %v3768_v60  ;;  %v1513_v60 = vpop.xlane.xlu0 %1512  ;;  %2852 = vrsqrt.f32 %v1545_v6  ;;  %v1531_v47 = vmul.f32 0.0078125, %v1515_v37  ;;  %v2757_v37 = vld [vmem:[%s4176_s11 + $0x20] sm:$0xff]  }
 0x4f4   : > { %v1593_v33 = vmul.f32 %v3865_v46, %v1571_v62  ;;  %2854 = vrsqrt.f32 %v1544_v36  ;;  %v1530_v49 = vmul.f32 0.0078125, %v1513_v60  ;;  %v2758_v60 = vld [vmem:[%s4176_s11 + $0x68] sm:$0xff]  }
 0x4f5   : > { %v2845_v5 = vpop.eup %2844  ;;  %v1626_v28 = vpack.c.bf16 %v1613_v12, %v1612_v38  ;;  %v1592_v31 = vmul.f32 %v3865_v46, %v1570_v14  ;;  %v1547_v2 = vadd.f32 1e-05, %v1531_v47  ;;  %v2763_v47 = vld [vmem:[%s4176_s11 + $0x38] sm:$0xff]  }
 0x4f6   : > { %1783 = vmatmul.mubr.bf16.gmra.mrb[20].mxu0 %v1625_v53  ;;  %v2847_v34 = vpop.eup %2846  ;;  %v1615_v43 = vadd.f32 %v3873_v13, %v1593_v33  ;;  %v1573_v18 = vmul.f32 %v2845_v5, %v3775_v8  ;;  %v1546_v3 = vadd.f32 1e-05, %v1530_v49  ;;  %v1650_v49 = vlaneseq }
 0x4f7   : > { %1792 = vmatprep.mubr.bf16.mxu0 %v3105_v16  ;;  %v1614_v59 = vadd.f32 %v3873_v13, %v1592_v31  ;;  %v1572_v42 = vmul.f32 %v2847_v34, %v3778_v9  ;;  %2856 = vrsqrt.f32 %v1547_v2 }
 0x4f8   : > { %v1595_v40 = vmul.f32 %v3865_v46, %v1573_v18  ;;  %2858 = vrsqrt.f32 %v1546_v3  ;;  %v2762_v18 = vld [vmem:[%s4176_s11 + $0x78] sm:$0xff]  }
 0x4f9   : > { %v2849_v51 = vpop.eup %2848  ;;  %v1627_v35 = vpack.c.bf16 %v1615_v43, %v1614_v59  ;;  %v1594_v0 = vmul.f32 %v3865_v46, %v1572_v42  ;;  %v2759_v59 = vld [vmem:[%s4176_s11 + $0x28] sm:$0xff]   ;;  %v2760_v43 = vld [vmem:[%s4176_s11 + $0x70] sm:$0xff]  }
 0x4fa   : > { %v2851_v58 = vpop.eup %2850  ;;  %v1617_v8 = vadd.f32 %v3873_v13, %v1595_v40  ;;  %v1575_v53 = vmul.f32 %v2849_v51, %v3791_v20  ;;  %v2761_v42 = vld [vmem:[%s4176_s11 + $0x30] sm:$0xff]   ;;  %v1651_v51 = vshrl.u32 %v1650_v49, 7 }
 0x4fb   : > { %v1616_v9 = vadd.f32 %v3873_v13, %v1594_v0  ;;  %v1574_v4 = vmul.f32 %v2851_v58, %v3794_v23  ;;  %v1648_v0 = vld [vmem:[%s4201_s16] sm:$0x3]  ;;  %s3106_s16 = smov [#allocation8]  }
 0x4fc   : > { %v1597_v19 = vmul.f32 %v3865_v46, %v1575_v53  ;;  %v1656_v40 = vsub.s32 1, %v1651_v51  ;;  %s3030_s20 = sshll.u32 %s3106_s16, 4  ;;  %s3031_s20 = int_to_ptr.vmem [resolvable:$false] %s3030_s20 }
 0x4fd   : > { %v2853_v29 = vpop.eup %2852  ;;  %v1628_v11 = vpack.c.bf16 %v1617_v8, %v1616_v9  ;;  %v1596_v22 = vmul.f32 %v3865_v46, %v1574_v4  ;;  %s3032_s10 = scalar_lea.vmem %s3031_s20, 4096  ;;  %p3033_p8 = scmp.lt.s32.totalorder %s4119_s23, %s3031_s20 }
 0x4fe   : > { %1793 = vmatmul.mubr.bf16.gmra.mrb[24].mxu0 %v1626_v28  ;;  %v2855_v61 = vpop.eup %2854  ;;  %v1619_v48 = vadd.f32 %v3873_v13, %v1597_v19  ;;  %v1577_v20 = vmul.f32 %v2853_v29, %v3807_v17  ;;  %v3968_v2 = vrot.slane %v1648_v0, %v1656_v40  ;;  %p3034_p13 = scmp.lt.s32.totalorder %s3032_s10, %s3026_s14 }
 0x4ff   : > { %1802 = vmatprep.mubr.bf16.mxu0 %v3105_v16  ;;  %v1618_v10 = vadd.f32 %v3873_v13, %v1596_v22  ;;  %v1576_v23 = vmul.f32 %v2855_v61, %v3810_v27 }
 0x500   : > { %v1599_v62 = vmul.f32 %v3865_v46, %v1577_v20  ;;  %p3035_p3 = por %p3034_p13, %p3033_p8 }
 0x501   : > { %v2857_v38 = vpop.eup %2856  ;;  %v1629_v12 = vpack.c.bf16 %v1619_v48, %v1618_v10  ;;  %v1598_v14 = vmul.f32 %v3865_v46, %v1576_v23 }
 0x502   : > { %v2859_v30 = vpop.eup %2858  ;;  %v1621_v5 = vadd.f32 %v3873_v13, %v1599_v62  ;;  %v1579_v27 = vmul.f32 %v2857_v38, %v3823_v52  ;;  %v2753_v52 = vld [vmem:[%s4176_s11 + $0x10] sm:$0xff]   ;;  %p3036_p7 = pnand %p3035_p3, %p3029_p6 }
 0x503   : > { %v1620_v26 = vadd.f32 %v3873_v13, %v1598_v14  ;;  %v1578_v28 = vmul.f32 %v2859_v30, %v3826_v57  ;;  %v2752_v57 = vld [vmem:[%s4176_s11 + $0x50] sm:$0xff]  }
 0x504   : > { %v1601_v33 = vmul.f32 %v3865_v46, %v1579_v27  ;;  %2508 = vmatprep.subr.bf16.mxu1 %v2752_v57 }
 0x505   : > { %v1630_v31 = vpack.c.bf16 %v1621_v5, %v1620_v26  ;;  %v1600_v17 = vmul.f32 %v3865_v46, %v1578_v28  ;;  %2509 = vmatpush3.bf16.msra.mxu1 %v2753_v52  ;;  %v2755_v46 = vld [vmem:[%s4176_s11 + $0x18] sm:$0xff]  }
 0x506   : > { %1803 = vmatmul.mubr.bf16.gmra.mrb[28].mxu0 %v1627_v35  ;;  %v1623_v6 = vadd.f32 %v3873_v13, %v1601_v33  ;;  %v1652_v35 = vsub.s32 0, %v1651_v51 }
 0x507   : > { %1812 = vmatprep.mubr.bf16.mxu0 %v3105_v16  ;;  %v1622_v34 = vadd.f32 %v3873_v13, %v1600_v17  ;;  %v2756_v13 = vld [vmem:[%s4176_s11 + $0x60] sm:$0xff]  }
 0x508   : > { %v3966_v58 = vrot.slane %v1648_v0, %v1652_v35 }
 0x509   : > { %v1631_v36 = vpack.c.bf16 %v1623_v6, %v1622_v34 }
 0x50e   : > { %1813 = vmatmul.mubr.bf16.gmra.mrb[32].mxu0 %v1628_v11 }
 0x50f   : > { %1822 = vmatprep.mubr.bf16.mxu0 %v3105_v16 }
 0x516   : > { %1823 = vmatmul.mubr.bf16.gmra.mrb[36].mxu0 %v1629_v12 }
 0x517   : > { %1832 = vmatprep.mubr.bf16.mxu0 %v3105_v16 }
 0x51e   : > { %1833 = vmatmul.mubr.bf16.gmra.mrb[40].mxu0 %v1630_v31 }
 0x51f   : > { %1842 = vmatprep.mubr.bf16.mxu0 %v3105_v16  ;;  %v2754_v16 = vld [vmem:[%s4176_s11 + $0x58] sm:$0xff]  }
 0x520   : > { %2510 = vmatprep.subr.bf16.mxu1 %v2754_v16 }
 0x521   : > { %2511 = vmatpush3.bf16.msra.mxu1 %v2755_v46 }
 0x522   : > { %2512 = vmatprep.subr.bf16.mxu1 %v2756_v13 }
 0x525   : > { %2513 = vmatpush3.bf16.msra.mxu1 %v2757_v37 }
 0x526   : > { %1843 = vmatmul.mubr.bf16.gmra.mrb[44].mxu0 %v1631_v36  ;;  %2514 = vmatprep.subr.bf16.mxu1 %v2758_v60 }
 0x529   : > { %2515 = vmatpush3.bf16.msra.mxu1 %v2759_v59 }
 0x52a   : > { %2516 = vmatprep.subr.bf16.mxu1 %v2760_v43 }
 0x52d   : > { %2517 = vmatpush3.bf16.msra.mxu1 %v2761_v42 }
 0x52e   : > { %2518 = vmatprep.subr.bf16.mxu1 %v2762_v18 }
 0x531   : > { %2519 = vmatpush3.bf16.msra.mxu1 %v2763_v47 }
 0x5c1   : > { %v1774_v3 = vpop.f32.mrb[16].mxu0 }
 0x5c2   : > { %v1775_v9 = vadd.f32 %v1774_v3, %v3966_v58  ;;  %v1776_v8 = vpop.f32.mrb[17].mxu0 }
 0x5c3   : > { %v1777_v4 = vadd.f32 %v1776_v8, %v3968_v2  ;;  %v1778_v53 = vpop.f32.mrb[18].mxu0 }
 0x5c4   : > { %v1885_v29 = vmul.f32 0.70710677, %v1775_v9  ;;  %v1779_v11 = vadd.f32 %v1778_v53, %v3966_v58  ;;  %v1780_v22 = vpop.f32.mrb[19].mxu0  ;;  %v1853_v13 = vmul.f32 0.5, %v1775_v9 }
 0x5c5   : > { %v1886_v19 = vmul.f32 0.70710677, %v1777_v4  ;;  %v1781_v61 = vadd.f32 %v1780_v22, %v3968_v2  ;;  %v1854_v42 = vmul.f32 0.5, %v1777_v4 }
 0x5c6   : > { %2860 = verf.f32 %v1885_v29  ;;  %v1887_v10 = vmul.f32 0.70710677, %v1779_v11  ;;  %v1855_v37 = vmul.f32 0.5, %v1779_v11 }
 0x5c7   : > { %2862 = verf.f32 %v1886_v19  ;;  %v1888_v48 = vmul.f32 0.70710677, %v1781_v61  ;;  %v1856_v18 = vmul.f32 0.5, %v1781_v61 }
 0x5c8   : > { %2864 = verf.f32 %v1887_v10 }
 0x5c9   : > { %2866 = verf.f32 %v1888_v48  ;;  %v1784_v23 = vpop.f32.mrb[20].mxu0 }
 0x5ca   : > { %v1785_v20 = vadd.f32 %v1784_v23, %v3966_v58  ;;  %v1786_v38 = vpop.f32.mrb[21].mxu0 }
 0x5cb   : > { %v1787_v12 = vadd.f32 %v1786_v38, %v3968_v2  ;;  %v1788_v14 = vpop.f32.mrb[22].mxu0 }
 0x5cc   : > { %v1889_v62 = vmul.f32 0.70710677, %v1785_v20  ;;  %v1789_v30 = vadd.f32 %v1788_v14, %v3966_v58  ;;  %v1790_v26 = vpop.f32.mrb[23].mxu0 }
 0x5cd   : > { %v1890_v5 = vmul.f32 0.70710677, %v1787_v12  ;;  %v1791_v28 = vadd.f32 %v1790_v26, %v3968_v2 }
 0x5ce   : > { %2868 = verf.f32 %v1889_v62  ;;  %v1891_v27 = vmul.f32 0.70710677, %v1789_v30 }
 0x5cf   : > { %2870 = verf.f32 %v1890_v5  ;;  %v1892_v31 = vmul.f32 0.70710677, %v1791_v28  ;;  %v1857_v5 = vmul.f32 0.5, %v1785_v20 }
 0x5d0   : > { %v2861_v17 = vpop.eup %2860  ;;  %2872 = verf.f32 %v1891_v27  ;;  %v1859_v27 = vmul.f32 0.5, %v1789_v30 }
 0x5d1   : > { %v2863_v33 = vpop.eup %2862  ;;  %v1949_v34 = vadd.f32 1.0, %v2861_v17  ;;  %2874 = verf.f32 %v1892_v31  ;;  %v1794_v6 = vpop.f32.mrb[24].mxu0 }
 0x5d2   : > { %v2865_v36 = vpop.eup %2864  ;;  %v1950_v57 = vadd.f32 1.0, %v2863_v33  ;;  %v3979_v52 = vadd.f32 %v1794_v6, %v3966_v58  ;;  %v1796_v16 = vpop.f32.mrb[25].mxu0  ;;  %v1860_v6 = vmul.f32 0.5, %v1791_v28 }
 0x5d3   : > { %v2867_v46 = vpop.eup %2866  ;;  %v1951_v60 = vadd.f32 1.0, %v2865_v36  ;;  %v3982_v59 = vadd.f32 %v1796_v16, %v3968_v2  ;;  %v1798_v43 = vpop.f32.mrb[26].mxu0  ;;  %v1981_v35 = vmul.f32 %v1949_v34, %v1853_v13  ;;  %v1858_v34 = vmul.f32 0.5, %v1787_v12 }
 0x5d4   : > { %v1952_v47 = vadd.f32 1.0, %v2867_v46  ;;  %v1893_v49 = vmul.f32 0.70710677, %v3979_v52  ;;  %v1800_v51 = vpop.f32.mrb[27].mxu0  ;;  %v1799_v3 = vadd.f32 %v1798_v43, %v3966_v58  ;;  %v1982_v8 = vmul.f32 %v1950_v57, %v1854_v42 }
 0x5d5   : > { %v1983_v0 = vmul.f32 %v1951_v60, %v1855_v37  ;;  %v1894_v40 = vmul.f32 0.70710677, %v3982_v59  ;;  %v1801_v53 = vadd.f32 %v1800_v51, %v3968_v2 }
 0x5d6   : > { %v1984_v9 = vmul.f32 %v1952_v47, %v1856_v18  ;;  %2876 = verf.f32 %v1893_v49  ;;  %v1895_v11 = vmul.f32 0.70710677, %v1799_v3 }
 0x5d7   : > { %v2013_v29 = vpack.c.bf16 %v1983_v0, %v1981_v35  ;;  %2878 = verf.f32 %v1894_v40  ;;  %v1896_v22 = vmul.f32 0.70710677, %v1801_v53 }
 0x5d8   : > { %v2869_v4 = vpop.eup %2868  ;;  %v2014_v19 = vpack.c.bf16 %v1984_v9, %v1982_v8  ;;  %2880 = verf.f32 %v1895_v11  ;;  %v1861_v9 = vmul.f32 0.5, %v3979_v52 }
 0x5d9   : > { %v2871_v61 = vpop.eup %2870  ;;  %v1953_v10 = vadd.f32 1.0, %v2869_v4  ;;  %v1804_v48 = vpop.f32.mrb[28].mxu0  ;;  %2882 = verf.f32 %v1896_v22 }
 0x5da   : > { %v2873_v23 = vpop.eup %2872  ;;  %v1954_v38 = vadd.f32 1.0, %v2871_v61  ;;  %v3989_v14 = vadd.f32 %v1804_v48, %v3966_v58  ;;  %v1806_v62 = vpop.f32.mrb[29].mxu0  ;;  %2196 = vmatprep.mubr.bf16.mxu1 %v2014_v19  ;;  %v1862_v19 = vmul.f32 0.5, %v3982_v59  ;;  %v1863_v61 = vmul.f32 0.5, %v1799_v3 }
 0x5db   : > { %v2875_v26 = vpop.eup %2874  ;;  %v1955_v31 = vadd.f32 1.0, %v2873_v23  ;;  %v3992_v17 = vadd.f32 %v1806_v62, %v3968_v2  ;;  %v1808_v33 = vpop.f32.mrb[30].mxu0  ;;  %2197 = vmatmul.mubr.bf16.vlgmr.msra.gmra.mrb[16].mxu1 %v2013_v29  ;;  %v1985_v46 = vmul.f32 %v1953_v10, %v1857_v5 }
 0x5dc   : > { %v1956_v36 = vadd.f32 1.0, %v2875_v26  ;;  %v1897_v57 = vmul.f32 0.70710677, %v3989_v14  ;;  %v1810_v16 = vpop.f32.mrb[31].mxu0  ;;  %v1809_v60 = vadd.f32 %v1808_v33, %v3966_v58  ;;  %v1986_v20 = vmul.f32 %v1954_v38, %v1858_v34 }
 0x5dd   : > { %v1987_v13 = vmul.f32 %v1955_v31, %v1859_v27  ;;  %v1898_v37 = vmul.f32 0.70710677, %v3992_v17  ;;  %v1811_v43 = vadd.f32 %v1810_v16, %v3968_v2  ;;  %v1864_v38 = vmul.f32 0.5, %v1801_v53 }
 0x5de   : > { %v1988_v30 = vmul.f32 %v1956_v36, %v1860_v6  ;;  %2884 = verf.f32 %v1897_v57  ;;  %v1899_v42 = vmul.f32 0.70710677, %v1809_v60 }
 0x5df   : > { %2886 = verf.f32 %v1898_v37  ;;  %v2015_v18 = vpack.c.bf16 %v1987_v13, %v1985_v46  ;;  %v1900_v28 = vmul.f32 0.70710677, %v1811_v43 }
 0x5e0   : > { %v2877_v12 = vpop.eup %2876  ;;  %v2016_v47 = vpack.c.bf16 %v1988_v30, %v1986_v20  ;;  %2888 = verf.f32 %v1899_v42  ;;  %v1865_v30 = vmul.f32 0.5, %v3989_v14 }
 0x5e1   : > { %v2879_v49 = vpop.eup %2878  ;;  %v1814_v51 = vpop.f32.mrb[32].mxu0  ;;  %v1957_v35 = vadd.f32 1.0, %v2877_v12  ;;  %2890 = verf.f32 %v1900_v28 }
 0x5e2   : > { %v3999_v0 = vadd.f32 %v1814_v51, %v3966_v58  ;;  %v1816_v40 = vpop.f32.mrb[33].mxu0  ;;  %2204 = vmatprep.mubr.bf16.mxu1 %v2016_v47  ;;  %v2881_v8 = vpop.eup %2880  ;;  %v1958_v29 = vadd.f32 1.0, %v2879_v49  ;;  %v1866_v47 = vmul.f32 0.5, %v3992_v17  ;;  %v1867_v49 = vmul.f32 0.5, %v1809_v60 }
 0x5e3   : > { %v4003_v11 = vadd.f32 %v1816_v40, %v3968_v2  ;;  %v1818_v4 = vpop.f32.mrb[34].mxu0  ;;  %2205 = vmatmul.mubr.bf16.gmra.mrb[20].mxu1 %v2015_v18  ;;  %v2883_v22 = vpop.eup %2882  ;;  %v1959_v10 = vadd.f32 1.0, %v2881_v8  ;;  %v1989_v5 = vmul.f32 %v1957_v35, %v1861_v9  ;;  %v1868_v8 = vmul.f32 0.5, %v1811_v43 }
 0x5e4   : > { %v1901_v48 = vmul.f32 0.70710677, %v3999_v0  ;;  %v1820_v23 = vpop.f32.mrb[35].mxu0  ;;  %v1960_v62 = vadd.f32 1.0, %v2883_v22  ;;  %v4009_v52 = vadd.f32 %v1818_v4, %v3966_v58  ;;  %v1990_v33 = vmul.f32 %v1958_v29, %v1862_v19 }
 0x5e5   : > { %v1902_v26 = vmul.f32 0.70710677, %v4003_v11  ;;  %v1991_v27 = vmul.f32 %v1959_v10, %v1863_v61  ;;  %v4012_v31 = vadd.f32 %v1820_v23, %v3968_v2 }
 0x5e6   : > { %2892 = verf.f32 %v1901_v48  ;;  %v1992_v59 = vmul.f32 %v1960_v62, %v1864_v38  ;;  %v1903_v3 = vmul.f32 0.70710677, %v4009_v52 }
 0x5e7   : > { %2894 = verf.f32 %v1902_v26  ;;  %v1904_v53 = vmul.f32 0.70710677, %v4012_v31  ;;  %v2017_v6 = vpack.c.bf16 %v1991_v27, %v1989_v5 }
 0x5e8   : > { %v2885_v34 = vpop.eup %2884  ;;  %2896 = verf.f32 %v1903_v3  ;;  %v2018_v16 = vpack.c.bf16 %v1992_v59, %v1990_v33  ;;  %v1869_v59 = vmul.f32 0.5, %v3999_v0 }
 0x5e9   : > { %v2887_v36 = vpop.eup %2886  ;;  %v1824_v57 = vpop.f32.mrb[36].mxu0  ;;  %v1961_v46 = vadd.f32 1.0, %v2885_v34  ;;  %2898 = verf.f32 %v1904_v53 }
 0x5ea   : > { %v4017_v13 = vadd.f32 %v1824_v57, %v3966_v58  ;;  %v1826_v37 = vpop.f32.mrb[37].mxu0  ;;  %v2889_v20 = vpop.eup %2888  ;;  %v1962_v42 = vadd.f32 1.0, %v2887_v36  ;;  %2212 = vmatprep.mubr.bf16.mxu1 %v2018_v16  ;;  %v1870_v36 = vmul.f32 0.5, %v4003_v11  ;;  %v1871_v57 = vmul.f32 0.5, %v4009_v52 }
 0x5eb   : > { %v4021_v18 = vadd.f32 %v1826_v37, %v3968_v2  ;;  %v1828_v12 = vpop.f32.mrb[38].mxu0  ;;  %v2891_v28 = vpop.eup %2890  ;;  %v1963_v51 = vadd.f32 1.0, %v2889_v20  ;;  %2213 = vmatmul.mubr.bf16.gmra.mrb[24].mxu1 %v2017_v6  ;;  %v1993_v4 = vmul.f32 %v1961_v46, %v1865_v30  ;;  %v1872_v20 = vmul.f32 0.5, %v4012_v31 }
 0x5ec   : > { %v1905_v35 = vmul.f32 0.70710677, %v4017_v13  ;;  %v1830_v40 = vpop.f32.mrb[39].mxu0  ;;  %v1964_v9 = vadd.f32 1.0, %v2891_v28  ;;  %v4027_v14 = vadd.f32 %v1828_v12, %v3966_v58  ;;  %v1994_v17 = vmul.f32 %v1962_v42, %v1866_v47 }
 0x5ed   : > { %v1906_v29 = vmul.f32 0.70710677, %v4021_v18  ;;  %v1995_v22 = vmul.f32 %v1963_v51, %v1867_v49  ;;  %v4030_v19 = vadd.f32 %v1830_v40, %v3968_v2 }
 0x5ee   : > { %2900 = verf.f32 %v1905_v35  ;;  %v1996_v60 = vmul.f32 %v1964_v9, %v1868_v8  ;;  %v1907_v61 = vmul.f32 0.70710677, %v4027_v14 }
 0x5ef   : > { %2902 = verf.f32 %v1906_v29  ;;  %v1908_v43 = vmul.f32 0.70710677, %v4030_v19  ;;  %v2019_v48 = vpack.c.bf16 %v1995_v22, %v1993_v4 }
 0x5f0   : > { %v2893_v10 = vpop.eup %2892  ;;  %2904 = verf.f32 %v1907_v61  ;;  %v2020_v62 = vpack.c.bf16 %v1996_v60, %v1994_v17  ;;  %v1873_v60 = vmul.f32 0.5, %v4017_v13 }
 0x5f1   : > { %v2895_v23 = vpop.eup %2894  ;;  %v1834_v38 = vpop.f32.mrb[40].mxu0  ;;  %v1965_v26 = vadd.f32 1.0, %v2893_v10  ;;  %2906 = verf.f32 %v1908_v43 }
 0x5f2   : > { %v4035_v5 = vadd.f32 %v1834_v38, %v3966_v58  ;;  %v1836_v27 = vpop.f32.mrb[41].mxu0  ;;  %v2897_v33 = vpop.eup %2896  ;;  %v1966_v3 = vadd.f32 1.0, %v2895_v23  ;;  %2220 = vmatprep.mubr.bf16.mxu1 %v2020_v62  ;;  %v1874_v23 = vmul.f32 0.5, %v4021_v18  ;;  %v1875_v38 = vmul.f32 0.5, %v4027_v14 }
 0x5f3   : > { %v4039_v34 = vadd.f32 %v1836_v27, %v3968_v2  ;;  %v1838_v53 = vpop.f32.mrb[42].mxu0  ;;  %v2899_v6 = vpop.eup %2898  ;;  %v1967_v16 = vadd.f32 1.0, %v2897_v33  ;;  %2221 = vmatmul.mubr.bf16.gmra.mrb[28].mxu1 %v2019_v48  ;;  %v1997_v12 = vmul.f32 %v1965_v26, %v1869_v59  ;;  %v1876_v33 = vmul.f32 0.5, %v4030_v19 }
 0x5f4   : > { %v1909_v46 = vmul.f32 0.70710677, %v4035_v5  ;;  %v1840_v37 = vpop.f32.mrb[43].mxu0  ;;  %v1968_v30 = vadd.f32 1.0, %v2899_v6  ;;  %v1839_v42 = vadd.f32 %v1838_v53, %v3966_v58  ;;  %v1998_v11 = vmul.f32 %v1966_v3, %v1870_v36 }
 0x5f5   : > { %v1910_v0 = vmul.f32 0.70710677, %v4039_v34  ;;  %v1999_v28 = vmul.f32 %v1967_v16, %v1871_v57  ;;  %v1841_v47 = vadd.f32 %v1840_v37, %v3968_v2 }
 0x5f6   : > { %2908 = verf.f32 %v1909_v46  ;;  %v2000_v49 = vmul.f32 %v1968_v30, %v1872_v20  ;;  %v1911_v52 = vmul.f32 0.70710677, %v1839_v42 }
 0x5f7   : > { %2910 = verf.f32 %v1910_v0  ;;  %v1912_v35 = vmul.f32 0.70710677, %v1841_v47  ;;  %v2021_v40 = vpack.c.bf16 %v1999_v28, %v1997_v12  ;;  %v1877_v28 = vmul.f32 0.5, %v4035_v5 }
 0x5f8   : > { %v2901_v51 = vpop.eup %2900  ;;  %2912 = verf.f32 %v1911_v52  ;;  %v2022_v9 = vpack.c.bf16 %v2000_v49, %v1998_v11  ;;  %v1879_v11 = vmul.f32 0.5, %v1839_v42  ;;  %v1878_v49 = vmul.f32 0.5, %v4039_v34 }
 0x5f9   : > { %v2903_v8 = vpop.eup %2902  ;;  %v1844_v31 = vpop.f32.mrb[44].mxu0  ;;  %v1969_v29 = vadd.f32 1.0, %v2901_v51  ;;  %2914 = verf.f32 %v1912_v35  ;;  %v1880_v52 = vmul.f32 0.5, %v1841_v47 }
 0x5fa   : > { %v1845_v4 = vadd.f32 %v1844_v31, %v3966_v58  ;;  %v1846_v22 = vpop.f32.mrb[45].mxu0  ;;  %v2905_v17 = vpop.eup %2904  ;;  %v1970_v61 = vadd.f32 1.0, %v2903_v8  ;;  %2228 = vmatprep.mubr.bf16.mxu1 %v2022_v9 }
 0x5fb   : > { %v1847_v10 = vadd.f32 %v1846_v22, %v3968_v2  ;;  %v1848_v43 = vpop.f32.mrb[46].mxu0  ;;  %v2907_v48 = vpop.eup %2906  ;;  %v1971_v62 = vadd.f32 1.0, %v2905_v17  ;;  %2229 = vmatmul.mubr.bf16.gmra.mrb[32].mxu1 %v2021_v40  ;;  %v2001_v53 = vmul.f32 %v1969_v29, %v1873_v60 }
 0x5fc   : > { %v1913_v26 = vmul.f32 0.70710677, %v1845_v4  ;;  %v1850_v27 = vpop.f32.mrb[47].mxu0  ;;  %v1972_v59 = vadd.f32 1.0, %v2907_v48  ;;  %v1849_v13 = vadd.f32 %v1848_v43, %v3966_v58  ;;  %v2002_v57 = vmul.f32 %v1970_v61, %v1874_v23 }
 0x5fd   : > { %v1914_v3 = vmul.f32 0.70710677, %v1847_v10  ;;  %v2003_v6 = vmul.f32 %v1971_v62, %v1875_v38  ;;  %v1851_v36 = vadd.f32 %v1850_v27, %v3968_v2  ;;  %v1881_v42 = vmul.f32 0.5, %v1845_v4  ;;  %v4061_v4 = vld [vmem:[%s4202_s12] ss:$0 sm:$0xff] }
 0x5fe   : > { %2916 = verf.f32 %v1913_v26  ;;  %v2004_v16 = vmul.f32 %v1972_v59, %v1876_v33  ;;  %v1915_v18 = vmul.f32 0.70710677, %v1849_v13  ;;  %v1883_v48 = vmul.f32 0.5, %v1849_v13 }
 0x5ff   : > { %2918 = verf.f32 %v1914_v3  ;;  %v1916_v46 = vmul.f32 0.70710677, %v1851_v36  ;;  %v2023_v37 = vpack.c.bf16 %v2003_v6, %v2001_v53  ;;  %v1882_v34 = vmul.f32 0.5, %v1847_v10 }
 0x600   : > { %v2909_v14 = vpop.eup %2908  ;;  %2920 = verf.f32 %v1915_v18  ;;  %v2024_v30 = vpack.c.bf16 %v2004_v16, %v2002_v57  ;;  %v1884_v47 = vmul.f32 0.5, %v1851_v36 }
 0x601   : > { %v2911_v20 = vpop.eup %2910  ;;  %v1973_v19 = vadd.f32 1.0, %v2909_v14  ;;  %2922 = verf.f32 %v1916_v46 }
 0x602   : > { %v2913_v0 = vpop.eup %2912  ;;  %v1974_v12 = vadd.f32 1.0, %v2911_v20  ;;  %2236 = vmatprep.mubr.bf16.mxu1 %v2024_v30 }
 0x603   : > { %v2915_v58 = vpop.eup %2914  ;;  %v1975_v2 = vadd.f32 1.0, %v2913_v0  ;;  %2237 = vmatmul.mubr.bf16.gmra.mrb[36].mxu1 %v2023_v37  ;;  %v2005_v35 = vmul.f32 %v1973_v19, %v1877_v28 }
 0x604   : > { %v1976_v51 = vadd.f32 1.0, %v2915_v58  ;;  %v2006_v8 = vmul.f32 %v1974_v12, %v1878_v49 }
 0x605   : > { %v2007_v40 = vmul.f32 %v1975_v2, %v1879_v11 }
 0x606   : > { %v2008_v31 = vmul.f32 %v1976_v51, %v1880_v52 }
 0x607   : > { %v2025_v29 = vpack.c.bf16 %v2007_v40, %v2005_v35 }
 0x608   : > { %v2917_v9 = vpop.eup %2916  ;;  %v2026_v17 = vpack.c.bf16 %v2008_v31, %v2006_v8 }
 0x609   : > { %v2919_v22 = vpop.eup %2918  ;;  %v1977_v60 = vadd.f32 1.0, %v2917_v9 }
 0x60a   : > { %v2921_v61 = vpop.eup %2920  ;;  %v1978_v43 = vadd.f32 1.0, %v2919_v22  ;;  %2244 = vmatprep.mubr.bf16.mxu1 %v2026_v17 }
 0x60b   : > { %v2923_v5 = vpop.eup %2922  ;;  %v1979_v23 = vadd.f32 1.0, %v2921_v61  ;;  %2245 = vmatmul.mubr.bf16.gmra.mrb[40].mxu1 %v2025_v29  ;;  %v2009_v62 = vmul.f32 %v1977_v60, %v1881_v42 }
 0x60c   : > { %v1980_v38 = vadd.f32 1.0, %v2923_v5  ;;  %v2010_v27 = vmul.f32 %v1978_v43, %v1882_v34 }
 0x60d   : > { %v2011_v26 = vmul.f32 %v1979_v23, %v1883_v48 }
 0x60e   : > { %v2012_v33 = vmul.f32 %v1980_v38, %v1884_v47 }
 0x60f   : > { %v2027_v59 = vpack.c.bf16 %v2011_v26, %v2009_v62 }
 0x610   : > { %v2028_v3 = vpack.c.bf16 %v2012_v33, %v2010_v27 }
 0x612   : > { %2252 = vmatprep.mubr.bf16.mxu1 %v2028_v3 }
 0x613   : > { %2253 = vmatmul.mubr.bf16.gmra.mrb[44].mxu1 %v2027_v59 }
 0x6ae   : > { %v2520_v53 = vpop.f32.mrb[16].mxu1 }
 0x6af   : > { %v2521_v13 = vpop.f32.mrb[17].mxu1 }
 0x6b0   : > { %v2522_v6 = vadd.f32 %v2521_v13, %v2520_v53  ;;  %v2523_v10 = vpop.f32.mrb[18].mxu1 }
 0x6b1   : > { %v2524_v36 = vpop.f32.mrb[19].mxu1 }
 0x6b2   : > { %v2199_v57 = vadd.f32 %v2522_v6, %v4061_v4  ;;  %v2525_v16 = vadd.f32 %v2524_v36, %v2523_v10 }
 0x6b4   : > { %v2261_v18 = vadd.f32 %v2199_v57, %v3659_v45  ;;  %v2202_v14 = vadd.f32 %v2525_v16, %v4061_v4 }
 0x6b6   : > { %2277 = vst [vmem:[%s4068_s19] sm:$0xff] %v2261_v18  ;;  %v2262_v46 = vadd.f32 %v2202_v14, %v3664_v24  ;;  %v2526_v37 = vpop.f32.mrb[20].mxu1 }
 0x6b7   : > { %v2527_v20 = vpop.f32.mrb[21].mxu1 }
 0x6b8   : > { %2278 = vst [vmem:[%s4068_s19 + $0x8] sm:$0xff] %v2262_v46  ;;  %v2528_v30 = vadd.f32 %v2527_v20, %v2526_v37  ;;  %v2529_v19 = vpop.f32.mrb[22].mxu1 }
 0x6b9   : > { %v2530_v0 = vpop.f32.mrb[23].mxu1 }
 0x6ba   : > { %v2207_v45 = vadd.f32 %v2528_v30, %v4061_v4  ;;  %v2531_v12 = vadd.f32 %v2530_v0, %v2529_v19 }
 0x6bc   : > { %v2263_v58 = vadd.f32 %v2207_v45, %v3670_v21  ;;  %v2210_v28 = vadd.f32 %v2531_v12, %v4061_v4 }
 0x6be   : > { %2279 = vst [vmem:[%s4068_s19 + $0x10] sm:$0xff] %v2263_v58  ;;  %v2264_v11 = vadd.f32 %v2210_v28, %v3667_v25  ;;  %v2532_v2 = vpop.f32.mrb[24].mxu1 }
 0x6bf   : > { %v2533_v24 = vpop.f32.mrb[25].mxu1 }
 0x6c0   : > { %2280 = vst [vmem:[%s4068_s19 + $0x18] sm:$0xff] %v2264_v11  ;;  %v2534_v49 = vadd.f32 %v2533_v24, %v2532_v2  ;;  %v2535_v52 = vpop.f32.mrb[26].mxu1 }
 0x6c1   : > { %v2536_v51 = vpop.f32.mrb[27].mxu1 }
 0x6c2   : > { %v2215_v35 = vadd.f32 %v2534_v49, %v4061_v4  ;;  %v2537_v40 = vadd.f32 %v2536_v51, %v2535_v52 }
 0x6c4   : > { %v2265_v8 = vadd.f32 %v2215_v35, %v3677_v39  ;;  %v2218_v21 = vadd.f32 %v2537_v40, %v4061_v4 }
 0x6c6   : > { %2281 = vst [vmem:[%s4068_s19 + $0x20] sm:$0xff] %v2265_v8  ;;  %v2266_v31 = vadd.f32 %v2218_v21, %v3680_v41  ;;  %v2538_v9 = vpop.f32.mrb[28].mxu1 }
 0x6c7   : > { %v2539_v25 = vpop.f32.mrb[29].mxu1 }
 0x6c8   : > { %2282 = vst [vmem:[%s4068_s19 + $0x28] sm:$0xff] %v2266_v31  ;;  %v2540_v29 = vadd.f32 %v2539_v25, %v2538_v9  ;;  %v2541_v22 = vpop.f32.mrb[30].mxu1 }
 0x6c9   : > { %v2542_v17 = vpop.f32.mrb[31].mxu1 }
 0x6ca   : > { %v2223_v60 = vadd.f32 %v2540_v29, %v4061_v4  ;;  %v2543_v61 = vadd.f32 %v2542_v17, %v2541_v22 }
 0x6cc   : > { %v2267_v43 = vadd.f32 %v2223_v60, %v3684_v44  ;;  %v2226_v39 = vadd.f32 %v2543_v61, %v4061_v4 }
 0x6ce   : > { %2283 = vst [vmem:[%s4068_s19 + $0x30] sm:$0xff] %v2267_v43  ;;  %v2268_v5 = vadd.f32 %v2226_v39, %v3686_v32  ;;  %v2544_v42 = vpop.f32.mrb[32].mxu1 }
 0x6cf   : > { %v2545_v41 = vpop.f32.mrb[33].mxu1 }
 0x6d0   : > { %2284 = vst [vmem:[%s4068_s19 + $0x38] sm:$0xff] %v2268_v5  ;;  %v2546_v48 = vadd.f32 %v2545_v41, %v2544_v42  ;;  %v2547_v23 = vpop.f32.mrb[34].mxu1 }
 0x6d1   : > { %v2548_v34 = vpop.f32.mrb[35].mxu1 }
 0x6d2   : > { %v2231_v47 = vadd.f32 %v2546_v48, %v4061_v4  ;;  %v2549_v38 = vadd.f32 %v2548_v34, %v2547_v23 }
 0x6d4   : > { %v2269_v62 = vadd.f32 %v2231_v47, %v3693_v55  ;;  %v2234_v44 = vadd.f32 %v2549_v38, %v4061_v4 }
 0x6d6   : > { %2285 = vst [vmem:[%s4068_s19 + $0x40] sm:$0xff] %v2269_v62  ;;  %v2270_v26 = vadd.f32 %v2234_v44, %v3696_v50  ;;  %v2550_v27 = vpop.f32.mrb[36].mxu1 }
 0x6d7   : > { %v2551_v32 = vpop.f32.mrb[37].mxu1 }
 0x6d8   : > { %2286 = vst [vmem:[%s4068_s19 + $0x48] sm:$0xff] %v2270_v26  ;;  %v2552_v33 = vadd.f32 %v2551_v32, %v2550_v27  ;;  %v2553_v59 = vpop.f32.mrb[38].mxu1 }
 0x6d9   : > { %v2554_v3 = vpop.f32.mrb[39].mxu1 }
 0x6da   : > { %v2239_v53 = vadd.f32 %v2552_v33, %v4061_v4  ;;  %v2555_v13 = vadd.f32 %v2554_v3, %v2553_v59 }
 0x6dc   : > { %v2271_v6 = vadd.f32 %v2239_v53, %v3700_v63  ;;  %v2242_v55 = vadd.f32 %v2555_v13, %v4061_v4 }
 0x6de   : > { %2287 = vst [vmem:[%s4068_s19 + $0x50] sm:$0xff] %v2271_v6  ;;  %v2272_v10 = vadd.f32 %v2242_v55, %v3702_v1  ;;  %v2556_v36 = vpop.f32.mrb[40].mxu1 }
 0x6df   : > { %v2557_v50 = vpop.f32.mrb[41].mxu1 }
 0x6e0   : > { %2288 = vst [vmem:[%s4068_s19 + $0x58] sm:$0xff] %v2272_v10  ;;  %v2558_v57 = vadd.f32 %v2557_v50, %v2556_v36  ;;  %v2559_v16 = vpop.f32.mrb[42].mxu1 }
 0x6e1   : > { %v2560_v18 = vpop.f32.mrb[43].mxu1 }
 0x6e2   : > { %v2247_v14 = vadd.f32 %v2558_v57, %v4061_v4  ;;  %v2561_v46 = vadd.f32 %v2560_v18, %v2559_v16 }
 0x6e4   : > { %v2273_v37 = vadd.f32 %v2247_v14, %v3709_v54  ;;  %v2250_v63 = vadd.f32 %v2561_v46, %v4061_v4 }
 0x6e6   : > { %2289 = vst [vmem:[%s4068_s19 + $0x60] sm:$0xff] %v2273_v37  ;;  %v2274_v20 = vadd.f32 %v2250_v63, %v3712_v56  ;;  %v2562_v1 = vpop.f32.mrb[44].mxu1 }
 0x6e7   : > { %v2563_v30 = vpop.f32.mrb[45].mxu1 }
 0x6e8   : > { %2290 = vst [vmem:[%s4068_s19 + $0x68] sm:$0xff] %v2274_v20  ;;  %v2564_v19 = vadd.f32 %v2563_v30, %v2562_v1  ;;  %v2565_v0 = vpop.f32.mrb[46].mxu1 }
 0x6e9   : > { %v2566_v45 = vpop.f32.mrb[47].mxu1 }
 0x6ea   : > { %v2255_v12 = vadd.f32 %v2564_v19, %v4061_v4  ;;  %v2567_v58 = vadd.f32 %v2566_v45, %v2565_v0 }
 0x6ec   : > { %v2275_v54 = vadd.f32 %v2255_v12, %v3716_v7  ;;  %v2258_v28 = vadd.f32 %v2567_v58, %v4061_v4 }
 0x6ee   : > { %2291 = vst [vmem:[%s4068_s19 + $0x70] sm:$0xff] %v2275_v54  ;;  %v2276_v56 = vadd.f32 %v2258_v28, %v3718_v15 }
 0x6f0   : > { %2292 = vst [vmem:[%s4068_s19 + $0x78] sm:$0xff] %v2276_v56 }
 0x6f1   : > { %3039 = shalt.err (!%p3036_p7)
}
 0x6f2   : > { %s3040_s12 = scalar_lea.hbm %s4117_s21, 2048  ;;  %s3044_s25 = scalar_lea.hbm %s4203_s17, 8192 }
 0x6f3   : > { %p3041_p9 = scmp.ne.s32.totalorder %s4117_s21, %s3040_s12  ;;  %p3045_p5 = scmp.lt.u32.totalorder %s4117_s21, %s4203_s17 }
 0x6f4   : > { %p3046_p10 = scmp.lt.u32.totalorder %s3044_s25, %s3040_s12  ;;  %p3048_p1 = scmp.lt.u32.totalorder %s3040_s12, %s4117_s21 }
 0x6f5   : > { %p3042_p12 = pnand %p3041_p9, %p3291_p4 }
 0x6f6   : > { %p3047_p11 = por %p3046_p10, %p3045_p5 }
 0x6f7   : > { %p3043_p0 = pneg %p3042_p12 }
 0x6f8   : > { %p3049_p2 = por %p3048_p1, %p3047_p11 }
 0x6fa   : > { %p3050_p6 = pnand %p3049_p2, %p3043_p0 }
 0x6fc   : > { %3053 = shalt.err (!%p3050_p6)
}
 0x6fd   : > { %s3107_s14 = smov 128   ;;  %s3108_s20 = smov 8  }
 0x6fe   : > { %2642 = dma.vmem_to_hbm [thread:$0]  (%p3291_p4), %s4119_s23, 2048, %s4117_s21, %s2294_s29, %s3107_s14, %s3107_s14, %s3108_s20  }
 0x6ff PF: > { %s4204_s10 = sld [smem:[#allocation12_spill]]  ;;  %s4205_s19 = sld [smem:[#allocation13_spill]] }
 0x700   : > { %p2664_p8 = scmp.ge.s32.totalorder %s3096_s28, 2 }
 0x705   : > { %s2322_s30 = sand.u32 1, %s4204_s10   ;;  %p4206_p13 = scmp.ne.s32.totalorder %s4205_s19, 0 }
 0x706   : > { %s2323_s12 = scalar_lea.sflag [#allocation4], %s2322_s30 }
 0x707   : > { %p2656_p3 = pnand %p2664_p8, %p4206_p13 }
 0x709   : > { %3079 = dma.done.wait (!%p2656_p3), %s2323_s12, 2048  }
 0x70a   : > { %3081 = vsyncadd (!%p2656_p3), %s2323_s12, 4294965248  ;;  %p27_p7 = scmp.ge.s32.totalorder %s3281_s13, 6   ;;  %s4207_s25 = smov %s3088_s26 }
 0x70b   : > { %s4208_s26 = smov %s3092_s27  ;;  %s4209_s27 = smov %s3297_s24 }
 0x70c   : > { %s4210_s28 = smov %s3281_s13  ;;  %29 = sbr.rel (!%p27_p7) target bundleno = 10 (0xa), region = 125 }
 0x713   :  { %2328 = vsyncpa [#allocation3], 1 }
 0x714   :  { %2330 = vsyncpa [#allocation3 + $0x1], 1 }
 0x715   :  { %2331 = vsyncpa [#allocation6], 1 }
 0x716   :  { %2332 = vsyncpa [#allocation4], 1 }
 0x717   :  { %2334 = vsyncpa [#allocation4 + $0x1], 1 }

// kernel: tpu_custom_call.1
= control target key start
LH: loop header
LB: loop body
LE: loop exit
PB: predicated region body
PF: predicated region fallthrough
CT: control target
= control target key end

     0   :  { %s4165_s0 = inlined_call_operand.hbm [shape: f32[4,128,128], index: 0, kind: input, shape index: {}]   ;;  %s4166_s1 = inlined_call_operand.vmem [shape: f32[1,128], index: 1, kind: input, shape index: {}]   ;;  %s4167_s2 = inlined_call_operand.vmem [shape: f32[1,128], index: 2, kind: input, shape index: {}]   ;;  %s4168_s3 = inlined_call_operand.hbm [shape: bf16[128,128], index: 3, kind: input, shape index: {}]   ;;  %s4169_s4 = inlined_call_operand.vmem [shape: f32[128,1], index: 4, kind: input, shape index: {}]   ;;  %s4170_s5 = inlined_call_operand.hbm [shape: bf16[128,128], index: 5, kind: input, shape index: {}]   ;;  %s4171_s6 = inlined_call_operand.vmem [shape: f32[128,1], index: 6, kind: input, shape index: {}]   ;;  %s4172_s7 = inlined_call_operand.vmem [shape: f32[1,128], index: 7, kind: input, shape index: {}]   ;;  %s4173_s8 = inlined_call_operand.vmem [shape: f32[1,128], index: 8, kind: input, shape index: {}]   ;;  %s4174_s9 = inlined_call_operand.vmem [shape: bf16[128,256], index: 9, kind: input, shape index: {}]   ;;  %s4175_s10 = inlined_call_operand.vmem [shape: f32[1,256], index: 10, kind: input, shape index: {}]   ;;  %s4176_s11 = inlined_call_operand.vmem [shape: bf16[256,128], index: 11, kind: input, shape index: {}]   ;;  %s4177_s12 = inlined_call_operand.vmem [shape: f32[1,128], index: 12, kind: input, shape index: {}]   ;;  %s4178_s13 = inlined_call_operand.hbm [shape: f32[4,128,128], index: 13, kind: output, shape index: {}]  }
   0x1   :  { %4185 = sst [smem:[#allocation14_spill]] %s4175_s10 }
   0x2   :  { %4186 = sst [smem:[#allocation15_spill]] %s4177_s12 }
   0x3   :  { %4187 = sst [smem:[#allocation16_spill]] %s4178_s13 }
   0x4   :  { %18 = vsyncpa [#allocation3], 0 }
   0x5   :  { %20 = vsyncpa [#allocation3 + $0x1], 0 }
   0x6   :  { %21 = vsyncpa [#allocation6], 0 }
   0x7   :  { %22 = vsyncpa [#allocation4], 0 }
   0x8   :  { %24 = vsyncpa [#allocation4 + $0x1], 0  ;;  %s3179_s25 = smov 0   ;;  %s3181_s26 = smov 0  }
   0x9   :  { %s3183_s27 = smov 0   ;;  %s3185_s28 = smov 0  }
   0xa LB: > { %4188 = sst [smem:[#allocation12_spill]] %s3084_s25  ;;  %s3200_s29 = sadd.s32 4294967295, %s3096_s28   ;;  %s3096_s28 = sphi %s3185_s28, %s4210_s28   ;;  %s3092_s27 = sphi %s3183_s27, %s4209_s27   ;;  %s3088_s26 = sphi %s3181_s26, %s4208_s26   ;;  %s3084_s25 = sphi %s3179_s25, %s4207_s25  }
   0xb   : > { %s2399_s30 = sadd.s32 4294967294, %s3096_s28   ;;  %p50_p0 = scmp.ne.s32.totalorder %s3088_s26, %s3084_s25 }
   0xc   : > { %p4181_p1 = scmp.eq.s32.totalorder %s3200_s29, 0  ;;  %p332_p3 = scmp.eq.s32.totalorder %s2399_s30, 3 }
   0xd   : > { %p2400_p5 = scmp.ge.s32.totalorder %s3096_s28, 1  ;;  %p339_p7 = scmp.lt.s32.totalorder %s3096_s28, 5 }
   0xe   : > { %p3209_p4 = por %p4181_p1, %p50_p0  ;;  %p3214_p6 = por %p332_p3, %p50_p0 }
   0xf   : > { %p3219_p8 = pnand %p2400_p5, %p339_p7  ;;  %s3098_s17 = smov [#allocation5]  }
  0x10   : > { %s4189_s14 = scalar_select %p3209_p4, 1, 0 }
  0x11   : > { %s4190_s15 = scalar_select %p3214_p6, 1, 0 }
  0x12   : > { %s4192_s16 = scalar_select %p3219_p8, 1, 0 }
  0x13   : > { %4191 = sst [smem:[#allocation13_spill]] %s4190_s15  ;;  %s357_s18 = sshll.u32 %s3098_s17, 4  ;;  %s358_s18 = int_to_ptr.vmem [resolvable:$true] %s357_s18 }
  0x14   : > { %p2644_p9 = pneg %p3219_p8  ;;  %s3099_s20 = smov [#allocation7]  }
  0x15   : > { %s373_s21 = sshll.u32 %s3099_s20, 4  ;;  %s2940_s24 = scalar_lea.hbm %s4168_s3, 1024  ;;  %s3231_s21 = int_to_ptr.vmem [resolvable:$true] %s373_s21 }
  0x16   : > { %p3227_p10 = pnand %p2644_p9, %p4181_p1  ;;  %p2941_p11 = scmp.ne.s32.totalorder %s4168_s3, %s2940_s24 }
  0x17   : > { %p2947_p3 = scmp.lt.u32.totalorder %s2940_s24, %s4168_s3 }
  0x18   : > { %p2942_p12 = pneg %p3227_p10 }
  0x1a   : > { %p2943_p13 = pnand %p2942_p12, %p2941_p11 }
  0x1c   : > { %p2944_p0 = pneg %p2943_p13 }
  0x1e   : > { %p2949_p5 = pnand %p2947_p3, %p2944_p0 }
  0x20   : > { %2952 = shalt.err (!%p2949_p5)
}
  0x21   : > { %s2953_s20 = scalar_lea.vmem %s358_s18, 1024  ;;  %p2961_p2 = scmp.lt.s32.totalorder %s358_s18, %s358_s18 }
  0x22   : > { %p2954_p7 = scmp.ne.s32.totalorder %s358_s18, %s2953_s20  ;;  %p2962_p6 = scmp.lt.s32.totalorder %s2953_s20, %s2953_s20 }
  0x24   : > { %p2956_p9 = pnand %p2954_p7, %p2942_p12  ;;  %p2963_p4 = por %p2962_p6, %p2961_p2 }
  0x26   : > { %p2957_p1 = pneg %p2956_p9 }
  0x28   : > { %p2964_p8 = pnand %p2963_p4, %p2957_p1 }
  0x2a   : > { %2967 = shalt.err (!%p2964_p8)
}
  0x2b   : > { %s3100_s22 = smov 64   ;;  %s3101_s23 = smov 4  }
  0x2c   : > { %2647 = dma.hbm_to_vmem [thread:$0]  (!%p3227_p10), %s4168_s3, 1024, %s358_s18, [#allocation6], %s3100_s22, %s3100_s22, %s3101_s23  }
  0x2d   : > { %s2968_s17 = scalar_lea.hbm %s4170_s5, 1024 }
  0x2e   : > { %p2969_p11 = scmp.ne.s32.totalorder %s4170_s5, %s2968_s17  ;;  %p2975_p4 = scmp.lt.u32.totalorder %s2968_s17, %s4170_s5 }
  0x30   : > { %p2971_p1 = pnand %p2969_p11, %p2942_p12 }
  0x32   : > { %p2972_p2 = pneg %p2971_p1 }
  0x34   : > { %p2977_p6 = pnand %p2975_p4, %p2972_p2 }
  0x36   : > { %2980 = shalt.err (!%p2977_p6)
}
  0x37   : > { %s2981_s18 = scalar_lea.vmem %s3231_s21, 1024  ;;  %p2989_p3 = scmp.lt.s32.totalorder %s3231_s21, %s3231_s21 }
  0x38   : > { %p2982_p8 = scmp.ne.s32.totalorder %s3231_s21, %s2981_s18  ;;  %p2990_p5 = scmp.lt.s32.totalorder %s2981_s18, %s2981_s18 }
  0x3a   : > { %p2984_p13 = pnand %p2982_p8, %p2942_p12  ;;  %p2991_p7 = por %p2990_p5, %p2989_p3 }
  0x3c   : > { %p2985_p0 = pneg %p2984_p13 }
  0x3e   : > { %p2992_p9 = pnand %p2991_p7, %p2985_p0 }
  0x40   : > { %2995 = shalt.err (!%p2992_p9)
}
  0x41   : > { %2650 = dma.hbm_to_vmem [thread:$0]  (!%p3227_p10), %s4170_s5, 1024, %s3231_s21, [#allocation6], %s3100_s22, %s3100_s22, %s3101_s23  }
  0x42   : > { %s3281_s13 = sadd.s32 1, %s3096_s28   ;;  %s37_s19 = sadd.s32 1, %s3092_s27 }
  0x43   : > { %s34_s25 = ssub.s32 %s3096_s28, %s3281_s13  ;;  %p44_p12 = scmp.ne.s32.totalorder %s3092_s27, %s3088_s26 }
  0x44   : > { %p35_p11 = scmp.eq.s32.totalorder %s34_s25, 0  ;;  %p45_p1 = scmp.eq.s32.totalorder %s3096_s28, 0 }
  0x45   : > { %p4194_p2 = scmp.eq.s32.totalorder %s3200_s29, 3  ;;  %p2661_p6 = scmp.lt.s32.totalorder %s3096_s28, 4 }
  0x46   : > { %s3297_s24 = scalar_select %p35_p11, %s3092_s27, %s37_s19  }
  0x47   : > { %p3291_p4 = por %p4194_p2, %p44_p12  ;;  %p46_p8 = por %p45_p1, %p44_p12 }
  0x48   : > { %s408_s30 = sand.u32 1, %s3092_s27   ;;  %s2470_s21 = sshll.u32 %s3096_s28, 11 }
  0x49   : > { %s2404_s17 = sshll.u32 %s408_s30, 7  ;;  %s3304_s20 = scalar_lea.hbm %s4165_s0, %s2470_s21 }
  0x4a   : > { %s412_s18 = scalar_lea.vmem [#allocation2], %s2404_s17  ;;  %p3308_p10 = pnand %p2661_p6, %p46_p8 }
  0x4b   : > { %s419_s10 = sshll.u32 %s412_s18, 4  ;;  %s3312_s19 = scalar_lea.sflag [#allocation3], %s408_s30  ;;  %s3306_s10 = int_to_ptr.vmem [resolvable:$true] %s419_s10 }
  0x4c   : > { %s2996_s25 = scalar_lea.hbm %s3304_s20, 2048  ;;  %p2998_p0 = pneg %p3308_p10 }
  0x4d   : > { %p2997_p13 = scmp.ne.s32.totalorder %s3304_s20, %s2996_s25  ;;  %s3001_s22 = scalar_lea.hbm %s4165_s0, 8192 }
  0x4e   : > { %p3002_p7 = scmp.lt.u32.totalorder %s3304_s20, %s4165_s0  ;;  %p3003_p9 = scmp.lt.u32.totalorder %s3001_s22, %s2996_s25 }
  0x4f   : > { %p2999_p3 = pnand %p2998_p0, %p2997_p13  ;;  %p3005_p11 = scmp.lt.u32.totalorder %s2996_s25, %s3304_s20 }
  0x50   : > { %p3004_p12 = por %p3003_p9, %p3002_p7 }
  0x51   : > { %p3000_p5 = pneg %p2999_p3 }
  0x52   : > { %p3006_p1 = por %p3005_p11, %p3004_p12 }
  0x54   : > { %p3007_p2 = pnand %p3006_p1, %p3000_p5 }
  0x56   : > { %3010 = shalt.err (!%p3007_p2)
}
  0x57   : > { %s3011_s30 = scalar_lea.vmem %s3306_s10, 2048  ;;  %s3102_s17 = smov [#allocation2]  }
  0x58   : > { %p3012_p6 = scmp.ne.s32.totalorder %s3306_s10, %s3011_s30  ;;  %s3016_s21 = sshll.u32 %s3102_s17, 4  ;;  %s3017_s21 = int_to_ptr.vmem [resolvable:$false] %s3016_s21 }
  0x59   : > { %s3018_s23 = scalar_lea.vmem %s3017_s21, 4096  ;;  %p3019_p3 = scmp.lt.s32.totalorder %s3306_s10, %s3017_s21 }
  0x5a   : > { %p3014_p8 = pnand %p3012_p6, %p2998_p0  ;;  %p3020_p7 = scmp.lt.s32.totalorder %s3018_s23, %s3011_s30 }
  0x5c   : > { %p3015_p13 = pneg %p3014_p8  ;;  %p3021_p9 = por %p3020_p7, %p3019_p3 }
  0x5e   : > { %p3022_p12 = pnand %p3021_p9, %p3015_p13 }
  0x60   : > { %3025 = shalt.err (!%p3022_p12)
}
  0x61   : > { %s3103_s25 = smov 128   ;;  %s3104_s22 = smov 8  }
  0x62   : > { %2654 = dma.hbm_to_vmem [thread:$0]  (!%p3308_p10), %s3304_s20, 2048, %s3306_s10, %s3312_s19, %s3103_s25, %s3103_s25, %s3104_s22  }
  0x63   : > { %p4197_p0 = scmp.ne.s32.totalorder %s4192_s16, 0 }
  0x64   : > { %s3343_s18 = sand.u32 (!%p4197_p0), 1, %s3088_s26   ;;  %p4198_p5 = scmp.ne.s32.totalorder (!%p4197_p0), %s4189_s14, 0 }
  0x65   : > { %431 = sbr.rel (%p4197_p0) target bundleno = 1791 (0x6ff), region = 72  ;;  %s2408_s30 = sshll.u32 (!%p4197_p0), %s3343_s18, 7 }
  0x66   : > { %s434_s17 = scalar_lea.sflag (!%p4197_p0), [#allocation3], %s3343_s18  ;;  %s3349_s21 = scalar_lea.vmem (!%p4197_p0), [#allocation2], %s2408_s30 }
  0x6c   : > { %3071 = dma.done.wait (%p4198_p5), %s434_s17, 2048  }
  0x6d   : > { %3073 = vsyncadd (%p4198_p5), %s434_s17, 4294965248  ;;  %p4199_p10 = scmp.eq.s32.totalorder %s3200_s29, 0 }
  0x6f   : > { %3075 = dma.done.wait (%p4199_p10), [#allocation6], 2048   ;;  %p4200_p11 = pmov %p4199_p10 }
  0x70   : > { %v489_v0 = vld [vmem:[%s3349_s21] sm:$0xff]  ;;  %v491_v1 = vld [vmem:[%s3349_s21 + $0x10] sm:$0xff]  ;;  %v490_v2 = vld [vmem:[%s3349_s21 + $0x8] sm:$0xff]  ;;  %v3105_v16 = vmov 0   ;;  %s4201_s16 = sld [smem:[#allocation14_spill]]  ;;  %s4202_s12 = sld [smem:[#allocation15_spill]] }
  0x71   : > { %3077 = vsyncadd (%p4200_p11), [#allocation6], 4294965248  ;;  %507 = vadd.xlane.f32.xlu0 %v489_v0  ;;  %511 = vadd.xlane.f32.xlu1 %v491_v1  ;;  %v492_v3 = vld [vmem:[%s3349_s21 + $0x18] sm:$0xff]  ;;  %v493_v4 = vld [vmem:[%s3349_s21 + $0x20] sm:$0xff]  ;;  %s4068_s19 = scalar_lea.vmem [#allocation8], %s2408_s30  ;;  %s2471_s30 = sshll.u32 %s3200_s29, 11 }
  0x72   : > { %v494_v5 = vld [vmem:[%s3349_s21 + $0x28] sm:$0xff]  ;;  %v495_v6 = vld [vmem:[%s3349_s21 + $0x30] sm:$0xff]  ;;  %v496_v7 = vld [vmem:[%s3349_s21 + $0x38] sm:$0xff]  ;;  %2706 = vset.pattern.permute.xlu1 %v3105_v16  ;;  %s2307_s23 = sshll.u32 %s4068_s19, 4  ;;  %s4203_s17 = sld [smem:[#allocation16_spill]]  ;;  %s4119_s23 = int_to_ptr.vmem [resolvable:$true] %s2307_s23 }
  0x73   : > { %v3368_v8 = vld [vmem:[%s3349_s21 + $0x40] sm:$0xff]  ;;  %v3371_v9 = vld [vmem:[%s3349_s21 + $0x48] sm:$0xff]  ;;  %v3374_v10 = vld [vmem:[%s3349_s21 + $0x50] sm:$0xff]  ;;  %s2294_s29 = scalar_lea.sflag [#allocation4], %s3343_s18  ;;  %s3026_s14 = scalar_lea.vmem %s4119_s23, 2048 }
  0x74   : > { %v3377_v11 = vld [vmem:[%s3349_s21 + $0x58] sm:$0xff]  ;;  %v3382_v12 = vld [vmem:[%s3349_s21 + $0x60] sm:$0xff]  ;;  %v3385_v13 = vld [vmem:[%s3349_s21 + $0x68] sm:$0xff]  ;;  %p3027_p1 = scmp.ne.s32.totalorder %s4119_s23, %s3026_s14 }
  0x75   : > { %509 = vadd.xlane.f32.xlu0 %v490_v2  ;;  %513 = vadd.xlane.f32.xlu1 %v492_v3  ;;  %v3390_v14 = vld [vmem:[%s3349_s21 + $0x70] sm:$0xff]  ;;  %v3393_v15 = vld [vmem:[%s3349_s21 + $0x78] sm:$0xff] }
  0x76   : > { %p3028_p2 = pnand %p3027_p1, %p3291_p4 }
  0x78   : > { %p3029_p6 = pneg %p3028_p2 }
  0x79   : > { %515 = vadd.xlane.f32.xlu0 %v493_v4  ;;  %517 = vadd.xlane.f32.xlu1 %v494_v5 }
  0x7d   : > { %519 = vadd.xlane.f32.xlu0 %v495_v6  ;;  %521 = vadd.xlane.f32.xlu1 %v496_v7 }
  0x81   : > { %523 = vadd.xlane.f32.xlu0 %v3368_v8  ;;  %525 = vadd.xlane.f32.xlu1 %v3371_v9 }
  0x85   : > { %527 = vadd.xlane.f32.xlu0 %v3374_v10  ;;  %529 = vadd.xlane.f32.xlu1 %v3377_v11 }
  0x89   : > { %531 = vadd.xlane.f32.xlu0 %v3382_v12  ;;  %533 = vadd.xlane.f32.xlu1 %v3385_v13 }
  0x8d   : > { %535 = vadd.xlane.f32.xlu0 %v3390_v14  ;;  %537 = vadd.xlane.f32.xlu1 %v3393_v15 }
  0xfe   : > { %v508_v17 = vpop.xlane.xlu0 %507  ;;  %v512_v18 = vpop.xlane.xlu1 %511 }
  0xff   : > { %v540_v19 = vmul.f32 0.0078125, %v508_v17  ;;  %v542_v20 = vmul.f32 0.0078125, %v512_v18 }
 0x101   : > { %v3400_v21 = vsub.f32 %v489_v0, %v540_v19  ;;  %v3402_v22 = vsub.f32 %v491_v1, %v542_v20  ;;  %v754_v20 = vld [vmem:[%s4169_s4 + $0x10] sm:$0xff] }
 0x102   : > { %v510_v23 = vpop.xlane.xlu0 %509  ;;  %v514_v24 = vpop.xlane.xlu1 %513 }
 0x103   : > { %v541_v25 = vmul.f32 0.0078125, %v510_v23  ;;  %v572_v26 = vmul.f32 %v3400_v21, %v3400_v21  ;;  %v543_v27 = vmul.f32 0.0078125, %v514_v24  ;;  %v574_v28 = vmul.f32 %v3402_v22, %v3402_v22  ;;  %v755_v23 = vld [vmem:[%s4169_s4 + $0x18] sm:$0xff]  ;;  %v756_v24 = vld [vmem:[%s4169_s4 + $0x20] sm:$0xff] }
 0x105   : > { %588 = vadd.xlane.f32.xlu0 %v572_v26  ;;  %v3408_v29 = vsub.f32 %v490_v2, %v541_v25  ;;  %v3410_v30 = vsub.f32 %v492_v3, %v543_v27  ;;  %v757_v25 = vld [vmem:[%s4169_s4 + $0x28] sm:$0xff]  ;;  %v2708_v26 = vld [vmem:[#allocation5] sm:$0xff]   ;;  %v758_v27 = vld [vmem:[%s4169_s4 + $0x30] sm:$0xff] }
 0x106   : > { %v516_v31 = vpop.xlane.xlu0 %515  ;;  %v518_v32 = vpop.xlane.xlu1 %517 }
 0x107   : > { %v544_v33 = vmul.f32 0.0078125, %v516_v31  ;;  %v573_v34 = vmul.f32 %v3408_v29, %v3408_v29  ;;  %v545_v35 = vmul.f32 0.0078125, %v518_v32  ;;  %v575_v36 = vmul.f32 %v3410_v30, %v3410_v30  ;;  %v759_v31 = vld [vmem:[%s4169_s4 + $0x38] sm:$0xff]  ;;  %v2710_v32 = vld [vmem:[#allocation5 + $0x10] sm:$0xff]  }
 0x109   : > { %592 = vadd.xlane.f32.xlu0 %v574_v28  ;;  %590 = vadd.xlane.f32.xlu1 %v573_v34  ;;  %v3416_v37 = vsub.f32 %v493_v4, %v544_v33  ;;  %v3418_v38 = vsub.f32 %v494_v5, %v545_v35  ;;  %v2709_v28 = vld [vmem:[#allocation5 + $0x8] sm:$0xff]   ;;  %v760_v33 = vld [vmem:[%s4169_s4 + $0x40] sm:$0xff]  ;;  %v2711_v34 = vld [vmem:[#allocation5 + $0x18] sm:$0xff]  }
 0x10a   : > { %v520_v39 = vpop.xlane.xlu0 %519  ;;  %v522_v40 = vpop.xlane.xlu1 %521  ;;  %v761_v35 = vld [vmem:[%s4169_s4 + $0x48] sm:$0xff] }
 0x10b   : > { %v546_v41 = vmul.f32 0.0078125, %v520_v39  ;;  %v576_v42 = vmul.f32 %v3416_v37, %v3416_v37  ;;  %v547_v43 = vmul.f32 0.0078125, %v522_v40  ;;  %v577_v44 = vmul.f32 %v3418_v38, %v3418_v38  ;;  %v762_v39 = vld [vmem:[%s4169_s4 + $0x50] sm:$0xff]  ;;  %v2713_v40 = vld [vmem:[#allocation5 + $0x28] sm:$0xff]  }
 0x10d   : > { %594 = vadd.xlane.f32.xlu1 %v575_v36  ;;  %596 = vadd.xlane.f32.xlu0 %v576_v42  ;;  %v3424_v45 = vsub.f32 %v495_v6, %v546_v41  ;;  %v3426_v46 = vsub.f32 %v496_v7, %v547_v43  ;;  %v2712_v36 = vld [vmem:[#allocation5 + $0x20] sm:$0xff]   ;;  %v763_v41 = vld [vmem:[%s4169_s4 + $0x58] sm:$0xff]  ;;  %v2714_v42 = vld [vmem:[#allocation5 + $0x30] sm:$0xff]  }
 0x10e   : > { %v524_v47 = vpop.xlane.xlu0 %523  ;;  %v526_v48 = vpop.xlane.xlu1 %525  ;;  %v764_v43 = vld [vmem:[%s4169_s4 + $0x60] sm:$0xff] }
 0x10f   : > { %v548_v49 = vmul.f32 0.0078125, %v524_v47  ;;  %v578_v50 = vmul.f32 %v3424_v45, %v3424_v45  ;;  %v549_v51 = vmul.f32 0.0078125, %v526_v48  ;;  %v579_v52 = vmul.f32 %v3426_v46, %v3426_v46  ;;  %v765_v47 = vld [vmem:[%s4169_s4 + $0x68] sm:$0xff]  ;;  %v766_v48 = vld [vmem:[%s4169_s4 + $0x70] sm:$0xff] }
 0x111   : > { %598 = vadd.xlane.f32.xlu1 %v577_v44  ;;  %600 = vadd.xlane.f32.xlu0 %v578_v50  ;;  %v3433_v53 = vsub.f32 %v3368_v8, %v548_v49  ;;  %v3436_v54 = vsub.f32 %v3371_v9, %v549_v51  ;;  %v2715_v44 = vld [vmem:[#allocation5 + $0x38] sm:$0xff]   ;;  %v1290_v50 = vld [vmem:[%s4171_s6] sm:$0xff]  ;;  %v1291_v51 = vld [vmem:[%s4171_s6 + $0x8] sm:$0xff] }
 0x112   : > { %v528_v55 = vpop.xlane.xlu0 %527  ;;  %v530_v56 = vpop.xlane.xlu1 %529  ;;  %v767_v49 = vld [vmem:[%s4169_s4 + $0x78] sm:$0xff] }
 0x113   : > { %v550_v57 = vmul.f32 0.0078125, %v528_v55  ;;  %v580_v58 = vmul.f32 %v3433_v53, %v3433_v53  ;;  %v551_v59 = vmul.f32 0.0078125, %v530_v56  ;;  %v581_v60 = vmul.f32 %v3436_v54, %v3436_v54  ;;  %v1293_v55 = vld [vmem:[%s4171_s6 + $0x18] sm:$0xff]  ;;  %v1294_v56 = vld [vmem:[%s4171_s6 + $0x20] sm:$0xff] }
 0x115   : > { %602 = vadd.xlane.f32.xlu1 %v579_v52  ;;  %604 = vadd.xlane.f32.xlu0 %v580_v58  ;;  %v3443_v61 = vsub.f32 %v3374_v10, %v550_v57  ;;  %v3446_v62 = vsub.f32 %v3377_v11, %v551_v59  ;;  %v1292_v52 = vld [vmem:[%s4171_s6 + $0x10] sm:$0xff]  ;;  %v1295_v57 = vld [vmem:[%s4171_s6 + $0x28] sm:$0xff]  ;;  %v2716_v58 = vld [vmem:[#allocation7] sm:$0xff]  }
 0x116   : > { %v532_v63 = vpop.xlane.xlu0 %531  ;;  %v534_v0 = vpop.xlane.xlu1 %533  ;;  %v1296_v59 = vld [vmem:[%s4171_s6 + $0x30] sm:$0xff] }
 0x117   : > { %v552_v1 = vmul.f32 0.0078125, %v532_v63  ;;  %v582_v2 = vmul.f32 %v3443_v61, %v3443_v61  ;;  %v553_v3 = vmul.f32 0.0078125, %v534_v0  ;;  %v583_v4 = vmul.f32 %v3446_v62, %v3446_v62  ;;  %v1297_v63 = vld [vmem:[%s4171_s6 + $0x38] sm:$0xff] }
 0x119   : > { %606 = vadd.xlane.f32.xlu1 %v581_v60  ;;  %608 = vadd.xlane.f32.xlu0 %v582_v2  ;;  %v3453_v5 = vsub.f32 %v3382_v12, %v552_v1  ;;  %v3456_v6 = vsub.f32 %v3385_v13, %v553_v3  ;;  %v2717_v60 = vld [vmem:[#allocation7 + $0x8] sm:$0xff]   ;;  %v2718_v3 = vld [vmem:[#allocation7 + $0x10] sm:$0xff]  }
 0x11a   : > { %v536_v7 = vpop.xlane.xlu0 %535  ;;  %v538_v8 = vpop.xlane.xlu1 %537 }
 0x11b   : > { %v554_v9 = vmul.f32 0.0078125, %v536_v7  ;;  %v584_v10 = vmul.f32 %v3453_v5, %v3453_v5  ;;  %v555_v11 = vmul.f32 0.0078125, %v538_v8  ;;  %v585_v12 = vmul.f32 %v3456_v6, %v3456_v6 }
 0x11d   : > { %v3461_v17 = vsub.f32 %v3390_v14, %v554_v9  ;;  %610 = vadd.xlane.f32.xlu1 %v583_v4  ;;  %612 = vadd.xlane.f32.xlu0 %v584_v10  ;;  %v3464_v18 = vsub.f32 %v3393_v15, %v555_v11  ;;  %v752_v14 = vld [vmem:[%s4169_s4] sm:$0xff]  ;;  %v753_v15 = vld [vmem:[%s4169_s4 + $0x8] sm:$0xff] }
 0x11e   : > { %v1298_v4 = vld [vmem:[%s4171_s6 + $0x40] sm:$0xff] }
 0x11f   : > { %v586_v13 = vmul.f32 %v3461_v17, %v3461_v17  ;;  %v587_v19 = vmul.f32 %v3464_v18, %v3464_v18 }
 0x121   : > { %614 = vadd.xlane.f32.xlu1 %v585_v12  ;;  %616 = vadd.xlane.f32.xlu0 %v586_v13  ;;  %v2719_v13 = vld [vmem:[#allocation7 + $0x18] sm:$0xff]  }
 0x125   : > { %618 = vadd.xlane.f32.xlu1 %v587_v19  ;;  %v1299_v19 = vld [vmem:[%s4171_s6 + $0x48] sm:$0xff] }
 0x136   : > { %770 = vperm.xlu1 %2706, %v752_v14  }
 0x13a   : > { %775 = vperm.xlu1 %2706, %v753_v15  }
 0x13e   : > { %780 = vperm.xlu1 %2706, %v754_v20  }
 0x142   : > { %785 = vperm.xlu1 %2706, %v755_v23  }
 0x146   : > { %790 = vperm.xlu1 %2706, %v756_v24  }
 0x14a   : > { %795 = vperm.xlu1 %2706, %v757_v25  }
 0x14e   : > { %896 = vxpose.xlu0.c.b16.start [1/8] %v2708_v26, 128  ;;  %800 = vperm.xlu1 %2706, %v758_v27   ;;  %v2720_v26 = vld [vmem:[#allocation7 + $0x20] sm:$0xff]   ;;  %v1300_v27 = vld [vmem:[%s4171_s6 + $0x50] sm:$0xff] }
 0x152   : > { %897 = vxpose.xlu0.c.b16.cont [2/8] %v2709_v28, 128  ;;  %805 = vperm.xlu1 %2706, %v759_v31  }
 0x156   : > { %898 = vxpose.xlu0.c.b16.cont [3/8] %v2710_v32, 128  ;;  %810 = vperm.xlu1 %2706, %v760_v33  }
 0x15a   : > { %899 = vxpose.xlu0.c.b16.cont [4/8] %v2711_v34, 128  ;;  %815 = vperm.xlu1 %2706, %v761_v35  }
 0x15e   : > { %900 = vxpose.xlu0.c.b16.cont [5/8] %v2712_v36, 128  ;;  %820 = vperm.xlu1 %2706, %v762_v39   ;;  %v2721_v39 = vld [vmem:[#allocation7 + $0x28] sm:$0xff]  }
 0x162   : > { %901 = vxpose.xlu0.c.b16.cont [6/8] %v2713_v40, 128  ;;  %825 = vperm.xlu1 %2706, %v763_v41   ;;  %v1301_v40 = vld [vmem:[%s4171_s6 + $0x58] sm:$0xff] }
 0x166   : > { %902 = vxpose.xlu0.c.b16.cont [7/8] %v2714_v42, 128  ;;  %830 = vperm.xlu1 %2706, %v764_v43  }
 0x16a   : > { %903 = vxpose.xlu0.c.b16.end [8/8] %v2715_v44, 128  ;;  %835 = vperm.xlu1 %2706, %v765_v47  }
 0x16e   : > { %840 = vperm.xlu1 %2706, %v766_v48   ;;  %v3561_v48 = vld [vmem:[%s4166_s1] ss:$0 sm:$0xff] }
 0x173   : > { %2707 = vset.pattern.permute.xlu0 %v3105_v16 }
 0x174   : > { %845 = vperm.xlu0 %2707, %v767_v49  }
 0x178   : > { %1308 = vperm.xlu0 %2707, %v1290_v50  }
 0x17c   : > { %1313 = vperm.xlu0 %2707, %v1291_v51  }
 0x180   : > { %1318 = vperm.xlu0 %2707, %v1292_v52   ;;  %v2722_v52 = vld [vmem:[#allocation7 + $0x30] sm:$0xff]  }
 0x184   : > { %1323 = vperm.xlu0 %2707, %v1293_v55   ;;  %v1302_v55 = vld [vmem:[%s4171_s6 + $0x60] sm:$0xff] }
 0x188   : > { %1328 = vperm.xlu0 %2707, %v1294_v56  }
 0x18c   : > { %1333 = vperm.xlu0 %2707, %v1295_v57  }
 0x190   : > { %1338 = vperm.xlu0 %2707, %v1296_v59  }
 0x191   : > { %1161 = vxpose.xlu1.c.b16.start [1/8] %v2716_v58, 128 }
 0x192   : > { %v589_v0 = vpop.xlane.xlu0 %588 }
 0x193   : > { %v620_v1 = vmul.f32 0.0078125, %v589_v0  ;;  %v3571_v0 = vld [vmem:[%s4167_s2] ss:$0 sm:$0xff] }
 0x194   : > { %1343 = vperm.xlu0 %2707, %v1297_v63  }
 0x195   : > { %v636_v2 = vadd.f32 1e-05, %v620_v1  ;;  %1162 = vxpose.xlu1.c.b16.cont [2/8] %v2717_v60, 128 }
 0x196   : > { %v591_v7 = vpop.xlane.xlu1 %590  ;;  %v593_v8 = vpop.xlane.xlu0 %592 }
 0x197   : > { %2764 = vrsqrt.f32 %v636_v2  ;;  %v621_v9 = vmul.f32 0.0078125, %v591_v7  ;;  %v622_v10 = vmul.f32 0.0078125, %v593_v8  ;;  %v1303_v8 = vld [vmem:[%s4171_s6 + $0x68] sm:$0xff] }
 0x198   : > { %1348 = vperm.xlu0 %2707, %v1298_v4  }
 0x199   : > { %v637_v11 = vadd.f32 1e-05, %v621_v9  ;;  %v638_v12 = vadd.f32 1e-05, %v622_v10  ;;  %1163 = vxpose.xlu1.c.b16.cont [3/8] %v2718_v3, 128 }
 0x19a   : > { %v595_v14 = vpop.xlane.xlu1 %594  ;;  %v597_v15 = vpop.xlane.xlu0 %596 }
 0x19b   : > { %2766 = vrsqrt.f32 %v637_v11  ;;  %v623_v20 = vmul.f32 0.0078125, %v595_v14  ;;  %v624_v23 = vmul.f32 0.0078125, %v597_v15 }
 0x19c   : > { %2768 = vrsqrt.f32 %v638_v12  ;;  %1353 = vperm.xlu0 %2707, %v1299_v19  }
 0x19d   : > { %v639_v24 = vadd.f32 1e-05, %v623_v20  ;;  %v640_v25 = vadd.f32 1e-05, %v624_v23  ;;  %1164 = vxpose.xlu1.c.b16.cont [4/8] %v2719_v13, 128 }
 0x19e   : > { %v599_v28 = vpop.xlane.xlu1 %598  ;;  %v601_v31 = vpop.xlane.xlu0 %600 }
 0x19f   : > { %2770 = vrsqrt.f32 %v639_v24  ;;  %v625_v32 = vmul.f32 0.0078125, %v599_v28  ;;  %v626_v33 = vmul.f32 0.0078125, %v601_v31 }
 0x1a0   : > { %2772 = vrsqrt.f32 %v640_v25  ;;  %1358 = vperm.xlu0 %2707, %v1300_v27  }
 0x1a1   : > { %v2765_v34 = vpop.eup %2764  ;;  %v641_v35 = vadd.f32 1e-05, %v625_v32  ;;  %v642_v36 = vadd.f32 1e-05, %v626_v33  ;;  %1165 = vxpose.xlu1.c.b16.cont [5/8] %v2720_v26, 128 }
 0x1a2   : > { %v603_v41 = vpop.xlane.xlu1 %602  ;;  %v605_v42 = vpop.xlane.xlu0 %604  ;;  %v668_v43 = vmul.f32 %v2765_v34, %v3400_v21 }
 0x1a3   : > { %2774 = vrsqrt.f32 %v641_v35  ;;  %v627_v44 = vmul.f32 0.0078125, %v603_v41  ;;  %v628_v47 = vmul.f32 0.0078125, %v605_v42 }
 0x1a4   : > { %2776 = vrsqrt.f32 %v642_v36  ;;  %1363 = vperm.xlu0 %2707, %v1301_v40   ;;  %v690_v59 = vmul.f32 %v3561_v48, %v668_v43  ;;  %v1304_v36 = vld [vmem:[%s4171_s6 + $0x70] sm:$0xff] }
 0x1a5   : > { %v2767_v49 = vpop.eup %2766  ;;  %v643_v50 = vadd.f32 1e-05, %v627_v44  ;;  %v644_v51 = vadd.f32 1e-05, %v628_v47  ;;  %1166 = vxpose.xlu1.c.b16.cont [6/8] %v2721_v39, 128 }
 0x1a6   : > { %v2769_v21 = vpop.eup %2768  ;;  %v607_v56 = vpop.xlane.xlu1 %606  ;;  %v669_v58 = vmul.f32 %v2767_v49, %v3408_v29  ;;  %v2723_v29 = vld [vmem:[#allocation7 + $0x38] sm:$0xff]   ;;  %v712_v12 = vadd.f32 %v3571_v0, %v690_v59 }
 0x1a7   : > { %v609_v57 = vpop.xlane.xlu0 %608  ;;  %2778 = vrsqrt.f32 %v643_v50  ;;  %v629_v60 = vmul.f32 0.0078125, %v607_v56  ;;  %v670_v1 = vmul.f32 %v2769_v21, %v3402_v22 }
 0x1a8   : > { %v630_v63 = vmul.f32 0.0078125, %v609_v57  ;;  %2780 = vrsqrt.f32 %v644_v51  ;;  %v691_v2 = vmul.f32 %v3561_v48, %v669_v58  ;;  %1368 = vperm.xlu0 %2707, %v1302_v55  }
 0x1a9   : > { %v2771_v3 = vpop.eup %2770  ;;  %v645_v4 = vadd.f32 1e-05, %v629_v60  ;;  %1167 = vxpose.xlu1.c.b16.cont [7/8] %v2722_v52, 128  ;;  %v692_v19 = vmul.f32 %v3561_v48, %v670_v1 }
 0x1aa   : > { %v646_v7 = vadd.f32 1e-05, %v630_v63  ;;  %v2773_v9 = vpop.eup %2772  ;;  %v611_v10 = vpop.xlane.xlu1 %610  ;;  %v713_v22 = vadd.f32 %v3571_v0, %v691_v2  ;;  %v671_v13 = vmul.f32 %v2771_v3, %v3410_v30  ;;  %v1305_v30 = vld [vmem:[%s4171_s6 + $0x78] sm:$0xff] }
 0x1ab   : > { %v613_v11 = vpop.xlane.xlu0 %612  ;;  %2782 = vrsqrt.f32 %v645_v4  ;;  %v631_v14 = vmul.f32 0.0078125, %v611_v10  ;;  %v672_v24 = vmul.f32 %v2773_v9, %v3416_v37  ;;  %v714_v33 = vadd.f32 %v3571_v0, %v692_v19 }
 0x1ac   : > { %v632_v15 = vmul.f32 0.0078125, %v613_v11  ;;  %2784 = vrsqrt.f32 %v646_v7  ;;  %v744_v20 = vpack.c.bf16 %v713_v22, %v712_v12  ;;  %v693_v23 = vmul.f32 %v3561_v48, %v671_v13  ;;  %1373 = vperm.xlu0 %2707, %v1303_v8  }
 0x1ad   : > { %v2775_v25 = vpop.eup %2774  ;;  %v647_v26 = vadd.f32 1e-05, %v631_v14  ;;  %1168 = vxpose.xlu1.c.b16.end [8/8] %v2723_v29, 128  ;;  %v694_v37 = vmul.f32 %v3561_v48, %v672_v24 }
 0x1ae   : > { %v648_v27 = vadd.f32 1e-05, %v632_v15  ;;  %v2777_v28 = vpop.eup %2776  ;;  %v615_v31 = vpop.xlane.xlu1 %614  ;;  %2568 = vmatprep.subr.bf16.mxu0 %v744_v20  ;;  %v715_v34 = vadd.f32 %v3571_v0, %v693_v23  ;;  %v673_v35 = vmul.f32 %v2775_v25, %v3418_v38 }
 0x1af   : > { %v617_v32 = vpop.xlane.xlu0 %616  ;;  %2786 = vrsqrt.f32 %v647_v26  ;;  %v633_v39 = vmul.f32 0.0078125, %v615_v31  ;;  %2569 = vmatpush3.bf16.msra.mxu0 %v744_v20  ;;  %v674_v41 = vmul.f32 %v2777_v28, %v3424_v45  ;;  %v716_v51 = vadd.f32 %v3571_v0, %v694_v37 }
 0x1b0   : > { %v634_v40 = vmul.f32 0.0078125, %v617_v32  ;;  %2788 = vrsqrt.f32 %v648_v27  ;;  %v745_v42 = vpack.c.bf16 %v715_v34, %v714_v33  ;;  %v695_v43 = vmul.f32 %v3561_v48, %v673_v35  ;;  %1383 = vperm.xlu0 %2707, %v1305_v30  }
 0x1b1   : > { %v2779_v44 = vpop.eup %2778  ;;  %v649_v47 = vadd.f32 1e-05, %v633_v39  ;;  %1378 = vperm.xlu1 %2706, %v1304_v36   ;;  %v696_v45 = vmul.f32 %v3561_v48, %v674_v41 }
 0x1b2   : > { %v650_v38 = vadd.f32 1e-05, %v634_v40  ;;  %v2781_v49 = vpop.eup %2780  ;;  %v619_v50 = vpop.xlane.xlu1 %618  ;;  %2570 = vmatprep.subr.bf16.mxu0 %v745_v42  ;;  %v717_v52 = vadd.f32 %v3571_v0, %v695_v43  ;;  %v675_v55 = vmul.f32 %v2779_v44, %v3426_v46 }
 0x1b3   : > { %2790 = vrsqrt.f32 %v649_v47  ;;  %v635_v21 = vmul.f32 0.0078125, %v619_v50  ;;  %2571 = vmatpush3.bf16.msra.mxu0 %v745_v42  ;;  %v676_v56 = vmul.f32 %v2781_v49, %v3433_v53  ;;  %v718_v2 = vadd.f32 %v3571_v0, %v696_v45 }
 0x1b4   : > { %2792 = vrsqrt.f32 %v650_v38  ;;  %v746_v57 = vpack.c.bf16 %v717_v52, %v716_v51  ;;  %v697_v58 = vmul.f32 %v3561_v48, %v675_v55  ;;  %v904_v59 = vpop.trf.xlu0 }
 0x1b5   : > { %v2783_v60 = vpop.eup %2782  ;;  %v651_v63 = vadd.f32 1e-05, %v635_v21  ;;  %2584 = vmatprep.mubr.bf16.mxu0 %v904_v59  ;;  %v698_v4 = vmul.f32 %v3561_v48, %v676_v56 }
 0x1b6   : > { %v2785_v1 = vpop.eup %2784  ;;  %2572 = vmatprep.subr.bf16.mxu0 %v746_v57  ;;  %v719_v46 = vadd.f32 %v3571_v0, %v697_v58  ;;  %v677_v3 = vmul.f32 %v2783_v60, %v3436_v54  ;;  %v3606_v7 = vpop.permute.xlu1 %770 }
 0x1b7   : > { %2794 = vrsqrt.f32 %v651_v63  ;;  %2573 = vmatpush3.bf16.msra.mxu0 %v746_v57  ;;  %v678_v53 = vmul.f32 %v2785_v1, %v3443_v61  ;;  %v720_v11 = vadd.f32 %v3571_v0, %v698_v4 }
 0x1b8   : > { %v747_v29 = vpack.c.bf16 %v719_v46, %v718_v2  ;;  %v699_v8 = vmul.f32 %v3561_v48, %v677_v3  ;;  %v905_v26 = vpop.trf.xlu0 }
 0x1b9   : > { %v2787_v9 = vpop.eup %2786  ;;  %v700_v22 = vmul.f32 %v3561_v48, %v678_v53 }
 0x1ba   : > { %v2789_v10 = vpop.eup %2788  ;;  %2574 = vmatprep.subr.bf16.mxu0 %v747_v29  ;;  %v721_v12 = vadd.f32 %v3571_v0, %v699_v8  ;;  %v679_v54 = vmul.f32 %v2787_v9, %v3446_v62  ;;  %v3614_v13 = vpop.permute.xlu1 %775 }
 0x1bb   : > { %2575 = vmatpush3.bf16.msra.mxu0 %v747_v29  ;;  %v680_v19 = vmul.f32 %v2789_v10, %v3453_v5  ;;  %v722_v23 = vadd.f32 %v3571_v0, %v700_v22 }
 0x1bc   : > { %v748_v61 = vpack.c.bf16 %v721_v12, %v720_v11  ;;  %v701_v14 = vmul.f32 %v3561_v48, %v679_v54  ;;  %v906_v39 = vpop.trf.xlu0 }
 0x1bd   : > { %v2791_v15 = vpop.eup %2790  ;;  %v702_v62 = vmul.f32 %v3561_v48, %v680_v19 }
 0x1be   : > { %v2793_v20 = vpop.eup %2792  ;;  %2576 = vmatprep.subr.bf16.mxu0 %v748_v61  ;;  %v723_v24 = vadd.f32 %v3571_v0, %v701_v14  ;;  %v681_v25 = vmul.f32 %v2791_v15, %v3456_v6  ;;  %v781_v27 = vpop.permute.xlu1 %780 }
 0x1bf   : > { %2577 = vmatpush3.bf16.msra.mxu0 %v748_v61  ;;  %v682_v30 = vmul.f32 %v2793_v20, %v3461_v17  ;;  %v724_v32 = vadd.f32 %v3571_v0, %v702_v62 }
 0x1c0   : > { %v749_v5 = vpack.c.bf16 %v723_v24, %v722_v23  ;;  %v703_v28 = vmul.f32 %v3561_v48, %v681_v25  ;;  %v907_v43 = vpop.trf.xlu0 }
 0x1c1   : > { %v2795_v31 = vpop.eup %2794  ;;  %v704_v6 = vmul.f32 %v3561_v48, %v682_v30 }
 0x1c2   : > { %2578 = vmatprep.subr.bf16.mxu0 %v749_v5  ;;  %v725_v33 = vadd.f32 %v3571_v0, %v703_v28  ;;  %v683_v34 = vmul.f32 %v2795_v31, %v3464_v18  ;;  %v786_v35 = vpop.permute.xlu1 %785 }
 0x1c3   : > { %2579 = vmatpush3.bf16.msra.mxu0 %v749_v5  ;;  %v726_v17 = vadd.f32 %v3571_v0, %v704_v6 }
 0x1c4   : > { %v750_v37 = vpack.c.bf16 %v725_v33, %v724_v32  ;;  %v705_v36 = vmul.f32 %v3561_v48, %v683_v34  ;;  %v908_v47 = vpop.trf.xlu0 }
 0x1c6   : > { %2580 = vmatprep.subr.bf16.mxu0 %v750_v37  ;;  %v727_v40 = vadd.f32 %v3571_v0, %v705_v36  ;;  %v791_v41 = vpop.permute.xlu1 %790 }
 0x1c7   : > { %2581 = vmatpush3.bf16.msra.mxu0 %v750_v37 }
 0x1c8   : > { %v751_v42 = vpack.c.bf16 %v727_v40, %v726_v17  ;;  %v909_v48 = vpop.trf.xlu0 }
 0x1ca   : > { %2582 = vmatprep.subr.bf16.mxu0 %v751_v42  ;;  %v796_v44 = vpop.permute.xlu1 %795 }
 0x1cb   : > { %2583 = vmatpush3.bf16.msra.mxu0 %v751_v42 }
 0x1cc   : > { %v910_v51 = vpop.trf.xlu0 }
 0x1ce   : > { %2585 = vmatmul.mubr.bf16.vlgmr.msra.gmra.mrb[0].mxu0 %v905_v26  ;;  %v801_v18 = vpop.permute.xlu1 %800 }
 0x1cf   : > { %2588 = vmatprep.mubr.bf16.mxu0 %v906_v39 }
 0x1d0   : > { %v911_v55 = vpop.trf.xlu0 }
 0x1d2   : > { %v806_v38 = vpop.permute.xlu1 %805 }
 0x1d6   : > { %2589 = vmatmul.mubr.bf16.gmra.mrb[4].mxu0 %v907_v43  ;;  %v811_v49 = vpop.permute.xlu1 %810 }
 0x1d7   : > { %2592 = vmatprep.mubr.bf16.mxu0 %v908_v47 }
 0x1da   : > { %v3631_v50 = vpop.permute.xlu1 %815 }
 0x1de   : > { %2593 = vmatmul.mubr.bf16.gmra.mrb[8].mxu0 %v909_v48  ;;  %v821_v0 = vpop.permute.xlu1 %820 }
 0x1df   : > { %2596 = vmatprep.mubr.bf16.mxu0 %v910_v51 }
 0x1e2   : > { %v826_v52 = vpop.permute.xlu1 %825 }
 0x1e6   : > { %2597 = vmatmul.mubr.bf16.gmra.mrb[12].mxu0 %v911_v55  ;;  %v3633_v45 = vpop.permute.xlu1 %830 }
 0x1e7   : > { %1772 = vmatprep.mubr.bf16.mxu0 %v3105_v16 }
 0x1ea   : > { %v3636_v21 = vpop.permute.xlu1 %835 }
 0x1ee   : > { %v3638_v56 = vpop.permute.xlu1 %840 }
 0x1f7   : > { %v1169_v57 = vpop.trf.xlu1 }
 0x1f8   : > { %2616 = vmatprep.mubr.bf16.mxu1 %v1169_v57 }
 0x2a1   : > { %v2586_v58 = vpop.f32.mrb[0].mxu0 }
 0x2a2   : > { %v955_v59 = vadd.f32 %v2586_v58, %v781_v27  ;;  %v946_v60 = vpop.f32.mrb[1].mxu0 }
 0x2a3   : > { %v947_v63 = vadd.f32 %v946_v60, %v3606_v7  ;;  %v2587_v1 = vpop.f32.mrb[2].mxu0 }
 0x2a4   : > { %v1027_v2 = vmul.f32 0.70710677, %v955_v59  ;;  %v958_v46 = vadd.f32 %v2587_v1, %v786_v35  ;;  %v949_v3 = vpop.f32.mrb[3].mxu0  ;;  %v1011_v62 = vmul.f32 0.5, %v955_v59 }
 0x2a5   : > { %v1025_v4 = vmul.f32 0.70710677, %v947_v63  ;;  %v950_v53 = vadd.f32 %v949_v3, %v3614_v13  ;;  %v1009_v6 = vmul.f32 0.5, %v947_v63 }
 0x2a6   : > { %2796 = verf.f32 %v1027_v2  ;;  %v1028_v29 = vmul.f32 0.70710677, %v958_v46  ;;  %v1012_v28 = vmul.f32 0.5, %v958_v46 }
 0x2a7   : > { %2798 = verf.f32 %v1025_v4  ;;  %v1026_v8 = vmul.f32 0.70710677, %v950_v53  ;;  %v1010_v40 = vmul.f32 0.5, %v950_v53  ;;  %v846_v4 = vpop.permute.xlu0 %845 }
 0x2a8   : > { %2800 = verf.f32 %v1028_v29 }
 0x2a9   : > { %2802 = verf.f32 %v1026_v8  ;;  %v2590_v9 = vpop.f32.mrb[4].mxu0 }
 0x2aa   : > { %v971_v10 = vadd.f32 %v2590_v9, %v801_v18  ;;  %v962_v11 = vpop.f32.mrb[5].mxu0 }
 0x2ab   : > { %v963_v12 = vadd.f32 %v962_v11, %v791_v41  ;;  %v2591_v54 = vpop.f32.mrb[6].mxu0 }
 0x2ac   : > { %v1031_v22 = vmul.f32 0.70710677, %v971_v10  ;;  %v974_v7 = vadd.f32 %v2591_v54, %v806_v38  ;;  %v965_v19 = vpop.f32.mrb[7].mxu0  ;;  %v1015_v63 = vmul.f32 0.5, %v971_v10 }
 0x2ad   : > { %v1029_v61 = vmul.f32 0.70710677, %v963_v12  ;;  %v966_v14 = vadd.f32 %v965_v19, %v796_v44  ;;  %v1013_v53 = vmul.f32 0.5, %v963_v12 }
 0x2ae   : > { %2804 = verf.f32 %v1031_v22  ;;  %v1032_v15 = vmul.f32 0.70710677, %v974_v7  ;;  %v1016_v1 = vmul.f32 0.5, %v974_v7 }
 0x2af   : > { %2806 = verf.f32 %v1029_v61  ;;  %v1030_v13 = vmul.f32 0.70710677, %v966_v14  ;;  %v1014_v29 = vmul.f32 0.5, %v966_v14 }
 0x2b0   : > { %v2797_v20 = vpop.eup %2796  ;;  %2808 = verf.f32 %v1032_v15 }
 0x2b1   : > { %v2799_v23 = vpop.eup %2798  ;;  %2810 = verf.f32 %v1030_v13  ;;  %v2594_v24 = vpop.f32.mrb[8].mxu0  ;;  %v1059_v26 = vadd.f32 1.0, %v2797_v20 }
 0x2b2   : > { %v2801_v25 = vpop.eup %2800  ;;  %v3642_v27 = vadd.f32 %v2594_v24, %v821_v0  ;;  %v978_v30 = vpop.f32.mrb[9].mxu0  ;;  %v1057_v34 = vadd.f32 1.0, %v2799_v23 }
 0x2b3   : > { %v2803_v5 = vpop.eup %2802  ;;  %v1060_v31 = vadd.f32 1.0, %v2801_v25  ;;  %v3644_v32 = vadd.f32 %v978_v30, %v811_v49  ;;  %v2595_v33 = vpop.f32.mrb[10].mxu0  ;;  %v1075_v43 = vmul.f32 %v1059_v26, %v1011_v62 }
 0x2b4   : > { %v1035_v35 = vmul.f32 0.70710677, %v3642_v27  ;;  %v3647_v37 = vadd.f32 %v2595_v33, %v826_v52  ;;  %v981_v36 = vpop.f32.mrb[11].mxu0  ;;  %v1058_v39 = vadd.f32 1.0, %v2803_v5  ;;  %v1073_v47 = vmul.f32 %v1057_v34, %v1009_v6 }
 0x2b5   : > { %v1076_v17 = vmul.f32 %v1060_v31, %v1012_v28  ;;  %v1033_v41 = vmul.f32 0.70710677, %v3644_v32  ;;  %v982_v42 = vadd.f32 %v981_v36, %v3631_v50  ;;  %v1019_v26 = vmul.f32 0.5, %v3642_v27 }
 0x2b6   : > { %2812 = verf.f32 %v1035_v35  ;;  %v1036_v44 = vmul.f32 0.70710677, %v3647_v37  ;;  %v1074_v38 = vmul.f32 %v1058_v39, %v1010_v40  ;;  %v1020_v30 = vmul.f32 0.5, %v3647_v37 }
 0x2b7   : > { %2814 = verf.f32 %v1033_v41  ;;  %v1034_v18 = vmul.f32 0.70710677, %v982_v42  ;;  %v1090_v49 = vpack.c.bf16 %v1076_v17, %v1075_v43  ;;  %v1017_v5 = vmul.f32 0.5, %v3644_v32 }
 0x2b8   : > { %v2805_v48 = vpop.eup %2804  ;;  %2816 = verf.f32 %v1036_v44  ;;  %v1089_v55 = vpack.c.bf16 %v1074_v38, %v1073_v47  ;;  %v1018_v28 = vmul.f32 0.5, %v982_v42 }
 0x2b9   : > { %v2807_v51 = vpop.eup %2806  ;;  %v1063_v0 = vadd.f32 1.0, %v2805_v48  ;;  %2818 = verf.f32 %v1034_v18  ;;  %v2598_v52 = vpop.f32.mrb[12].mxu0 }
 0x2ba   : > { %v2809_v57 = vpop.eup %2808  ;;  %v1061_v58 = vadd.f32 1.0, %v2807_v51  ;;  %v1003_v50 = vadd.f32 %v2598_v52, %v3638_v56  ;;  %v994_v59 = vpop.f32.mrb[13].mxu0  ;;  %2600 = vmatprep.subr.bf16.mxu1 %v1089_v55 }
 0x2bb   : > { %v2811_v60 = vpop.eup %2810  ;;  %v1064_v2 = vadd.f32 1.0, %v2809_v57  ;;  %v995_v46 = vadd.f32 %v994_v59, %v3633_v45  ;;  %v2599_v3 = vpop.f32.mrb[14].mxu0  ;;  %2601 = vmatpush3.bf16.msra.mxu1 %v1089_v55  ;;  %v1079_v54 = vmul.f32 %v1063_v0, %v1015_v63 }
 0x2bc   : > { %v1062_v8 = vadd.f32 1.0, %v2811_v60  ;;  %v1039_v9 = vmul.f32 0.70710677, %v1003_v50  ;;  %v997_v11 = vpop.f32.mrb[15].mxu0  ;;  %v1006_v56 = vadd.f32 %v2599_v3, %v846_v4  ;;  %2602 = vmatprep.subr.bf16.mxu1 %v1090_v49  ;;  %v1077_v61 = vmul.f32 %v1061_v58, %v1013_v53  ;;  %v1170_v18 = vpop.trf.xlu1 }
 0x2bd   : > { %v1080_v22 = vmul.f32 %v1064_v2, %v1016_v1  ;;  %v1037_v19 = vmul.f32 0.70710677, %v995_v46  ;;  %v998_v7 = vadd.f32 %v997_v11, %v3636_v21  ;;  %v1023_v44 = vmul.f32 0.5, %v1003_v50  ;;  %v1309_v2 = vpop.permute.xlu0 %1308 }
 0x2be   : > { %v1078_v10 = vmul.f32 %v1062_v8, %v1014_v29  ;;  %2820 = verf.f32 %v1039_v9  ;;  %v1040_v45 = vmul.f32 0.70710677, %v1006_v56  ;;  %v1024_v32 = vmul.f32 0.5, %v1006_v56 }
 0x2bf   : > { %2822 = verf.f32 %v1037_v19  ;;  %v1092_v15 = vpack.c.bf16 %v1080_v22, %v1079_v54  ;;  %v1038_v12 = vmul.f32 0.70710677, %v998_v7  ;;  %2603 = vmatpush3.bf16.msra.mxu1 %v1090_v49  ;;  %v1021_v47 = vmul.f32 0.5, %v995_v46  ;;  %v2924_v19 = vld [vmem:[%s3349_s21] sm:$0xff] }
 0x2c0   : > { %v2813_v13 = vpop.eup %2812  ;;  %v1091_v14 = vpack.c.bf16 %v1078_v10, %v1077_v61  ;;  %2824 = verf.f32 %v1040_v45  ;;  %v1022_v38 = vmul.f32 0.5, %v998_v7  ;;  %v1171_v58 = vpop.trf.xlu1 }
 0x2c1   : > { %v2815_v20 = vpop.eup %2814  ;;  %v1067_v23 = vadd.f32 1.0, %v2813_v13  ;;  %2826 = verf.f32 %v1038_v12  ;;  %v1314_v46 = vpop.permute.xlu0 %1313  ;;  %v2926_v12 = vld [vmem:[%s3349_s21 + $0x8] sm:$0xff] }
 0x2c2   : > { %v2817_v24 = vpop.eup %2816  ;;  %v1065_v25 = vadd.f32 1.0, %v2815_v20  ;;  %2604 = vmatprep.subr.bf16.mxu1 %v1091_v14  ;;  %v2927_v20 = vld [vmem:[%s3349_s21 + $0x10] sm:$0xff] }
 0x2c3   : > { %v2819_v62 = vpop.eup %2818  ;;  %v1068_v21 = vadd.f32 1.0, %v2817_v24  ;;  %2605 = vmatpush3.bf16.msra.mxu1 %v1091_v14  ;;  %v1083_v33 = vmul.f32 %v1067_v23, %v1019_v26 }
 0x2c4   : > { %v1066_v31 = vadd.f32 1.0, %v2819_v62  ;;  %2606 = vmatprep.subr.bf16.mxu1 %v1092_v15  ;;  %v1081_v6 = vmul.f32 %v1065_v25, %v1017_v5  ;;  %v1172_v50 = vpop.trf.xlu1  ;;  %v2928_v5 = vld [vmem:[%s3349_s21 + $0x20] sm:$0xff] }
 0x2c5   : > { %v1084_v34 = vmul.f32 %v1068_v21, %v1020_v30  ;;  %v1319_v3 = vpop.permute.xlu0 %1318 }
 0x2c6   : > { %v1082_v35 = vmul.f32 %v1066_v31, %v1018_v28 }
 0x2c7   : > { %v1094_v36 = vpack.c.bf16 %v1084_v34, %v1083_v33  ;;  %2607 = vmatpush3.bf16.msra.mxu1 %v1092_v15  ;;  %v2925_v15 = vld [vmem:[%s3349_s21 + $0x18] sm:$0xff]  ;;  %v2929_v34 = vld [vmem:[%s3349_s21 + $0x28] sm:$0xff] }
 0x2c8   : > { %v2821_v39 = vpop.eup %2820  ;;  %v1093_v17 = vpack.c.bf16 %v1082_v35, %v1081_v6  ;;  %v1173_v59 = vpop.trf.xlu1  ;;  %v2930_v35 = vld [vmem:[%s3349_s21 + $0x30] sm:$0xff] }
 0x2c9   : > { %v2823_v40 = vpop.eup %2822  ;;  %v1071_v41 = vadd.f32 1.0, %v2821_v39  ;;  %v1324_v4 = vpop.permute.xlu0 %1323 }
 0x2ca   : > { %2608 = vmatprep.subr.bf16.mxu1 %v1093_v17  ;;  %v2825_v27 = vpop.eup %2824  ;;  %v1069_v37 = vadd.f32 1.0, %v2823_v40 }
 0x2cb   : > { %v2827_v43 = vpop.eup %2826  ;;  %v1072_v42 = vadd.f32 1.0, %v2825_v27  ;;  %2609 = vmatpush3.bf16.msra.mxu1 %v1093_v17  ;;  %v1087_v49 = vmul.f32 %v1071_v41, %v1023_v44  ;;  %v2931_v17 = vld [vmem:[%s3349_s21 + $0x38] sm:$0xff] }
 0x2cc   : > { %v1070_v48 = vadd.f32 1.0, %v2827_v43  ;;  %2610 = vmatprep.subr.bf16.mxu1 %v1094_v36  ;;  %v1085_v0 = vmul.f32 %v1069_v37, %v1021_v47  ;;  %v1174_v60 = vpop.trf.xlu1 }
 0x2cd   : > { %v1088_v51 = vmul.f32 %v1072_v42, %v1024_v32  ;;  %v1329_v53 = vpop.permute.xlu0 %1328  ;;  %v2932_v42 = vld [vmem:[%s3349_s21 + $0x40] sm:$0xff] }
 0x2ce   : > { %v1086_v52 = vmul.f32 %v1070_v48, %v1022_v38  ;;  %v2933_v48 = vld [vmem:[%s3349_s21 + $0x48] sm:$0xff] }
 0x2cf   : > { %2611 = vmatpush3.bf16.msra.mxu1 %v1094_v36  ;;  %v1096_v55 = vpack.c.bf16 %v1088_v51, %v1087_v49 }
 0x2d0   : > { %v1095_v57 = vpack.c.bf16 %v1086_v52, %v1085_v0  ;;  %v1175_v63 = vpop.trf.xlu1  ;;  %v2934_v0 = vld [vmem:[%s3349_s21 + $0x50] sm:$0xff] }
 0x2d1   : > { %v1334_v29 = vpop.permute.xlu0 %1333 }
 0x2d2   : > { %2612 = vmatprep.subr.bf16.mxu1 %v1095_v57 }
 0x2d3   : > { %2613 = vmatpush3.bf16.msra.mxu1 %v1095_v57  ;;  %v2935_v57 = vld [vmem:[%s3349_s21 + $0x58] sm:$0xff] }
 0x2d4   : > { %2614 = vmatprep.subr.bf16.mxu1 %v1096_v55  ;;  %v1176_v1 = vpop.trf.xlu1 }
 0x2d5   : > { %v1339_v8 = vpop.permute.xlu0 %1338 }
 0x2d7   : > { %2615 = vmatpush3.bf16.msra.mxu1 %v1096_v55 }
 0x2d9   : > { %v1344_v9 = vpop.permute.xlu0 %1343 }
 0x2da   : > { %2617 = vmatmul.mubr.bf16.vlgmr.msra.gmra.mrb[0].mxu1 %v1170_v18 }
 0x2db   : > { %2620 = vmatprep.mubr.bf16.mxu1 %v1171_v58 }
 0x2dd   : > { %v1349_v11 = vpop.permute.xlu0 %1348 }
 0x2e1   : > { %v1354_v10 = vpop.permute.xlu0 %1353 }
 0x2e2   : > { %2621 = vmatmul.mubr.bf16.gmra.mrb[4].mxu1 %v1172_v50 }
 0x2e3   : > { %2624 = vmatprep.mubr.bf16.mxu1 %v1173_v59 }
 0x2e5   : > { %v1359_v26 = vpop.permute.xlu0 %1358 }
 0x2e9   : > { %v1364_v27 = vpop.permute.xlu0 %1363 }
 0x2ea   : > { %2625 = vmatmul.mubr.bf16.gmra.mrb[8].mxu1 %v1174_v60 }
 0x2eb   : > { %2628 = vmatprep.mubr.bf16.mxu1 %v1175_v63 }
 0x2ed   : > { %v1369_v51 = vpop.permute.xlu0 %1368 }
 0x2f2   : > { %2629 = vmatmul.mubr.bf16.gmra.mrb[12].mxu1 %v1176_v1 }
 0x3ad   : > { %v2618_v54 = vpop.f32.mrb[0].mxu1 }
 0x3ae   : > { %v1211_v22 = vpop.f32.mrb[1].mxu1  ;;  %v1276_v23 = vadd.f32 %v2927_v20, %v2618_v54  ;;  %v2727_v20 = vld [vmem:[%s4174_s9 + $0x10] ss:$8 sps:$4 sm:$0xff]  }
 0x3af   : > { %v1274_v56 = vadd.f32 %v2924_v19, %v1211_v22  ;;  %v2619_v61 = vpop.f32.mrb[2].mxu1  ;;  %v2939_v22 = vld [vmem:[%s3349_s21 + $0x78] sm:$0xff] }
 0x3b0   : > { %v1214_v7 = vpop.f32.mrb[3].mxu1  ;;  %v1277_v13 = vadd.f32 %v2925_v15, %v2619_v61  ;;  %v3670_v21 = vadd.f32 %v1319_v3, %v1276_v23  ;;  %v1379_v61 = vpop.permute.xlu1 %1378 }
 0x3b1   : > { %v3659_v45 = vadd.f32 %v1309_v2, %v1274_v56  ;;  %v1275_v14 = vadd.f32 %v2926_v12, %v1214_v7  ;;  %v2936_v2 = vld [vmem:[%s3349_s21 + $0x60] sm:$0xff] }
 0x3b2   : > { %v3667_v25 = vadd.f32 %v1324_v4, %v1277_v13  ;;  %v1374_v4 = vpop.permute.xlu0 %1373  ;;  %v2724_v13 = vld [vmem:[%s4174_s9] ss:$8 sps:$4 sm:$0xff]   ;;  %v2726_v12 = vld [vmem:[%s4174_s9 + $0x4] ss:$8 sps:$4 sm:$0xff]  }
 0x3b3   : > { %v3664_v24 = vadd.f32 %v1314_v46, %v1275_v14  ;;  %1404 = vadd.xlane.f32.xlu1 %v3659_v45  ;;  %v2729_v14 = vld [vmem:[%s4174_s9 + $0x14] ss:$8 sps:$4 sm:$0xff]   ;;  %1740 = vmatprep.subr.bf16.mxu0 %v2726_v12 }
 0x3b4   : > { %1741 = vmatpush1.bf16.msra.mxu0 %v2724_v13 }
 0x3b5   : > { %v2622_v62 = vpop.f32.mrb[4].mxu1  ;;  %1406 = vadd.xlane.f32.xlu0 %v3664_v24  ;;  %1742 = vmatprep.subr.bf16.mxu0 %v2729_v14 }
 0x3b6   : > { %v1227_v30 = vpop.f32.mrb[5].mxu1  ;;  %v1280_v36 = vadd.f32 %v2930_v35, %v2622_v62 }
 0x3b7   : > { %v1278_v28 = vadd.f32 %v2928_v5, %v1227_v30  ;;  %v2623_v31 = vpop.f32.mrb[6].mxu1  ;;  %1410 = vadd.xlane.f32.xlu1 %v3667_v25 }
 0x3b8   : > { %v1230_v33 = vpop.f32.mrb[7].mxu1  ;;  %v1281_v40 = vadd.f32 %v2931_v17, %v2623_v31  ;;  %v3684_v44 = vadd.f32 %v1339_v8, %v1280_v36  ;;  %1743 = vmatpush1.bf16.msra.mxu0 %v2727_v20 }
 0x3b9   : > { %v1279_v6 = vadd.f32 %v2929_v34, %v1230_v33  ;;  %1408 = vadd.xlane.f32.xlu0 %v3670_v21  ;;  %v3677_v39 = vadd.f32 %v1329_v53, %v1278_v28 }
 0x3ba   : > { %v3686_v32 = vadd.f32 %v1344_v9, %v1281_v40  ;;  %v2938_v9 = vld [vmem:[%s3349_s21 + $0x70] sm:$0xff] }
 0x3bb   : > { %v3680_v41 = vadd.f32 %v1334_v29, %v1279_v6  ;;  %v2937_v29 = vld [vmem:[%s3349_s21 + $0x68] sm:$0xff]  ;;  %s4117_s21 = scalar_lea.hbm %s4203_s17, %s2471_s30 }
 0x3bd   : > { %v2626_v37 = vpop.f32.mrb[8].mxu1  ;;  %1412 = vadd.xlane.f32.xlu0 %v3677_v39  ;;  %1414 = vadd.xlane.f32.xlu1 %v3680_v41 }
 0x3be   : > { %v1243_v43 = vpop.f32.mrb[9].mxu1  ;;  %v1284_v52 = vadd.f32 %v2934_v0, %v2626_v37 }
 0x3bf   : > { %v1282_v18 = vadd.f32 %v2932_v42, %v1243_v43  ;;  %v2627_v47 = vpop.f32.mrb[10].mxu1 }
 0x3c0   : > { %v1246_v38 = vpop.f32.mrb[11].mxu1  ;;  %v1285_v58 = vadd.f32 %v2935_v57, %v2627_v47  ;;  %v3700_v63 = vadd.f32 %v1359_v26, %v1284_v52 }
 0x3c1   : > { %v1283_v49 = vadd.f32 %v2933_v48, %v1246_v38  ;;  %1416 = vadd.xlane.f32.xlu0 %v3684_v44  ;;  %1418 = vadd.xlane.f32.xlu1 %v3686_v32  ;;  %v3693_v55 = vadd.f32 %v1349_v11, %v1282_v18 }
 0x3c2   : > { %v3702_v1 = vadd.f32 %v1364_v27, %v1285_v58 }
 0x3c3   : > { %v3696_v50 = vadd.f32 %v1354_v10, %v1283_v49  ;;  %v1384_v10 = vpop.permute.xlu0 %1383 }
 0x3c5   : > { %v2630_v59 = vpop.f32.mrb[12].mxu1  ;;  %1420 = vadd.xlane.f32.xlu0 %v3693_v55  ;;  %1422 = vadd.xlane.f32.xlu1 %v3696_v50 }
 0x3c6   : > { %v1259_v60 = vpop.f32.mrb[13].mxu1  ;;  %v1288_v11 = vadd.f32 %v2938_v9, %v2630_v59 }
 0x3c7   : > { %v1286_v46 = vadd.f32 %v2936_v2, %v1259_v60  ;;  %v2631_v3 = vpop.f32.mrb[14].mxu1 }
 0x3c8   : > { %v1262_v53 = vpop.f32.mrb[15].mxu1  ;;  %v1289_v19 = vadd.f32 %v2939_v22, %v2631_v3  ;;  %v3716_v7 = vadd.f32 %v1379_v61, %v1288_v11  ;;  %v2732_v11 = vld [vmem:[%s4174_s9 + $0x24] ss:$8 sps:$4 sm:$0xff]   ;;  %v2730_v61 = vld [vmem:[%s4174_s9 + $0x20] ss:$8 sps:$4 sm:$0xff]  }
 0x3c9   : > { %v1287_v8 = vadd.f32 %v2937_v29, %v1262_v53  ;;  %1424 = vadd.xlane.f32.xlu0 %v3700_v63  ;;  %1426 = vadd.xlane.f32.xlu1 %v3702_v1  ;;  %v3709_v54 = vadd.f32 %v1369_v51, %v1286_v46 }
 0x3ca   : > { %v3718_v15 = vadd.f32 %v1384_v10, %v1289_v19  ;;  %1744 = vmatprep.subr.bf16.mxu0 %v2732_v11  ;;  %v2745_v11 = vld [vmem:[%s4174_s9 + $0x70] ss:$8 sps:$4 sm:$0xff]  }
 0x3cb   : > { %v3712_v56 = vadd.f32 %v1374_v4, %v1287_v8  ;;  %1745 = vmatpush1.bf16.msra.mxu0 %v2730_v61  ;;  %v2750_v61 = vld [vmem:[%s4176_s11 + $0x48] sm:$0xff]  }
 0x3cd   : > { %1428 = vadd.xlane.f32.xlu0 %v3709_v54  ;;  %1430 = vadd.xlane.f32.xlu1 %v3712_v56 }
 0x3d1   : > { %1432 = vadd.xlane.f32.xlu0 %v3716_v7  ;;  %1434 = vadd.xlane.f32.xlu1 %v3718_v15 }
 0x440   : > { %v1405_v23 = vpop.xlane.xlu1 %1404 }
 0x441   : > { %v1436_v62 = vmul.f32 0.0078125, %v1405_v23 }
 0x442   : > { %v1407_v26 = vpop.xlane.xlu0 %1406 }
 0x443   : > { %v3735_v30 = vsub.f32 %v3659_v45, %v1436_v62  ;;  %v1437_v5 = vmul.f32 0.0078125, %v1407_v26  ;;  %v2735_v62 = vld [vmem:[%s4174_s9 + $0x34] ss:$8 sps:$4 sm:$0xff]  }
 0x444   : > { %v1411_v28 = vpop.xlane.xlu1 %1410  ;;  %1746 = vmatprep.subr.bf16.mxu0 %v2735_v62 }
 0x445   : > { %v3738_v31 = vsub.f32 %v3664_v24, %v1437_v5  ;;  %v1439_v33 = vmul.f32 0.0078125, %v1411_v28  ;;  %v1468_v34 = vmul.f32 %v3735_v30, %v3735_v30  ;;  %v2733_v28 = vld [vmem:[%s4174_s9 + $0x30] ss:$8 sps:$4 sm:$0xff]  }
 0x446   : > { %v1409_v6 = vpop.xlane.xlu0 %1408  ;;  %1747 = vmatpush1.bf16.msra.mxu0 %v2733_v28 }
 0x447   : > { %v3743_v35 = vsub.f32 %v3667_v25, %v1439_v33  ;;  %v1438_v36 = vmul.f32 0.0078125, %v1409_v6  ;;  %1484 = vadd.xlane.f32.xlu0 %v1468_v34  ;;  %v1469_v17 = vmul.f32 %v3738_v31, %v3738_v31 }
 0x449   : > { %v3748_v40 = vsub.f32 %v3670_v21, %v1438_v36  ;;  %1486 = vadd.xlane.f32.xlu1 %v1469_v17  ;;  %v1471_v18 = vmul.f32 %v3743_v35, %v3743_v35 }
 0x44a   : > { %v1415_v27 = vpop.xlane.xlu1 %1414  ;;  %v1413_v37 = vpop.xlane.xlu0 %1412 }
 0x44b   : > { %v1441_v43 = vmul.f32 0.0078125, %v1415_v27  ;;  %v1440_v42 = vmul.f32 0.0078125, %v1413_v37  ;;  %v1470_v47 = vmul.f32 %v3748_v40, %v3748_v40  ;;  %v2738_v37 = vld [vmem:[%s4174_s9 + $0x44] ss:$8 sps:$4 sm:$0xff]  }
 0x44c   : > { %1748 = vmatprep.subr.bf16.mxu0 %v2738_v37 }
 0x44d   : > { %v3755_v38 = vsub.f32 %v3680_v41, %v1441_v43  ;;  %v3758_v48 = vsub.f32 %v3677_v39, %v1440_v42  ;;  %1490 = vadd.xlane.f32.xlu1 %v1471_v18  ;;  %1488 = vadd.xlane.f32.xlu0 %v1470_v47  ;;  %v2736_v18 = vld [vmem:[%s4174_s9 + $0x40] ss:$8 sps:$4 sm:$0xff]  }
 0x44e   : > { %v1419_v49 = vpop.xlane.xlu1 %1418  ;;  %v1417_v51 = vpop.xlane.xlu0 %1416  ;;  %1749 = vmatpush1.bf16.msra.mxu0 %v2736_v18 }
 0x44f   : > { %v1443_v0 = vmul.f32 0.0078125, %v1419_v49  ;;  %v1442_v52 = vmul.f32 0.0078125, %v1417_v51  ;;  %v1473_v57 = vmul.f32 %v3755_v38, %v3755_v38  ;;  %v1472_v58 = vmul.f32 %v3758_v48, %v3758_v48 }
 0x451   : > { %v3765_v59 = vsub.f32 %v3686_v32, %v1443_v0  ;;  %v3768_v60 = vsub.f32 %v3684_v44, %v1442_v52  ;;  %1494 = vadd.xlane.f32.xlu1 %v1473_v57  ;;  %1492 = vadd.xlane.f32.xlu0 %v1472_v58  ;;  %v2741_v58 = vld [vmem:[%s4174_s9 + $0x54] ss:$8 sps:$4 sm:$0xff]  }
 0x452   : > { %v1423_v2 = vpop.xlane.xlu1 %1422  ;;  %v1421_v46 = vpop.xlane.xlu0 %1420  ;;  %1750 = vmatprep.subr.bf16.mxu0 %v2741_v58 }
 0x453   : > { %v1445_v3 = vmul.f32 0.0078125, %v1423_v2  ;;  %v1444_v4 = vmul.f32 0.0078125, %v1421_v46  ;;  %v1475_v53 = vmul.f32 %v3765_v59, %v3765_v59  ;;  %v1474_v29 = vmul.f32 %v3768_v60, %v3768_v60  ;;  %v2739_v2 = vld [vmem:[%s4174_s9 + $0x50] ss:$8 sps:$4 sm:$0xff]  }
 0x454   : > { %1751 = vmatpush1.bf16.msra.mxu0 %v2739_v2 }
 0x455   : > { %v3775_v8 = vsub.f32 %v3696_v50, %v1445_v3  ;;  %v3778_v9 = vsub.f32 %v3693_v55, %v1444_v4  ;;  %1498 = vadd.xlane.f32.xlu1 %v1475_v53  ;;  %1496 = vadd.xlane.f32.xlu0 %v1474_v29  ;;  %v2744_v4 = vld [vmem:[%s4174_s9 + $0x64] ss:$8 sps:$4 sm:$0xff]   ;;  %v2742_v53 = vld [vmem:[%s4174_s9 + $0x60] ss:$8 sps:$4 sm:$0xff]   ;;  %v2747_v29 = vld [vmem:[%s4174_s9 + $0x74] ss:$8 sps:$4 sm:$0xff]  }
 0x456   : > { %v1427_v22 = vpop.xlane.xlu1 %1426  ;;  %v1425_v19 = vpop.xlane.xlu0 %1424  ;;  %1752 = vmatprep.subr.bf16.mxu0 %v2744_v4 }
 0x457   : > { %v1447_v10 = vmul.f32 0.0078125, %v1427_v22  ;;  %v1446_v13 = vmul.f32 0.0078125, %v1425_v19  ;;  %v1477_v12 = vmul.f32 %v3775_v8, %v3775_v8  ;;  %v1476_v14 = vmul.f32 %v3778_v9, %v3778_v9  ;;  %v2748_v22 = vld [vmem:[%s4176_s11 + $0x40] sm:$0xff]  }
 0x458   : > { %1753 = vmatpush1.bf16.msra.mxu0 %v2742_v53  ;;  %v2749_v19 = vld [vmem:[%s4176_s11] sm:$0xff]   ;;  %2504 = vmatprep.subr.bf16.mxu1 %v2748_v22 }
 0x459   : > { %v3791_v20 = vsub.f32 %v3702_v1, %v1447_v10  ;;  %v3794_v23 = vsub.f32 %v3700_v63, %v1446_v13  ;;  %1502 = vadd.xlane.f32.xlu1 %v1477_v12  ;;  %1500 = vadd.xlane.f32.xlu0 %v1476_v14  ;;  %v2751_v10 = vld [vmem:[%s4176_s11 + $0x8] sm:$0xff]  }
 0x45a   : > { %v1431_v26 = vpop.xlane.xlu1 %1430  ;;  %v1429_v5 = vpop.xlane.xlu0 %1428  ;;  %1754 = vmatprep.subr.bf16.mxu0 %v2747_v29  ;;  %2505 = vmatpush3.bf16.msra.mxu1 %v2749_v19 }
 0x45b   : > { %v1449_v33 = vmul.f32 0.0078125, %v1431_v26  ;;  %v1448_v34 = vmul.f32 0.0078125, %v1429_v5  ;;  %v1479_v6 = vmul.f32 %v3791_v20, %v3791_v20  ;;  %v1478_v36 = vmul.f32 %v3794_v23, %v3794_v23  ;;  %2506 = vmatprep.subr.bf16.mxu1 %v2750_v61 }
 0x45c   : > { %1755 = vmatpush1.bf16.msra.mxu0 %v2745_v11 }
 0x45d   : > { %v3807_v17 = vsub.f32 %v3712_v56, %v1449_v33  ;;  %v3810_v27 = vsub.f32 %v3709_v54, %v1448_v34  ;;  %1506 = vadd.xlane.f32.xlu1 %v1479_v6  ;;  %1504 = vadd.xlane.f32.xlu0 %v1478_v36 }
 0x45e   : > { %v1435_v43 = vpop.xlane.xlu1 %1434  ;;  %v1433_v42 = vpop.xlane.xlu0 %1432  ;;  %2507 = vmatpush3.bf16.msra.mxu1 %v2751_v10 }
 0x45f   : > { %v1451_v47 = vmul.f32 0.0078125, %v1435_v43  ;;  %v1450_v49 = vmul.f32 0.0078125, %v1433_v42  ;;  %v1481_v51 = vmul.f32 %v3807_v17, %v3807_v17  ;;  %v1480_v0 = vmul.f32 %v3810_v27, %v3810_v27 }
 0x461   : > { %v3823_v52 = vsub.f32 %v3718_v15, %v1451_v47  ;;  %v3826_v57 = vsub.f32 %v3716_v7, %v1450_v49  ;;  %1510 = vadd.xlane.f32.xlu1 %v1481_v51  ;;  %1508 = vadd.xlane.f32.xlu0 %v1480_v0 }
 0x463   : > { %v1483_v46 = vmul.f32 %v3823_v52, %v3823_v52  ;;  %v1482_v3 = vmul.f32 %v3826_v57, %v3826_v57 }
 0x465   : > { %1514 = vadd.xlane.f32.xlu1 %v1483_v46  ;;  %1512 = vadd.xlane.f32.xlu0 %v1482_v3  ;;  %v3865_v46 = vld [vmem:[%s4172_s7] ss:$0 sm:$0xff] }
 0x4d4   : > { %v1485_v13 = vpop.xlane.xlu0 %1484 }
 0x4d5   : > { %v1516_v12 = vmul.f32 0.0078125, %v1485_v13  ;;  %v3873_v13 = vld [vmem:[%s4173_s8] ss:$0 sm:$0xff] }
 0x4d6   : > { %v1487_v14 = vpop.xlane.xlu1 %1486 }
 0x4d7   : > { %v1532_v62 = vadd.f32 1e-05, %v1516_v12  ;;  %v1517_v26 = vmul.f32 0.0078125, %v1487_v14 }
 0x4d9   : > { %2828 = vrsqrt.f32 %v1532_v62  ;;  %v1533_v5 = vadd.f32 1e-05, %v1517_v26 }
 0x4da   : > { %v1491_v28 = vpop.xlane.xlu1 %1490  ;;  %v1489_v33 = vpop.xlane.xlu0 %1488 }
 0x4db   : > { %2830 = vrsqrt.f32 %v1533_v5  ;;  %v1519_v34 = vmul.f32 0.0078125, %v1491_v28  ;;  %v1518_v6 = vmul.f32 0.0078125, %v1489_v33 }
 0x4dd   : > { %v1535_v36 = vadd.f32 1e-05, %v1519_v34  ;;  %v1534_v37 = vadd.f32 1e-05, %v1518_v6 }
 0x4de   : > { %v1495_v43 = vpop.xlane.xlu1 %1494  ;;  %v1493_v42 = vpop.xlane.xlu0 %1492 }
 0x4df   : > { %2832 = vrsqrt.f32 %v1535_v36  ;;  %v1521_v18 = vmul.f32 0.0078125, %v1495_v43  ;;  %v1520_v47 = vmul.f32 0.0078125, %v1493_v42 }
 0x4e0   : > { %2834 = vrsqrt.f32 %v1534_v37 }
 0x4e1   : > { %v1537_v49 = vadd.f32 1e-05, %v1521_v18  ;;  %v1536_v51 = vadd.f32 1e-05, %v1520_v47 }
 0x4e2   : > { %v1499_v0 = vpop.xlane.xlu1 %1498  ;;  %v1497_v58 = vpop.xlane.xlu0 %1496 }
 0x4e3   : > { %v2829_v2 = vpop.eup %2828  ;;  %2836 = vrsqrt.f32 %v1537_v49  ;;  %v1523_v3 = vmul.f32 0.0078125, %v1499_v0  ;;  %v1522_v4 = vmul.f32 0.0078125, %v1497_v58 }
 0x4e4   : > { %v1564_v53 = vmul.f32 %v2829_v2, %v3735_v30  ;;  %2838 = vrsqrt.f32 %v1536_v51 }
 0x4e5   : > { %v2831_v29 = vpop.eup %2830  ;;  %v1539_v11 = vadd.f32 1e-05, %v1523_v3  ;;  %v1538_v61 = vadd.f32 1e-05, %v1522_v4 }
 0x4e6   : > { %v1586_v22 = vmul.f32 %v3865_v46, %v1564_v53  ;;  %v1565_v19 = vmul.f32 %v2831_v29, %v3738_v31  ;;  %v1503_v10 = vpop.xlane.xlu1 %1502  ;;  %v1501_v14 = vpop.xlane.xlu0 %1500 }
 0x4e7   : > { %2840 = vrsqrt.f32 %v1539_v11  ;;  %v1525_v26 = vmul.f32 0.0078125, %v1503_v10  ;;  %v1524_v33 = vmul.f32 0.0078125, %v1501_v14 }
 0x4e8   : > { %v1587_v12 = vmul.f32 %v3865_v46, %v1565_v19  ;;  %v1608_v5 = vadd.f32 %v3873_v13, %v1586_v22  ;;  %2842 = vrsqrt.f32 %v1538_v61 }
 0x4e9   : > { %v2833_v62 = vpop.eup %2832  ;;  %v1541_v18 = vadd.f32 1e-05, %v1525_v26  ;;  %v1540_v47 = vadd.f32 1e-05, %v1524_v33 }
 0x4ea   : > { %v2835_v30 = vpop.eup %2834  ;;  %v1609_v28 = vadd.f32 %v3873_v13, %v1587_v12  ;;  %v1567_v31 = vmul.f32 %v2833_v62, %v3743_v35  ;;  %v1507_v49 = vpop.xlane.xlu1 %1506 }
 0x4eb   : > { %v1566_v34 = vmul.f32 %v2835_v30, %v3748_v40  ;;  %v1505_v51 = vpop.xlane.xlu0 %1504  ;;  %2844 = vrsqrt.f32 %v1541_v18  ;;  %v1527_v2 = vmul.f32 0.0078125, %v1507_v49 }
 0x4ec   : > { %v1624_v6 = vpack.c.bf16 %v1609_v28, %v1608_v5  ;;  %v1589_v36 = vmul.f32 %v3865_v46, %v1567_v31  ;;  %2846 = vrsqrt.f32 %v1540_v47  ;;  %v1526_v4 = vmul.f32 0.0078125, %v1505_v51 }
 0x4ed   : > { %v2837_v37 = vpop.eup %2836  ;;  %v1588_v43 = vmul.f32 %v3865_v46, %v1566_v34  ;;  %v1543_v19 = vadd.f32 1e-05, %v1527_v2 }
 0x4ee   : > { %v2839_v42 = vpop.eup %2838  ;;  %1773 = vmatmul.mubr.bf16.vlgmr.msra.gmra.mrb[16].mxu0 %v1624_v6  ;;  %v1611_v0 = vadd.f32 %v3873_v13, %v1589_v36  ;;  %v1569_v58 = vmul.f32 %v2837_v37, %v3755_v38  ;;  %v1542_v61 = vadd.f32 1e-05, %v1526_v4  ;;  %v1511_v10 = vpop.xlane.xlu1 %1510 }
 0x4ef   : > { %1782 = vmatprep.mubr.bf16.mxu0 %v3105_v16  ;;  %v1610_v35 = vadd.f32 %v3873_v13, %v1588_v43  ;;  %v1568_v40 = vmul.f32 %v2839_v42, %v3758_v48  ;;  %v1509_v48 = vpop.xlane.xlu0 %1508  ;;  %2848 = vrsqrt.f32 %v1543_v19  ;;  %v1529_v30 = vmul.f32 0.0078125, %v1511_v10 }
 0x4f0   : > { %v1591_v11 = vmul.f32 %v3865_v46, %v1569_v58  ;;  %2850 = vrsqrt.f32 %v1542_v61  ;;  %v1528_v26 = vmul.f32 0.0078125, %v1509_v48 }
 0x4f1   : > { %v2841_v3 = vpop.eup %2840  ;;  %v1625_v53 = vpack.c.bf16 %v1611_v0, %v1610_v35  ;;  %v1590_v29 = vmul.f32 %v3865_v46, %v1568_v40  ;;  %v1545_v6 = vadd.f32 1e-05, %v1529_v30 }
 0x4f2   : > { %v2843_v22 = vpop.eup %2842  ;;  %v1613_v12 = vadd.f32 %v3873_v13, %v1591_v11  ;;  %v1571_v62 = vmul.f32 %v2841_v3, %v3765_v59  ;;  %v1544_v36 = vadd.f32 1e-05, %v1528_v26  ;;  %v1515_v37 = vpop.xlane.xlu1 %1514 }
 0x4f3   : > { %v1612_v38 = vadd.f32 %v3873_v13, %v1590_v29  ;;  %v1570_v14 = vmul.f32 %v2843_v22, %v3768_v60  ;;  %v1513_v60 = vpop.xlane.xlu0 %1512  ;;  %2852 = vrsqrt.f32 %v1545_v6  ;;  %v1531_v47 = vmul.f32 0.0078125, %v1515_v37  ;;  %v2757_v37 = vld [vmem:[%s4176_s11 + $0x20] sm:$0xff]  }
 0x4f4   : > { %v1593_v33 = vmul.f32 %v3865_v46, %v1571_v62  ;;  %2854 = vrsqrt.f32 %v1544_v36  ;;  %v1530_v49 = vmul.f32 0.0078125, %v1513_v60  ;;  %v2758_v60 = vld [vmem:[%s4176_s11 + $0x68] sm:$0xff]  }
 0x4f5   : > { %v2845_v5 = vpop.eup %2844  ;;  %v1626_v28 = vpack.c.bf16 %v1613_v12, %v1612_v38  ;;  %v1592_v31 = vmul.f32 %v3865_v46, %v1570_v14  ;;  %v1547_v2 = vadd.f32 1e-05, %v1531_v47  ;;  %v2763_v47 = vld [vmem:[%s4176_s11 + $0x38] sm:$0xff]  }
 0x4f6   : > { %1783 = vmatmul.mubr.bf16.gmra.mrb[20].mxu0 %v1625_v53  ;;  %v2847_v34 = vpop.eup %2846  ;;  %v1615_v43 = vadd.f32 %v3873_v13, %v1593_v33  ;;  %v1573_v18 = vmul.f32 %v2845_v5, %v3775_v8  ;;  %v1546_v3 = vadd.f32 1e-05, %v1530_v49  ;;  %v1650_v49 = vlaneseq }
 0x4f7   : > { %1792 = vmatprep.mubr.bf16.mxu0 %v3105_v16  ;;  %v1614_v59 = vadd.f32 %v3873_v13, %v1592_v31  ;;  %v1572_v42 = vmul.f32 %v2847_v34, %v3778_v9  ;;  %2856 = vrsqrt.f32 %v1547_v2 }
 0x4f8   : > { %v1595_v40 = vmul.f32 %v3865_v46, %v1573_v18  ;;  %2858 = vrsqrt.f32 %v1546_v3  ;;  %v2762_v18 = vld [vmem:[%s4176_s11 + $0x78] sm:$0xff]  }
 0x4f9   : > { %v2849_v51 = vpop.eup %2848  ;;  %v1627_v35 = vpack.c.bf16 %v1615_v43, %v1614_v59  ;;  %v1594_v0 = vmul.f32 %v3865_v46, %v1572_v42  ;;  %v2759_v59 = vld [vmem:[%s4176_s11 + $0x28] sm:$0xff]   ;;  %v2760_v43 = vld [vmem:[%s4176_s11 + $0x70] sm:$0xff]  }
 0x4fa   : > { %v2851_v58 = vpop.eup %2850  ;;  %v1617_v8 = vadd.f32 %v3873_v13, %v1595_v40  ;;  %v1575_v53 = vmul.f32 %v2849_v51, %v3791_v20  ;;  %v2761_v42 = vld [vmem:[%s4176_s11 + $0x30] sm:$0xff]   ;;  %v1651_v51 = vshrl.u32 %v1650_v49, 7 }
 0x4fb   : > { %v1616_v9 = vadd.f32 %v3873_v13, %v1594_v0  ;;  %v1574_v4 = vmul.f32 %v2851_v58, %v3794_v23  ;;  %v1648_v0 = vld [vmem:[%s4201_s16] sm:$0x3]  ;;  %s3106_s16 = smov [#allocation8]  }
 0x4fc   : > { %v1597_v19 = vmul.f32 %v3865_v46, %v1575_v53  ;;  %v1656_v40 = vsub.s32 1, %v1651_v51  ;;  %s3030_s20 = sshll.u32 %s3106_s16, 4  ;;  %s3031_s20 = int_to_ptr.vmem [resolvable:$false] %s3030_s20 }
 0x4fd   : > { %v2853_v29 = vpop.eup %2852  ;;  %v1628_v11 = vpack.c.bf16 %v1617_v8, %v1616_v9  ;;  %v1596_v22 = vmul.f32 %v3865_v46, %v1574_v4  ;;  %s3032_s10 = scalar_lea.vmem %s3031_s20, 4096  ;;  %p3033_p8 = scmp.lt.s32.totalorder %s4119_s23, %s3031_s20 }
 0x4fe   : > { %1793 = vmatmul.mubr.bf16.gmra.mrb[24].mxu0 %v1626_v28  ;;  %v2855_v61 = vpop.eup %2854  ;;  %v1619_v48 = vadd.f32 %v3873_v13, %v1597_v19  ;;  %v1577_v20 = vmul.f32 %v2853_v29, %v3807_v17  ;;  %v3968_v2 = vrot.slane %v1648_v0, %v1656_v40  ;;  %p3034_p13 = scmp.lt.s32.totalorder %s3032_s10, %s3026_s14 }
 0x4ff   : > { %1802 = vmatprep.mubr.bf16.mxu0 %v3105_v16  ;;  %v1618_v10 = vadd.f32 %v3873_v13, %v1596_v22  ;;  %v1576_v23 = vmul.f32 %v2855_v61, %v3810_v27 }
 0x500   : > { %v1599_v62 = vmul.f32 %v3865_v46, %v1577_v20  ;;  %p3035_p3 = por %p3034_p13, %p3033_p8 }
 0x501   : > { %v2857_v38 = vpop.eup %2856  ;;  %v1629_v12 = vpack.c.bf16 %v1619_v48, %v1618_v10  ;;  %v1598_v14 = vmul.f32 %v3865_v46, %v1576_v23 }
 0x502   : > { %v2859_v30 = vpop.eup %2858  ;;  %v1621_v5 = vadd.f32 %v3873_v13, %v1599_v62  ;;  %v1579_v27 = vmul.f32 %v2857_v38, %v3823_v52  ;;  %v2753_v52 = vld [vmem:[%s4176_s11 + $0x10] sm:$0xff]   ;;  %p3036_p7 = pnand %p3035_p3, %p3029_p6 }
 0x503   : > { %v1620_v26 = vadd.f32 %v3873_v13, %v1598_v14  ;;  %v1578_v28 = vmul.f32 %v2859_v30, %v3826_v57  ;;  %v2752_v57 = vld [vmem:[%s4176_s11 + $0x50] sm:$0xff]  }
 0x504   : > { %v1601_v33 = vmul.f32 %v3865_v46, %v1579_v27  ;;  %2508 = vmatprep.subr.bf16.mxu1 %v2752_v57 }
 0x505   : > { %v1630_v31 = vpack.c.bf16 %v1621_v5, %v1620_v26  ;;  %v1600_v17 = vmul.f32 %v3865_v46, %v1578_v28  ;;  %2509 = vmatpush3.bf16.msra.mxu1 %v2753_v52  ;;  %v2755_v46 = vld [vmem:[%s4176_s11 + $0x18] sm:$0xff]  }
 0x506   : > { %1803 = vmatmul.mubr.bf16.gmra.mrb[28].mxu0 %v1627_v35  ;;  %v1623_v6 = vadd.f32 %v3873_v13, %v1601_v33  ;;  %v1652_v35 = vsub.s32 0, %v1651_v51 }
 0x507   : > { %1812 = vmatprep.mubr.bf16.mxu0 %v3105_v16  ;;  %v1622_v34 = vadd.f32 %v3873_v13, %v1600_v17  ;;  %v2756_v13 = vld [vmem:[%s4176_s11 + $0x60] sm:$0xff]  }
 0x508   : > { %v3966_v58 = vrot.slane %v1648_v0, %v1652_v35 }
 0x509   : > { %v1631_v36 = vpack.c.bf16 %v1623_v6, %v1622_v34 }
 0x50e   : > { %1813 = vmatmul.mubr.bf16.gmra.mrb[32].mxu0 %v1628_v11 }
 0x50f   : > { %1822 = vmatprep.mubr.bf16.mxu0 %v3105_v16 }
 0x516   : > { %1823 = vmatmul.mubr.bf16.gmra.mrb[36].mxu0 %v1629_v12 }
 0x517   : > { %1832 = vmatprep.mubr.bf16.mxu0 %v3105_v16 }
 0x51e   : > { %1833 = vmatmul.mubr.bf16.gmra.mrb[40].mxu0 %v1630_v31 }
 0x51f   : > { %1842 = vmatprep.mubr.bf16.mxu0 %v3105_v16  ;;  %v2754_v16 = vld [vmem:[%s4176_s11 + $0x58] sm:$0xff]  }
 0x520   : > { %2510 = vmatprep.subr.bf16.mxu1 %v2754_v16 }
 0x521   : > { %2511 = vmatpush3.bf16.msra.mxu1 %v2755_v46 }
 0x522   : > { %2512 = vmatprep.subr.bf16.mxu1 %v2756_v13 }
 0x525   : > { %2513 = vmatpush3.bf16.msra.mxu1 %v2757_v37 }
 0x526   : > { %1843 = vmatmul.mubr.bf16.gmra.mrb[44].mxu0 %v1631_v36  ;;  %2514 = vmatprep.subr.bf16.mxu1 %v2758_v60 }
 0x529   : > { %2515 = vmatpush3.bf16.msra.mxu1 %v2759_v59 }
 0x52a   : > { %2516 = vmatprep.subr.bf16.mxu1 %v2760_v43 }
 0x52d   : > { %2517 = vmatpush3.bf16.msra.mxu1 %v2761_v42 }
 0x52e   : > { %2518 = vmatprep.subr.bf16.mxu1 %v2762_v18 }
 0x531   : > { %2519 = vmatpush3.bf16.msra.mxu1 %v2763_v47 }
 0x5c1   : > { %v1774_v3 = vpop.f32.mrb[16].mxu0 }
 0x5c2   : > { %v1775_v9 = vadd.f32 %v1774_v3, %v3966_v58  ;;  %v1776_v8 = vpop.f32.mrb[17].mxu0 }
 0x5c3   : > { %v1777_v4 = vadd.f32 %v1776_v8, %v3968_v2  ;;  %v1778_v53 = vpop.f32.mrb[18].mxu0 }
 0x5c4   : > { %v1885_v29 = vmul.f32 0.70710677, %v1775_v9  ;;  %v1779_v11 = vadd.f32 %v1778_v53, %v3966_v58  ;;  %v1780_v22 = vpop.f32.mrb[19].mxu0  ;;  %v1853_v13 = vmul.f32 0.5, %v1775_v9 }
 0x5c5   : > { %v1886_v19 = vmul.f32 0.70710677, %v1777_v4  ;;  %v1781_v61 = vadd.f32 %v1780_v22, %v3968_v2  ;;  %v1854_v42 = vmul.f32 0.5, %v1777_v4 }
 0x5c6   : > { %2860 = verf.f32 %v1885_v29  ;;  %v1887_v10 = vmul.f32 0.70710677, %v1779_v11  ;;  %v1855_v37 = vmul.f32 0.5, %v1779_v11 }
 0x5c7   : > { %2862 = verf.f32 %v1886_v19  ;;  %v1888_v48 = vmul.f32 0.70710677, %v1781_v61  ;;  %v1856_v18 = vmul.f32 0.5, %v1781_v61 }
 0x5c8   : > { %2864 = verf.f32 %v1887_v10 }
 0x5c9   : > { %2866 = verf.f32 %v1888_v48  ;;  %v1784_v23 = vpop.f32.mrb[20].mxu0 }
 0x5ca   : > { %v1785_v20 = vadd.f32 %v1784_v23, %v3966_v58  ;;  %v1786_v38 = vpop.f32.mrb[21].mxu0 }
 0x5cb   : > { %v1787_v12 = vadd.f32 %v1786_v38, %v3968_v2  ;;  %v1788_v14 = vpop.f32.mrb[22].mxu0 }
 0x5cc   : > { %v1889_v62 = vmul.f32 0.70710677, %v1785_v20  ;;  %v1789_v30 = vadd.f32 %v1788_v14, %v3966_v58  ;;  %v1790_v26 = vpop.f32.mrb[23].mxu0 }
 0x5cd   : > { %v1890_v5 = vmul.f32 0.70710677, %v1787_v12  ;;  %v1791_v28 = vadd.f32 %v1790_v26, %v3968_v2 }
 0x5ce   : > { %2868 = verf.f32 %v1889_v62  ;;  %v1891_v27 = vmul.f32 0.70710677, %v1789_v30 }
 0x5cf   : > { %2870 = verf.f32 %v1890_v5  ;;  %v1892_v31 = vmul.f32 0.70710677, %v1791_v28  ;;  %v1857_v5 = vmul.f32 0.5, %v1785_v20 }
 0x5d0   : > { %v2861_v17 = vpop.eup %2860  ;;  %2872 = verf.f32 %v1891_v27  ;;  %v1859_v27 = vmul.f32 0.5, %v1789_v30 }
 0x5d1   : > { %v2863_v33 = vpop.eup %2862  ;;  %v1949_v34 = vadd.f32 1.0, %v2861_v17  ;;  %2874 = verf.f32 %v1892_v31  ;;  %v1794_v6 = vpop.f32.mrb[24].mxu0 }
 0x5d2   : > { %v2865_v36 = vpop.eup %2864  ;;  %v1950_v57 = vadd.f32 1.0, %v2863_v33  ;;  %v3979_v52 = vadd.f32 %v1794_v6, %v3966_v58  ;;  %v1796_v16 = vpop.f32.mrb[25].mxu0  ;;  %v1860_v6 = vmul.f32 0.5, %v1791_v28 }
 0x5d3   : > { %v2867_v46 = vpop.eup %2866  ;;  %v1951_v60 = vadd.f32 1.0, %v2865_v36  ;;  %v3982_v59 = vadd.f32 %v1796_v16, %v3968_v2  ;;  %v1798_v43 = vpop.f32.mrb[26].mxu0  ;;  %v1981_v35 = vmul.f32 %v1949_v34, %v1853_v13  ;;  %v1858_v34 = vmul.f32 0.5, %v1787_v12 }
 0x5d4   : > { %v1952_v47 = vadd.f32 1.0, %v2867_v46  ;;  %v1893_v49 = vmul.f32 0.70710677, %v3979_v52  ;;  %v1800_v51 = vpop.f32.mrb[27].mxu0  ;;  %v1799_v3 = vadd.f32 %v1798_v43, %v3966_v58  ;;  %v1982_v8 = vmul.f32 %v1950_v57, %v1854_v42 }
 0x5d5   : > { %v1983_v0 = vmul.f32 %v1951_v60, %v1855_v37  ;;  %v1894_v40 = vmul.f32 0.70710677, %v3982_v59  ;;  %v1801_v53 = vadd.f32 %v1800_v51, %v3968_v2 }
 0x5d6   : > { %v1984_v9 = vmul.f32 %v1952_v47, %v1856_v18  ;;  %2876 = verf.f32 %v1893_v49  ;;  %v1895_v11 = vmul.f32 0.70710677, %v1799_v3 }
 0x5d7   : > { %v2013_v29 = vpack.c.bf16 %v1983_v0, %v1981_v35  ;;  %2878 = verf.f32 %v1894_v40  ;;  %v1896_v22 = vmul.f32 0.70710677, %v1801_v53 }
 0x5d8   : > { %v2869_v4 = vpop.eup %2868  ;;  %v2014_v19 = vpack.c.bf16 %v1984_v9, %v1982_v8  ;;  %2880 = verf.f32 %v1895_v11  ;;  %v1861_v9 = vmul.f32 0.5, %v3979_v52 }
 0x5d9   : > { %v2871_v61 = vpop.eup %2870  ;;  %v1953_v10 = vadd.f32 1.0, %v2869_v4  ;;  %v1804_v48 = vpop.f32.mrb[28].mxu0  ;;  %2882 = verf.f32 %v1896_v22 }
 0x5da   : > { %v2873_v23 = vpop.eup %2872  ;;  %v1954_v38 = vadd.f32 1.0, %v2871_v61  ;;  %v3989_v14 = vadd.f32 %v1804_v48, %v3966_v58  ;;  %v1806_v62 = vpop.f32.mrb[29].mxu0  ;;  %2196 = vmatprep.mubr.bf16.mxu1 %v2014_v19  ;;  %v1862_v19 = vmul.f32 0.5, %v3982_v59  ;;  %v1863_v61 = vmul.f32 0.5, %v1799_v3 }
 0x5db   : > { %v2875_v26 = vpop.eup %2874  ;;  %v1955_v31 = vadd.f32 1.0, %v2873_v23  ;;  %v3992_v17 = vadd.f32 %v1806_v62, %v3968_v2  ;;  %v1808_v33 = vpop.f32.mrb[30].mxu0  ;;  %2197 = vmatmul.mubr.bf16.vlgmr.msra.gmra.mrb[16].mxu1 %v2013_v29  ;;  %v1985_v46 = vmul.f32 %v1953_v10, %v1857_v5 }
 0x5dc   : > { %v1956_v36 = vadd.f32 1.0, %v2875_v26  ;;  %v1897_v57 = vmul.f32 0.70710677, %v3989_v14  ;;  %v1810_v16 = vpop.f32.mrb[31].mxu0  ;;  %v1809_v60 = vadd.f32 %v1808_v33, %v3966_v58  ;;  %v1986_v20 = vmul.f32 %v1954_v38, %v1858_v34 }
 0x5dd   : > { %v1987_v13 = vmul.f32 %v1955_v31, %v1859_v27  ;;  %v1898_v37 = vmul.f32 0.70710677, %v3992_v17  ;;  %v1811_v43 = vadd.f32 %v1810_v16, %v3968_v2  ;;  %v1864_v38 = vmul.f32 0.5, %v1801_v53 }
 0x5de   : > { %v1988_v30 = vmul.f32 %v1956_v36, %v1860_v6  ;;  %2884 = verf.f32 %v1897_v57  ;;  %v1899_v42 = vmul.f32 0.70710677, %v1809_v60 }
 0x5df   : > { %2886 = verf.f32 %v1898_v37  ;;  %v2015_v18 = vpack.c.bf16 %v1987_v13, %v1985_v46  ;;  %v1900_v28 = vmul.f32 0.70710677, %v1811_v43 }
 0x5e0   : > { %v2877_v12 = vpop.eup %2876  ;;  %v2016_v47 = vpack.c.bf16 %v1988_v30, %v1986_v20  ;;  %2888 = verf.f32 %v1899_v42  ;;  %v1865_v30 = vmul.f32 0.5, %v3989_v14 }
 0x5e1   : > { %v2879_v49 = vpop.eup %2878  ;;  %v1814_v51 = vpop.f32.mrb[32].mxu0  ;;  %v1957_v35 = vadd.f32 1.0, %v2877_v12  ;;  %2890 = verf.f32 %v1900_v28 }
 0x5e2   : > { %v3999_v0 = vadd.f32 %v1814_v51, %v3966_v58  ;;  %v1816_v40 = vpop.f32.mrb[33].mxu0  ;;  %2204 = vmatprep.mubr.bf16.mxu1 %v2016_v47  ;;  %v2881_v8 = vpop.eup %2880  ;;  %v1958_v29 = vadd.f32 1.0, %v2879_v49  ;;  %v1866_v47 = vmul.f32 0.5, %v3992_v17  ;;  %v1867_v49 = vmul.f32 0.5, %v1809_v60 }
 0x5e3   : > { %v4003_v11 = vadd.f32 %v1816_v40, %v3968_v2  ;;  %v1818_v4 = vpop.f32.mrb[34].mxu0  ;;  %2205 = vmatmul.mubr.bf16.gmra.mrb[20].mxu1 %v2015_v18  ;;  %v2883_v22 = vpop.eup %2882  ;;  %v1959_v10 = vadd.f32 1.0, %v2881_v8  ;;  %v1989_v5 = vmul.f32 %v1957_v35, %v1861_v9  ;;  %v1868_v8 = vmul.f32 0.5, %v1811_v43 }
 0x5e4   : > { %v1901_v48 = vmul.f32 0.70710677, %v3999_v0  ;;  %v1820_v23 = vpop.f32.mrb[35].mxu0  ;;  %v1960_v62 = vadd.f32 1.0, %v2883_v22  ;;  %v4009_v52 = vadd.f32 %v1818_v4, %v3966_v58  ;;  %v1990_v33 = vmul.f32 %v1958_v29, %v1862_v19 }
 0x5e5   : > { %v1902_v26 = vmul.f32 0.70710677, %v4003_v11  ;;  %v1991_v27 = vmul.f32 %v1959_v10, %v1863_v61  ;;  %v4012_v31 = vadd.f32 %v1820_v23, %v3968_v2 }
 0x5e6   : > { %2892 = verf.f32 %v1901_v48  ;;  %v1992_v59 = vmul.f32 %v1960_v62, %v1864_v38  ;;  %v1903_v3 = vmul.f32 0.70710677, %v4009_v52 }
 0x5e7   : > { %2894 = verf.f32 %v1902_v26  ;;  %v1904_v53 = vmul.f32 0.70710677, %v4012_v31  ;;  %v2017_v6 = vpack.c.bf16 %v1991_v27, %v1989_v5 }
 0x5e8   : > { %v2885_v34 = vpop.eup %2884  ;;  %2896 = verf.f32 %v1903_v3  ;;  %v2018_v16 = vpack.c.bf16 %v1992_v59, %v1990_v33  ;;  %v1869_v59 = vmul.f32 0.5, %v3999_v0 }
 0x5e9   : > { %v2887_v36 = vpop.eup %2886  ;;  %v1824_v57 = vpop.f32.mrb[36].mxu0  ;;  %v1961_v46 = vadd.f32 1.0, %v2885_v34  ;;  %2898 = verf.f32 %v1904_v53 }
 0x5ea   : > { %v4017_v13 = vadd.f32 %v1824_v57, %v3966_v58  ;;  %v1826_v37 = vpop.f32.mrb[37].mxu0  ;;  %v2889_v20 = vpop.eup %2888  ;;  %v1962_v42 = vadd.f32 1.0, %v2887_v36  ;;  %2212 = vmatprep.mubr.bf16.mxu1 %v2018_v16  ;;  %v1870_v36 = vmul.f32 0.5, %v4003_v11  ;;  %v1871_v57 = vmul.f32 0.5, %v4009_v52 }
 0x5eb   : > { %v4021_v18 = vadd.f32 %v1826_v37, %v3968_v2  ;;  %v1828_v12 = vpop.f32.mrb[38].mxu0  ;;  %v2891_v28 = vpop.eup %2890  ;;  %v1963_v51 = vadd.f32 1.0, %v2889_v20  ;;  %2213 = vmatmul.mubr.bf16.gmra.mrb[24].mxu1 %v2017_v6  ;;  %v1993_v4 = vmul.f32 %v1961_v46, %v1865_v30  ;;  %v1872_v20 = vmul.f32 0.5, %v4012_v31 }
 0x5ec   : > { %v1905_v35 = vmul.f32 0.70710677, %v4017_v13  ;;  %v1830_v40 = vpop.f32.mrb[39].mxu0  ;;  %v1964_v9 = vadd.f32 1.0, %v2891_v28  ;;  %v4027_v14 = vadd.f32 %v1828_v12, %v3966_v58  ;;  %v1994_v17 = vmul.f32 %v1962_v42, %v1866_v47 }
 0x5ed   : > { %v1906_v29 = vmul.f32 0.70710677, %v4021_v18  ;;  %v1995_v22 = vmul.f32 %v1963_v51, %v1867_v49  ;;  %v4030_v19 = vadd.f32 %v1830_v40, %v3968_v2 }
 0x5ee   : > { %2900 = verf.f32 %v1905_v35  ;;  %v1996_v60 = vmul.f32 %v1964_v9, %v1868_v8  ;;  %v1907_v61 = vmul.f32 0.70710677, %v4027_v14 }
 0x5ef   : > { %2902 = verf.f32 %v1906_v29  ;;  %v1908_v43 = vmul.f32 0.70710677, %v4030_v19  ;;  %v2019_v48 = vpack.c.bf16 %v1995_v22, %v1993_v4 }
 0x5f0   : > { %v2893_v10 = vpop.eup %2892  ;;  %2904 = verf.f32 %v1907_v61  ;;  %v2020_v62 = vpack.c.bf16 %v1996_v60, %v1994_v17  ;;  %v1873_v60 = vmul.f32 0.5, %v4017_v13 }
 0x5f1   : > { %v2895_v23 = vpop.eup %2894  ;;  %v1834_v38 = vpop.f32.mrb[40].mxu0  ;;  %v1965_v26 = vadd.f32 1.0, %v2893_v10  ;;  %2906 = verf.f32 %v1908_v43 }
 0x5f2   : > { %v4035_v5 = vadd.f32 %v1834_v38, %v3966_v58  ;;  %v1836_v27 = vpop.f32.mrb[41].mxu0  ;;  %v2897_v33 = vpop.eup %2896  ;;  %v1966_v3 = vadd.f32 1.0, %v2895_v23  ;;  %2220 = vmatprep.mubr.bf16.mxu1 %v2020_v62  ;;  %v1874_v23 = vmul.f32 0.5, %v4021_v18  ;;  %v1875_v38 = vmul.f32 0.5, %v4027_v14 }
 0x5f3   : > { %v4039_v34 = vadd.f32 %v1836_v27, %v3968_v2  ;;  %v1838_v53 = vpop.f32.mrb[42].mxu0  ;;  %v2899_v6 = vpop.eup %2898  ;;  %v1967_v16 = vadd.f32 1.0, %v2897_v33  ;;  %2221 = vmatmul.mubr.bf16.gmra.mrb[28].mxu1 %v2019_v48  ;;  %v1997_v12 = vmul.f32 %v1965_v26, %v1869_v59  ;;  %v1876_v33 = vmul.f32 0.5, %v4030_v19 }
 0x5f4   : > { %v1909_v46 = vmul.f32 0.70710677, %v4035_v5  ;;  %v1840_v37 = vpop.f32.mrb[43].mxu0  ;;  %v1968_v30 = vadd.f32 1.0, %v2899_v6  ;;  %v1839_v42 = vadd.f32 %v1838_v53, %v3966_v58  ;;  %v1998_v11 = vmul.f32 %v1966_v3, %v1870_v36 }
 0x5f5   : > { %v1910_v0 = vmul.f32 0.70710677, %v4039_v34  ;;  %v1999_v28 = vmul.f32 %v1967_v16, %v1871_v57  ;;  %v1841_v47 = vadd.f32 %v1840_v37, %v3968_v2 }
 0x5f6   : > { %2908 = verf.f32 %v1909_v46  ;;  %v2000_v49 = vmul.f32 %v1968_v30, %v1872_v20  ;;  %v1911_v52 = vmul.f32 0.70710677, %v1839_v42 }
 0x5f7   : > { %2910 = verf.f32 %v1910_v0  ;;  %v1912_v35 = vmul.f32 0.70710677, %v1841_v47  ;;  %v2021_v40 = vpack.c.bf16 %v1999_v28, %v1997_v12  ;;  %v1877_v28 = vmul.f32 0.5, %v4035_v5 }
 0x5f8   : > { %v2901_v51 = vpop.eup %2900  ;;  %2912 = verf.f32 %v1911_v52  ;;  %v2022_v9 = vpack.c.bf16 %v2000_v49, %v1998_v11  ;;  %v1879_v11 = vmul.f32 0.5, %v1839_v42  ;;  %v1878_v49 = vmul.f32 0.5, %v4039_v34 }
 0x5f9   : > { %v2903_v8 = vpop.eup %2902  ;;  %v1844_v31 = vpop.f32.mrb[44].mxu0  ;;  %v1969_v29 = vadd.f32 1.0, %v2901_v51  ;;  %2914 = verf.f32 %v1912_v35  ;;  %v1880_v52 = vmul.f32 0.5, %v1841_v47 }
 0x5fa   : > { %v1845_v4 = vadd.f32 %v1844_v31, %v3966_v58  ;;  %v1846_v22 = vpop.f32.mrb[45].mxu0  ;;  %v2905_v17 = vpop.eup %2904  ;;  %v1970_v61 = vadd.f32 1.0, %v2903_v8  ;;  %2228 = vmatprep.mubr.bf16.mxu1 %v2022_v9 }
 0x5fb   : > { %v1847_v10 = vadd.f32 %v1846_v22, %v3968_v2  ;;  %v1848_v43 = vpop.f32.mrb[46].mxu0  ;;  %v2907_v48 = vpop.eup %2906  ;;  %v1971_v62 = vadd.f32 1.0, %v2905_v17  ;;  %2229 = vmatmul.mubr.bf16.gmra.mrb[32].mxu1 %v2021_v40  ;;  %v2001_v53 = vmul.f32 %v1969_v29, %v1873_v60 }
 0x5fc   : > { %v1913_v26 = vmul.f32 0.70710677, %v1845_v4  ;;  %v1850_v27 = vpop.f32.mrb[47].mxu0  ;;  %v1972_v59 = vadd.f32 1.0, %v2907_v48  ;;  %v1849_v13 = vadd.f32 %v1848_v43, %v3966_v58  ;;  %v2002_v57 = vmul.f32 %v1970_v61, %v1874_v23 }
 0x5fd   : > { %v1914_v3 = vmul.f32 0.70710677, %v1847_v10  ;;  %v2003_v6 = vmul.f32 %v1971_v62, %v1875_v38  ;;  %v1851_v36 = vadd.f32 %v1850_v27, %v3968_v2  ;;  %v1881_v42 = vmul.f32 0.5, %v1845_v4  ;;  %v4061_v4 = vld [vmem:[%s4202_s12] ss:$0 sm:$0xff] }
 0x5fe   : > { %2916 = verf.f32 %v1913_v26  ;;  %v2004_v16 = vmul.f32 %v1972_v59, %v1876_v33  ;;  %v1915_v18 = vmul.f32 0.70710677, %v1849_v13  ;;  %v1883_v48 = vmul.f32 0.5, %v1849_v13 }
 0x5ff   : > { %2918 = verf.f32 %v1914_v3  ;;  %v1916_v46 = vmul.f32 0.70710677, %v1851_v36  ;;  %v2023_v37 = vpack.c.bf16 %v2003_v6, %v2001_v53  ;;  %v1882_v34 = vmul.f32 0.5, %v1847_v10 }
 0x600   : > { %v2909_v14 = vpop.eup %2908  ;;  %2920 = verf.f32 %v1915_v18  ;;  %v2024_v30 = vpack.c.bf16 %v2004_v16, %v2002_v57  ;;  %v1884_v47 = vmul.f32 0.5, %v1851_v36 }
 0x601   : > { %v2911_v20 = vpop.eup %2910  ;;  %v1973_v19 = vadd.f32 1.0, %v2909_v14  ;;  %2922 = verf.f32 %v1916_v46 }
 0x602   : > { %v2913_v0 = vpop.eup %2912  ;;  %v1974_v12 = vadd.f32 1.0, %v2911_v20  ;;  %2236 = vmatprep.mubr.bf16.mxu1 %v2024_v30 }
 0x603   : > { %v2915_v58 = vpop.eup %2914  ;;  %v1975_v2 = vadd.f32 1.0, %v2913_v0  ;;  %2237 = vmatmul.mubr.bf16.gmra.mrb[36].mxu1 %v2023_v37  ;;  %v2005_v35 = vmul.f32 %v1973_v19, %v1877_v28 }
 0x604   : > { %v1976_v51 = vadd.f32 1.0, %v2915_v58  ;;  %v2006_v8 = vmul.f32 %v1974_v12, %v1878_v49 }
 0x605   : > { %v2007_v40 = vmul.f32 %v1975_v2, %v1879_v11 }
 0x606   : > { %v2008_v31 = vmul.f32 %v1976_v51, %v1880_v52 }
 0x607   : > { %v2025_v29 = vpack.c.bf16 %v2007_v40, %v2005_v35 }
 0x608   : > { %v2917_v9 = vpop.eup %2916  ;;  %v2026_v17 = vpack.c.bf16 %v2008_v31, %v2006_v8 }
 0x609   : > { %v2919_v22 = vpop.eup %2918  ;;  %v1977_v60 = vadd.f32 1.0, %v2917_v9 }
 0x60a   : > { %v2921_v61 = vpop.eup %2920  ;;  %v1978_v43 = vadd.f32 1.0, %v2919_v22  ;;  %2244 = vmatprep.mubr.bf16.mxu1 %v2026_v17 }
 0x60b   : > { %v2923_v5 = vpop.eup %2922  ;;  %v1979_v23 = vadd.f32 1.0, %v2921_v61  ;;  %2245 = vmatmul.mubr.bf16.gmra.mrb[40].mxu1 %v2025_v29  ;;  %v2009_v62 = vmul.f32 %v1977_v60, %v1881_v42 }
 0x60c   : > { %v1980_v38 = vadd.f32 1.0, %v2923_v5  ;;  %v2010_v27 = vmul.f32 %v1978_v43, %v1882_v34 }
 0x60d   : > { %v2011_v26 = vmul.f32 %v1979_v23, %v1883_v48 }
 0x60e   : > { %v2012_v33 = vmul.f32 %v1980_v38, %v1884_v47 }
 0x60f   : > { %v2027_v59 = vpack.c.bf16 %v2011_v26, %v2009_v62 }
 0x610   : > { %v2028_v3 = vpack.c.bf16 %v2012_v33, %v2010_v27 }
 0x612   : > { %2252 = vmatprep.mubr.bf16.mxu1 %v2028_v3 }
 0x613   : > { %2253 = vmatmul.mubr.bf16.gmra.mrb[44].mxu1 %v2027_v59 }
 0x6ae   : > { %v2520_v53 = vpop.f32.mrb[16].mxu1 }
 0x6af   : > { %v2521_v13 = vpop.f32.mrb[17].mxu1 }
 0x6b0   : > { %v2522_v6 = vadd.f32 %v2521_v13, %v2520_v53  ;;  %v2523_v10 = vpop.f32.mrb[18].mxu1 }
 0x6b1   : > { %v2524_v36 = vpop.f32.mrb[19].mxu1 }
 0x6b2   : > { %v2199_v57 = vadd.f32 %v2522_v6, %v4061_v4  ;;  %v2525_v16 = vadd.f32 %v2524_v36, %v2523_v10 }
 0x6b4   : > { %v2261_v18 = vadd.f32 %v2199_v57, %v3659_v45  ;;  %v2202_v14 = vadd.f32 %v2525_v16, %v4061_v4 }
 0x6b6   : > { %2277 = vst [vmem:[%s4068_s19] sm:$0xff] %v2261_v18  ;;  %v2262_v46 = vadd.f32 %v2202_v14, %v3664_v24  ;;  %v2526_v37 = vpop.f32.mrb[20].mxu1 }
 0x6b7   : > { %v2527_v20 = vpop.f32.mrb[21].mxu1 }
 0x6b8   : > { %2278 = vst [vmem:[%s4068_s19 + $0x8] sm:$0xff] %v2262_v46  ;;  %v2528_v30 = vadd.f32 %v2527_v20, %v2526_v37  ;;  %v2529_v19 = vpop.f32.mrb[22].mxu1 }
 0x6b9   : > { %v2530_v0 = vpop.f32.mrb[23].mxu1 }
 0x6ba   : > { %v2207_v45 = vadd.f32 %v2528_v30, %v4061_v4  ;;  %v2531_v12 = vadd.f32 %v2530_v0, %v2529_v19 }
 0x6bc   : > { %v2263_v58 = vadd.f32 %v2207_v45, %v3670_v21  ;;  %v2210_v28 = vadd.f32 %v2531_v12, %v4061_v4 }
 0x6be   : > { %2279 = vst [vmem:[%s4068_s19 + $0x10] sm:$0xff] %v2263_v58  ;;  %v2264_v11 = vadd.f32 %v2210_v28, %v3667_v25  ;;  %v2532_v2 = vpop.f32.mrb[24].mxu1 }
 0x6bf   : > { %v2533_v24 = vpop.f32.mrb[25].mxu1 }
 0x6c0   : > { %2280 = vst [vmem:[%s4068_s19 + $0x18] sm:$0xff] %v2264_v11  ;;  %v2534_v49 = vadd.f32 %v2533_v24, %v2532_v2  ;;  %v2535_v52 = vpop.f32.mrb[26].mxu1 }
 0x6c1   : > { %v2536_v51 = vpop.f32.mrb[27].mxu1 }
 0x6c2   : > { %v2215_v35 = vadd.f32 %v2534_v49, %v4061_v4  ;;  %v2537_v40 = vadd.f32 %v2536_v51, %v2535_v52 }
 0x6c4   : > { %v2265_v8 = vadd.f32 %v2215_v35, %v3677_v39  ;;  %v2218_v21 = vadd.f32 %v2537_v40, %v4061_v4 }
 0x6c6   : > { %2281 = vst [vmem:[%s4068_s19 + $0x20] sm:$0xff] %v2265_v8  ;;  %v2266_v31 = vadd.f32 %v2218_v21, %v3680_v41  ;;  %v2538_v9 = vpop.f32.mrb[28].mxu1 }
 0x6c7   : > { %v2539_v25 = vpop.f32.mrb[29].mxu1 }
 0x6c8   : > { %2282 = vst [vmem:[%s4068_s19 + $0x28] sm:$0xff] %v2266_v31  ;;  %v2540_v29 = vadd.f32 %v2539_v25, %v2538_v9  ;;  %v2541_v22 = vpop.f32.mrb[30].mxu1 }
 0x6c9   : > { %v2542_v17 = vpop.f32.mrb[31].mxu1 }
 0x6ca   : > { %v2223_v60 = vadd.f32 %v2540_v29, %v4061_v4  ;;  %v2543_v61 = vadd.f32 %v2542_v17, %v2541_v22 }
 0x6cc   : > { %v2267_v43 = vadd.f32 %v2223_v60, %v3684_v44  ;;  %v2226_v39 = vadd.f32 %v2543_v61, %v4061_v4 }
 0x6ce   : > { %2283 = vst [vmem:[%s4068_s19 + $0x30] sm:$0xff] %v2267_v43  ;;  %v2268_v5 = vadd.f32 %v2226_v39, %v3686_v32  ;;  %v2544_v42 = vpop.f32.mrb[32].mxu1 }
 0x6cf   : > { %v2545_v41 = vpop.f32.mrb[33].mxu1 }
 0x6d0   : > { %2284 = vst [vmem:[%s4068_s19 + $0x38] sm:$0xff] %v2268_v5  ;;  %v2546_v48 = vadd.f32 %v2545_v41, %v2544_v42  ;;  %v2547_v23 = vpop.f32.mrb[34].mxu1 }
 0x6d1   : > { %v2548_v34 = vpop.f32.mrb[35].mxu1 }
 0x6d2   : > { %v2231_v47 = vadd.f32 %v2546_v48, %v4061_v4  ;;  %v2549_v38 = vadd.f32 %v2548_v34, %v2547_v23 }
 0x6d4   : > { %v2269_v62 = vadd.f32 %v2231_v47, %v3693_v55  ;;  %v2234_v44 = vadd.f32 %v2549_v38, %v4061_v4 }
 0x6d6   : > { %2285 = vst [vmem:[%s4068_s19 + $0x40] sm:$0xff] %v2269_v62  ;;  %v2270_v26 = vadd.f32 %v2234_v44, %v3696_v50  ;;  %v2550_v27 = vpop.f32.mrb[36].mxu1 }
 0x6d7   : > { %v2551_v32 = vpop.f32.mrb[37].mxu1 }
 0x6d8   : > { %2286 = vst [vmem:[%s4068_s19 + $0x48] sm:$0xff] %v2270_v26  ;;  %v2552_v33 = vadd.f32 %v2551_v32, %v2550_v27  ;;  %v2553_v59 = vpop.f32.mrb[38].mxu1 }
 0x6d9   : > { %v2554_v3 = vpop.f32.mrb[39].mxu1 }
 0x6da   : > { %v2239_v53 = vadd.f32 %v2552_v33, %v4061_v4  ;;  %v2555_v13 = vadd.f32 %v2554_v3, %v2553_v59 }
 0x6dc   : > { %v2271_v6 = vadd.f32 %v2239_v53, %v3700_v63  ;;  %v2242_v55 = vadd.f32 %v2555_v13, %v4061_v4 }
 0x6de   : > { %2287 = vst [vmem:[%s4068_s19 + $0x50] sm:$0xff] %v2271_v6  ;;  %v2272_v10 = vadd.f32 %v2242_v55, %v3702_v1  ;;  %v2556_v36 = vpop.f32.mrb[40].mxu1 }
 0x6df   : > { %v2557_v50 = vpop.f32.mrb[41].mxu1 }
 0x6e0   : > { %2288 = vst [vmem:[%s4068_s19 + $0x58] sm:$0xff] %v2272_v10  ;;  %v2558_v57 = vadd.f32 %v2557_v50, %v2556_v36  ;;  %v2559_v16 = vpop.f32.mrb[42].mxu1 }
 0x6e1   : > { %v2560_v18 = vpop.f32.mrb[43].mxu1 }
 0x6e2   : > { %v2247_v14 = vadd.f32 %v2558_v57, %v4061_v4  ;;  %v2561_v46 = vadd.f32 %v2560_v18, %v2559_v16 }
 0x6e4   : > { %v2273_v37 = vadd.f32 %v2247_v14, %v3709_v54  ;;  %v2250_v63 = vadd.f32 %v2561_v46, %v4061_v4 }
 0x6e6   : > { %2289 = vst [vmem:[%s4068_s19 + $0x60] sm:$0xff] %v2273_v37  ;;  %v2274_v20 = vadd.f32 %v2250_v63, %v3712_v56  ;;  %v2562_v1 = vpop.f32.mrb[44].mxu1 }
 0x6e7   : > { %v2563_v30 = vpop.f32.mrb[45].mxu1 }
 0x6e8   : > { %2290 = vst [vmem:[%s4068_s19 + $0x68] sm:$0xff] %v2274_v20  ;;  %v2564_v19 = vadd.f32 %v2563_v30, %v2562_v1  ;;  %v2565_v0 = vpop.f32.mrb[46].mxu1 }
 0x6e9   : > { %v2566_v45 = vpop.f32.mrb[47].mxu1 }
 0x6ea   : > { %v2255_v12 = vadd.f32 %v2564_v19, %v4061_v4  ;;  %v2567_v58 = vadd.f32 %v2566_v45, %v2565_v0 }
 0x6ec   : > { %v2275_v54 = vadd.f32 %v2255_v12, %v3716_v7  ;;  %v2258_v28 = vadd.f32 %v2567_v58, %v4061_v4 }
 0x6ee   : > { %2291 = vst [vmem:[%s4068_s19 + $0x70] sm:$0xff] %v2275_v54  ;;  %v2276_v56 = vadd.f32 %v2258_v28, %v3718_v15 }
 0x6f0   : > { %2292 = vst [vmem:[%s4068_s19 + $0x78] sm:$0xff] %v2276_v56 }
 0x6f1   : > { %3039 = shalt.err (!%p3036_p7)
}
 0x6f2   : > { %s3040_s12 = scalar_lea.hbm %s4117_s21, 2048  ;;  %s3044_s25 = scalar_lea.hbm %s4203_s17, 8192 }
 0x6f3   : > { %p3041_p9 = scmp.ne.s32.totalorder %s4117_s21, %s3040_s12  ;;  %p3045_p5 = scmp.lt.u32.totalorder %s4117_s21, %s4203_s17 }
 0x6f4   : > { %p3046_p10 = scmp.lt.u32.totalorder %s3044_s25, %s3040_s12  ;;  %p3048_p1 = scmp.lt.u32.totalorder %s3040_s12, %s4117_s21 }
 0x6f5   : > { %p3042_p12 = pnand %p3041_p9, %p3291_p4 }
 0x6f6   : > { %p3047_p11 = por %p3046_p10, %p3045_p5 }
 0x6f7   : > { %p3043_p0 = pneg %p3042_p12 }
 0x6f8   : > { %p3049_p2 = por %p3048_p1, %p3047_p11 }
 0x6fa   : > { %p3050_p6 = pnand %p3049_p2, %p3043_p0 }
 0x6fc   : > { %3053 = shalt.err (!%p3050_p6)
}
 0x6fd   : > { %s3107_s14 = smov 128   ;;  %s3108_s20 = smov 8  }
 0x6fe   : > { %2642 = dma.vmem_to_hbm [thread:$0]  (%p3291_p4), %s4119_s23, 2048, %s4117_s21, %s2294_s29, %s3107_s14, %s3107_s14, %s3108_s20  }
 0x6ff PF: > { %s4204_s10 = sld [smem:[#allocation12_spill]]  ;;  %s4205_s19 = sld [smem:[#allocation13_spill]] }
 0x700   : > { %p2664_p8 = scmp.ge.s32.totalorder %s3096_s28, 2 }
 0x705   : > { %s2322_s30 = sand.u32 1, %s4204_s10   ;;  %p4206_p13 = scmp.ne.s32.totalorder %s4205_s19, 0 }
 0x706   : > { %s2323_s12 = scalar_lea.sflag [#allocation4], %s2322_s30 }
 0x707   : > { %p2656_p3 = pnand %p2664_p8, %p4206_p13 }
 0x709   : > { %3079 = dma.done.wait (!%p2656_p3), %s2323_s12, 2048  }
 0x70a   : > { %3081 = vsyncadd (!%p2656_p3), %s2323_s12, 4294965248  ;;  %p27_p7 = scmp.ge.s32.totalorder %s3281_s13, 6   ;;  %s4207_s25 = smov %s3088_s26 }
 0x70b   : > { %s4208_s26 = smov %s3092_s27  ;;  %s4209_s27 = smov %s3297_s24 }
 0x70c   : > { %s4210_s28 = smov %s3281_s13  ;;  %29 = sbr.rel (!%p27_p7) target bundleno = 10 (0xa), region = 125 }
 0x713   :  { %2328 = vsyncpa [#allocation3], 1 }
 0x714   :  { %2330 = vsyncpa [#allocation3 + $0x1], 1 }
 0x715   :  { %2331 = vsyncpa [#allocation6], 1 }
 0x716   :  { %2332 = vsyncpa [#allocation4], 1 }
 0x717   :  { %2334 = vsyncpa [#allocation4 + $0x1], 1 }

</bundles_post_ra>
